<compile_context>
chip_gen: v6e
topology: v6e:2x2x1
jax: 0.10.0
libtpu: 0.0.40
codegen_flags: <defaults>
</compile_context>

<pallas_src>
import jax
import jax.numpy as jnp
from jax import lax
from jax.experimental import pallas as pl
from jax.experimental.pallas import tpu as pltpu

KSIZE = 7
PAD = 3
CIN_SA = 2            # pooled channels feeding the conv: [avg(sum), max]
_SUBLANES = 8
_LANES = 128
_CONV_H_TILE = 32     # H rows per finalize-conv chunk (bounds vreg pressure)


def _round_up(x, m):
    return (x + m - 1) // m * m


def _physical_vmem_bytes():
    """Per-core VMEM capacity; conservative (v7x) fallback if the query fails."""
    try:
        return int(pltpu.get_tpu_info().vmem_capacity_bytes)
    except Exception:
        return 64 << 20


def _pick_c_chunk(C, HW, itemsize, block_budget_bytes):
    """Channel chunk for the pooling pass using the real padded VMEM footprint."""
    lanes = _round_up(HW, _LANES)
    sl_pack = _SUBLANES * max(1, 4 // itemsize)        # 8 f32 / 16 bf16 / 32 i8
    def footprint(cc):
        return _round_up(cc, sl_pack) * lanes * itemsize
    if C <= _SUBLANES or footprint(C) <= block_budget_bytes:
        return C                                       # single chunk
    cc = (block_budget_bytes // (lanes * itemsize)) // _SUBLANES * _SUBLANES
    cc = max(_SUBLANES, min(cc, (C // _SUBLANES) * _SUBLANES))
    return cc


# -----------------------------------------------------------------------------
# Fused kernel factory.
#   grid = (N, num_c_chunks); refs:
#     w_ref : SMEM flat weights, len 2*7*7 (index = c*49 + kh*7 + kw),
#             avg-channel already scaled by 1/C
#     b_ref : SMEM bias, len 1
#     x_ref : (1, c_chunk, H*W) lane-dense input block
#     o_ref : (1, 1, H, W) output block (resident across the C axis)
#   scratch:
#     pool_ref : (2, H*W) f32          -- running [channel-sum, channel-max]
#     pp_ref   : (2, H+6, W+6) f32     -- reflect-padded plane (built on finalize)
# -----------------------------------------------------------------------------
def _make_kernel(C, H, W, c_chunk, nc):
    HW = H * W
    SUB = min(_SUBLANES, c_chunk)

    def kernel(w_ref, b_ref, x_ref, o_ref, pool_ref, pp_ref):
        ci = pl.program_id(1)

        # ---- init the persistent [sum, max] accumulator ---------------------
        @pl.when(ci == 0)
        def _init():
            pool_ref[0:1, :] = jnp.zeros((1, HW), jnp.float32)
            pool_ref[1:2, :] = jnp.full((1, HW), -jnp.inf, jnp.float32)

        def _accum(blk):  # blk: (rows, HW) f32 — single pass updates sum & max
            pool_ref[0:1, :] += jnp.sum(blk, axis=0, keepdims=True)
            pool_ref[1:2, :] = jnp.maximum(
                pool_ref[1:2, :], jnp.max(blk, axis=0, keepdims=True))

        # ---- channel pooling for this chunk (8-row strips, single pass) -----
        if nc == 1:
            # All channels are valid and static: unrolled strips, no masks.
            for s0 in range(0, C, SUB):
                rows = min(SUB, C - s0)
                _accum(x_ref[0, s0:s0 + rows, :].astype(jnp.float32))
        else:
            # c_chunk is a multiple of 8; only the final chunk can be ragged.
            valid = jnp.minimum(c_chunk, C - ci * c_chunk)     # >= 1

            @pl.loop(0, (valid + SUB - 1) // SUB)
            def _strip(s):
                off = pl.multiple_of(s * SUB, SUB)
                blk = x_ref[0, pl.ds(off, SUB), :].astype(jnp.float32)
                rem = valid - off

                @pl.when(rem >= SUB)
                def _full():
                    _accum(blk)

                @pl.when(rem < SUB)
                def _ragged():
                    ok = lax.broadcasted_iota(jnp.int32, (SUB, 1), 0) < rem
                    pool_ref[0:1, :] += jnp.sum(
                        jnp.where(ok, blk, 0.0), axis=0, keepdims=True)
                    pool_ref[1:2, :] = jnp.maximum(
                        pool_ref[1:2, :],
                        jnp.max(jnp.where(ok, blk, -jnp.inf),
                                axis=0, keepdims=True))

        # ---- finalize: relayout, reflect-pad in VMEM, 7x7 conv, store -------
        @pl.when(ci == pl.num_programs(1) - 1)
        def _finalize():
            # (a) scatter pooled flat rows into the interior of the padded plane
            for ch in range(CIN_SA):
                for h in range(H):
                    pp_ref[ch, PAD + h:PAD + h + 1, PAD:PAD + W] = \
                        pool_ref[ch:ch + 1, h * W:h * W + W]

            # (b) reflect rows then columns (both channels at once; corners OK)
            for p in range(PAD):
                pp_ref[:, p:p + 1, PAD:PAD + W] = \
                    pp_ref[:, 2 * PAD - p:2 * PAD - p + 1, PAD:PAD + W]
                pp_ref[:, PAD + H + p:PAD + H + p + 1, PAD:PAD + W] = \
                    pp_ref[:, PAD + H - 2 - p:PAD + H - 1 - p, PAD:PAD + W]
            for p in range(PAD):
                pp_ref[:, :, p:p + 1] = \
                    pp_ref[:, :, 2 * PAD - p:2 * PAD - p + 1]
                pp_ref[:, :, PAD + W + p:PAD + W + p + 1] = \
                    pp_ref[:, :, PAD + W - 2 - p:PAD + W - 1 - p]

            # (c) 7x7 conv, 2 -> 1 channel: direct VMEM tap reads, H-tiled,
            #     4 independent accumulators to break the serial add chain.
            for h0 in range(0, H, _CONV_H_TILE):
                hb = min(_CONV_H_TILE, H - h0)
                accs = [jnp.zeros((hb, W), jnp.float32) for _ in range(4)]
                t = 0
                for ch in range(CIN_SA):
                    for kh in range(KSIZE):
                        for kw in range(KSIZE):
                            wgt = w_ref[ch * KSIZE * KSIZE + kh * KSIZE + kw]
                            tap = pp_ref[ch, h0 + kh:h0 + kh + hb, kw:kw + W]
                            accs[t % 4] = accs[t % 4] + wgt * tap
                            t += 1
                acc = (accs[0] + accs[1]) + (accs[2] + accs[3]) + b_ref[0]
                o_ref[0, 0, h0:h0 + hb, :] = acc.astype(o_ref.dtype)

    return kernel


# -----------------------------------------------------------------------------
# Wrapper
# -----------------------------------------------------------------------------
def spatial_attention(x, weight, bias, *, c_chunk=None):
    """x: (N, C, H, W); weight: (1, 2, 7, 7) OIHW; bias: (1,). -> (N, 1, H, W)."""
    N, C, H, W = x.shape
    assert weight.shape == (1, CIN_SA, KSIZE, KSIZE), weight.shape
    assert bias.shape == (1,), bias.shape
    # Reflect padding with pad=3 needs at least 4 rows/cols (same as PyTorch).
    assert H >= PAD + 1 and W >= PAD + 1, (H, W)

    HW = H * W
    itemsize = jnp.dtype(x.dtype).itemsize

    # Generation-aware VMEM budgets (v5e/v6e: 128 MiB -> 16 MiB blocks,
    # 64 MiB scoped; v7x: 64 MiB -> 8 MiB blocks, ~45 MiB scoped).
    phys_vmem = _physical_vmem_bytes()
    vmem_limit = min(64 << 20, int(phys_vmem * 0.7))
    block_budget = min(16 << 20, phys_vmem // 8)

    if c_chunk is None:
        c_chunk = _pick_c_chunk(C, HW, itemsize, block_budget)
    nc = -(-C // c_chunk)
    # BlockSpec sublane rule + in-kernel strip logic need one of these to hold.
    assert c_chunk == C or c_chunk % _SUBLANES == 0, (C, c_chunk)

    # Lane-dense pooling layout: free metadata reshape on a contiguous NCHW array.
    x_flat = x.reshape(N, C, HW)

    # Fold the 1/C of the channel mean into the avg-channel weights: the kernel
    # only ever forms the channel sum.
    w = weight.astype(jnp.float32).reshape(CIN_SA, KSIZE * KSIZE)
    w = w * jnp.array([[1.0 / C], [1.0]], dtype=jnp.float32)
    w_flat = w.reshape(-1)                       # index = c*49 + kh*7 + kw
    b = bias.astype(jnp.float32)

    kernel = _make_kernel(C, H, W, c_chunk, nc)

    return pl.pallas_call(
        kernel,
        out_shape=jax.ShapeDtypeStruct((N, 1, H, W), x.dtype),
        grid=(N, nc),
        in_specs=[
            pl.BlockSpec(memory_space=pltpu.MemorySpace.SMEM),   # weights
            pl.BlockSpec(memory_space=pltpu.MemorySpace.SMEM),   # bias
            pl.BlockSpec((1, c_chunk, HW), lambda n, c: (n, c, 0)),
        ],
        out_specs=pl.BlockSpec((1, 1, H, W), lambda n, c: (n, 0, 0, 0)),
        scratch_shapes=[
            pltpu.VMEM((CIN_SA, HW), jnp.float32),                      # [sum, max]
            pltpu.VMEM((CIN_SA, H + 2 * PAD, W + 2 * PAD), jnp.float32),  # padded
        ],
        compiler_params=pltpu.CompilerParams(
            dimension_semantics=("parallel", "arbitrary"),
            vmem_limit_bytes=vmem_limit),
    )(w_flat, b, x_flat)


# -----------------------------------------------------------------------------
# Pure-JAX reference (verification only)
# -----------------------------------------------------------------------------
def spatial_attention_ref(x, weight, bias):
    x_avg = jnp.mean(x, axis=1, keepdims=True)
    x_max = jnp.max(x, axis=1, keepdims=True)
    x2 = jnp.concatenate([x_avg, x_max], axis=1)
    x2p = jnp.pad(x2, ((0, 0), (0, 0), (PAD, PAD), (PAD, PAD)), mode="reflect")
    out = lax.conv_general_dilated(
        x2p, weight, window_strides=(1, 1), padding="VALID",
        dimension_numbers=("NCHW", "OIHW", "NCHW"))
    return out + bias.reshape(1, 1, 1, 1)


if __name__ == "__main__":
    key = jax.random.PRNGKey(0)
    kx, kw, kb, kx2 = jax.random.split(key, 4)

    # Deterministic parameter init (Conv2d(2, 1, 7, bias=True) shapes).
    fan_in = CIN_SA * KSIZE * KSIZE
    bound = float(fan_in) ** -0.5
    weight = jax.random.uniform(kw, (1, CIN_SA, KSIZE, KSIZE),
                                minval=-bound, maxval=bound, dtype=jnp.float32)
    bias = jax.random.uniform(kb, (1,), minval=-bound, maxval=bound,
                              dtype=jnp.float32)

    # --- main small case (single C chunk) ---------------------------------
    N, C, H, W = 2, 4, 16, 16
    x = jax.random.normal(kx, (N, C, H, W), dtype=jnp.float32)
    ref = spatial_attention_ref(x, weight, bias)
    out = jax.block_until_ready(spatial_attention(x, weight, bias))
    assert out.shape == (N, 1, H, W), out.shape
    assert jnp.allclose(out, ref, atol=1e-4, rtol=1e-5), \
        float(jnp.max(jnp.abs(out - ref)))

    # --- multi-chunk + ragged-C path: C=20 with c_chunk=8 -> 3 chunks,
    #     last chunk has only 4 valid channels (exercises the masked strip). --
    N2, C2, H2, W2 = 1, 20, 12, 20
    x2 = jax.random.normal(kx2, (N2, C2, H2, W2), dtype=jnp.float32)
    ref2 = spatial_attention_ref(x2, weight, bias)
    out2 = jax.block_until_ready(spatial_attention(x2, weight, bias, c_chunk=8))
    assert out2.shape == (N2, 1, H2, W2), out2.shape
    assert jnp.allclose(out2, ref2, atol=1e-4, rtol=1e-5), \
        float(jnp.max(jnp.abs(out2 - ref2)))

    print("KERNEL_OK")
</pallas_src>

<mosaic_0001>
module attributes {stable_mosaic.version = 11 : i64} {
  func.func @kernel(%arg0: i32, %arg1: i32, %arg2: memref<98xf32, #tpu.memory_space<smem>>, %arg3: memref<1xf32, #tpu.memory_space<smem>>, %arg4: memref<1x4x256xf32, #tpu.memory_space<vmem>>, %arg5: memref<1x1x16x16xf32, #tpu.memory_space<vmem>>, %arg6: memref<2x256xf32, #tpu.memory_space<vmem>>, %arg7: memref<2x22x22xf32, #tpu.memory_space<vmem>>) attributes {dimension_semantics = [#tpu.dimension_semantics<parallel>, #tpu.dimension_semantics<arbitrary>], iteration_bounds = array<i64: 2, 1>, scalar_prefetch = 0 : i64, scratch_operands = 2 : i64, tpu.core_type = #tpu.core_type<tc>, window_params = [{transform_indices = @transform_0, window_bounds = array<i64: 98>}, {transform_indices = @transform_1, window_bounds = array<i64: 1>}, {transform_indices = @transform_2, window_bounds = array<i64: 1, 4, 256>}, {transform_indices = @transform_3, window_bounds = array<i64: 1, 1, 16, 16>}]} {
    %c0_i32 = arith.constant 0 : i32
    %0 = arith.cmpi eq, %arg1, %c0_i32 : i32
    %1 = arith.extui %0 : i1 to i32
    %c0_i32_0 = arith.constant 0 : i32
    %2 = arith.cmpi ne, %1, %c0_i32_0 : i32
    scf.if %2 {
      %cst_13 = arith.constant 0.000000e+00 : f32
      %18 = vector.broadcast %cst_13 : f32 to vector<1x256xf32>
      %c0_14 = arith.constant 0 : index
      %c0_15 = arith.constant 0 : index
      %19 = vector.load %arg6[%c0_14, %c0_15] : memref<2x256xf32, #tpu.memory_space<vmem>>, vector<1x256xf32>
      tpu.vector_store %arg6[%c0_14, %c0_15], %18 {strides = array<i32>} : memref<2x256xf32, #tpu.memory_space<vmem>>, vector<1x256xf32>,
      %cst_16 = arith.constant 0xFF800000 : f32
      %20 = vector.broadcast %cst_16 : f32 to vector<1x256xf32>
      %c1_17 = arith.constant 1 : index
      %c0_18 = arith.constant 0 : index
      %21 = vector.load %arg6[%c1_17, %c0_18] : memref<2x256xf32, #tpu.memory_space<vmem>>, vector<1x256xf32>
      tpu.vector_store %arg6[%c1_17, %c0_18], %20 {strides = array<i32>} : memref<2x256xf32, #tpu.memory_space<vmem>>, vector<1x256xf32>,
    } else {
    }
    %c0 = arith.constant 0 : index
    %c0_1 = arith.constant 0 : index
    %c0_2 = arith.constant 0 : index
    %3 = vector.load %arg4[%c0, %c0_1, %c0_2] : memref<1x4x256xf32, #tpu.memory_space<vmem>>, vector<1x4x256xf32>
    %4 = vector.shape_cast %3 : vector<1x4x256xf32> to vector<4x256xf32>
    %c0_3 = arith.constant 0 : index
    %c0_4 = arith.constant 0 : index
    %5 = vector.load %arg6[%c0_3, %c0_4] : memref<2x256xf32, #tpu.memory_space<vmem>>, vector<1x256xf32>
    %cst = arith.constant dense<0.000000e+00> : vector<256xf32>
    %6 = vector.multi_reduction <add>, %4, %cst [0] : vector<4x256xf32> to vector<256xf32>
    %7 = vector.shape_cast %6 : vector<256xf32> to vector<1x256xf32>
    %8 = arith.addf %5, %7 : vector<1x256xf32>
    %c0_5 = arith.constant 0 : index
    %c0_6 = arith.constant 0 : index
    %9 = vector.load %arg6[%c0_5, %c0_6] : memref<2x256xf32, #tpu.memory_space<vmem>>, vector<1x256xf32>
    tpu.vector_store %arg6[%c0_5, %c0_6], %8 {strides = array<i32>} : memref<2x256xf32, #tpu.memory_space<vmem>>, vector<1x256xf32>,
    %c1 = arith.constant 1 : index
    %c0_7 = arith.constant 0 : index
    %10 = vector.load %arg6[%c1, %c0_7] : memref<2x256xf32, #tpu.memory_space<vmem>>, vector<1x256xf32>
    %cst_8 = arith.constant dense<0xFF800000> : vector<256xf32>
    %11 = vector.multi_reduction <maximumf>, %4, %cst_8 [0] : vector<4x256xf32> to vector<256xf32>
    %12 = vector.shape_cast %11 : vector<256xf32> to vector<1x256xf32>
    %13 = arith.maximumf %10, %12 : vector<1x256xf32>
    %c1_9 = arith.constant 1 : index
    %c0_10 = arith.constant 0 : index
    %14 = vector.load %arg6[%c1_9, %c0_10] : memref<2x256xf32, #tpu.memory_space<vmem>>, vector<1x256xf32>
    tpu.vector_store %arg6[%c1_9, %c0_10], %13 {strides = array<i32>} : memref<2x256xf32, #tpu.memory_space<vmem>>, vector<1x256xf32>,
    %c0_i32_11 = arith.constant 0 : i32
    %15 = arith.cmpi eq, %arg1, %c0_i32_11 : i32
    %16 = arith.extui %15 : i1 to i32
    %c0_i32_12 = arith.constant 0 : i32
    %17 = arith.cmpi ne, %16, %c0_i32_12 : i32
    scf.if %17 {
      %c0_13 = arith.constant 0 : index
      %c0_14 = arith.constant 0 : index
      %18 = vector.load %arg6[%c0_13, %c0_14] : memref<2x256xf32, #tpu.memory_space<vmem>>, vector<1x16xf32>
      %c0_15 = arith.constant 0 : index
      %c3 = arith.constant 3 : index
      %c3_16 = arith.constant 3 : index
      %19 = vector.load %arg7[%c0_15, %c3, %c3_16] : memref<2x22x22xf32, #tpu.memory_space<vmem>>, vector<1x1x16xf32>
      %20 = vector.shape_cast %19 : vector<1x1x16xf32> to vector<1x16xf32>
      %21 = vector.shape_cast %18 : vector<1x16xf32> to vector<1x1x16xf32>
      tpu.vector_store %arg7[%c0_15, %c3, %c3_16], %21 {strides = array<i32>} : memref<2x22x22xf32, #tpu.memory_space<vmem>>, vector<1x1x16xf32>,
      %c0_17 = arith.constant 0 : index
      %c16 = arith.constant 16 : index
      %22 = vector.load %arg6[%c0_17, %c16] : memref<2x256xf32, #tpu.memory_space<vmem>>, vector<1x16xf32>
      %c0_18 = arith.constant 0 : index
      %c4 = arith.constant 4 : index
      %c3_19 = arith.constant 3 : index
      %23 = vector.load %arg7[%c0_18, %c4, %c3_19] : memref<2x22x22xf32, #tpu.memory_space<vmem>>, vector<1x1x16xf32>
      %24 = vector.shape_cast %23 : vector<1x1x16xf32> to vector<1x16xf32>
      %25 = vector.shape_cast %22 : vector<1x16xf32> to vector<1x1x16xf32>
      tpu.vector_store %arg7[%c0_18, %c4, %c3_19], %25 {strides = array<i32>} : memref<2x22x22xf32, #tpu.memory_space<vmem>>, vector<1x1x16xf32>,
      %c0_20 = arith.constant 0 : index
      %c32 = arith.constant 32 : index
      %26 = vector.load %arg6[%c0_20, %c32] : memref<2x256xf32, #tpu.memory_space<vmem>>, vector<1x16xf32>
      %c0_21 = arith.constant 0 : index
      %c5 = arith.constant 5 : index
      %c3_22 = arith.constant 3 : index
      %27 = vector.load %arg7[%c0_21, %c5, %c3_22] : memref<2x22x22xf32, #tpu.memory_space<vmem>>, vector<1x1x16xf32>
      %28 = vector.shape_cast %27 : vector<1x1x16xf32> to vector<1x16xf32>
      %29 = vector.shape_cast %26 : vector<1x16xf32> to vector<1x1x16xf32>
      tpu.vector_store %arg7[%c0_21, %c5, %c3_22], %29 {strides = array<i32>} : memref<2x22x22xf32, #tpu.memory_space<vmem>>, vector<1x1x16xf32>,
      %c0_23 = arith.constant 0 : index
      %c48 = arith.constant 48 : index
      %30 = vector.load %arg6[%c0_23, %c48] : memref<2x256xf32, #tpu.memory_space<vmem>>, vector<1x16xf32>
      %c0_24 = arith.constant 0 : index
      %c6 = arith.constant 6 : index
      %c3_25 = arith.constant 3 : index
      %31 = vector.load %arg7[%c0_24, %c6, %c3_25] : memref<2x22x22xf32, #tpu.memory_space<vmem>>, vector<1x1x16xf32>
      %32 = vector.shape_cast %31 : vector<1x1x16xf32> to vector<1x16xf32>
      %33 = vector.shape_cast %30 : vector<1x16xf32> to vector<1x1x16xf32>
      tpu.vector_store %arg7[%c0_24, %c6, %c3_25], %33 {strides = array<i32>} : memref<2x22x22xf32, #tpu.memory_space<vmem>>, vector<1x1x16xf32>,
      %c0_26 = arith.constant 0 : index
      %c64 = arith.constant 64 : index
      %34 = vector.load %arg6[%c0_26, %c64] : memref<2x256xf32, #tpu.memory_space<vmem>>, vector<1x16xf32>
      %c0_27 = arith.constant 0 : index
      %c7 = arith.constant 7 : index
      %c3_28 = arith.constant 3 : index
      %35 = vector.load %arg7[%c0_27, %c7, %c3_28] : memref<2x22x22xf32, #tpu.memory_space<vmem>>, vector<1x1x16xf32>
      %36 = vector.shape_cast %35 : vector<1x1x16xf32> to vector<1x16xf32>
      %37 = vector.shape_cast %34 : vector<1x16xf32> to vector<1x1x16xf32>
      tpu.vector_store %arg7[%c0_27, %c7, %c3_28], %37 {strides = array<i32>} : memref<2x22x22xf32, #tpu.memory_space<vmem>>, vector<1x1x16xf32>,
      %c0_29 = arith.constant 0 : index
      %c80 = arith.constant 80 : index
      %38 = vector.load %arg6[%c0_29, %c80] : memref<2x256xf32, #tpu.memory_space<vmem>>, vector<1x16xf32>
      %c0_30 = arith.constant 0 : index
      %c8 = arith.constant 8 : index
      %c3_31 = arith.constant 3 : index
      %39 = vector.load %arg7[%c0_30, %c8, %c3_31] : memref<2x22x22xf32, #tpu.memory_space<vmem>>, vector<1x1x16xf32>
      %40 = vector.shape_cast %39 : vector<1x1x16xf32> to vector<1x16xf32>
      %41 = vector.shape_cast %38 : vector<1x16xf32> to vector<1x1x16xf32>
      tpu.vector_store %arg7[%c0_30, %c8, %c3_31], %41 {strides = array<i32>} : memref<2x22x22xf32, #tpu.memory_space<vmem>>, vector<1x1x16xf32>,
      %c0_32 = arith.constant 0 : index
      %c96 = arith.constant 96 : index
      %42 = vector.load %arg6[%c0_32, %c96] : memref<2x256xf32, #tpu.memory_space<vmem>>, vector<1x16xf32>
      %c0_33 = arith.constant 0 : index
      %c9 = arith.constant 9 : index
      %c3_34 = arith.constant 3 : index
      %43 = vector.load %arg7[%c0_33, %c9, %c3_34] : memref<2x22x22xf32, #tpu.memory_space<vmem>>, vector<1x1x16xf32>
      %44 = vector.shape_cast %43 : vector<1x1x16xf32> to vector<1x16xf32>
      %45 = vector.shape_cast %42 : vector<1x16xf32> to vector<1x1x16xf32>
      tpu.vector_store %arg7[%c0_33, %c9, %c3_34], %45 {strides = array<i32>} : memref<2x22x22xf32, #tpu.memory_space<vmem>>, vector<1x1x16xf32>,
      %c0_35 = arith.constant 0 : index
      %c112 = arith.constant 112 : index
      %46 = vector.load %arg6[%c0_35, %c112] : memref<2x256xf32, #tpu.memory_space<vmem>>, vector<1x16xf32>
      %c0_36 = arith.constant 0 : index
      %c10 = arith.constant 10 : index
      %c3_37 = arith.constant 3 : index
      %47 = vector.load %arg7[%c0_36, %c10, %c3_37] : memref<2x22x22xf32, #tpu.memory_space<vmem>>, vector<1x1x16xf32>
      %48 = vector.shape_cast %47 : vector<1x1x16xf32> to vector<1x16xf32>
      %49 = vector.shape_cast %46 : vector<1x16xf32> to vector<1x1x16xf32>
      tpu.vector_store %arg7[%c0_36, %c10, %c3_37], %49 {strides = array<i32>} : memref<2x22x22xf32, #tpu.memory_space<vmem>>, vector<1x1x16xf32>,
      %c0_38 = arith.constant 0 : index
      %c128 = arith.constant 128 : index
      %50 = vector.load %arg6[%c0_38, %c128] : memref<2x256xf32, #tpu.memory_space<vmem>>, vector<1x16xf32>
      %c0_39 = arith.constant 0 : index
      %c11 = arith.constant 11 : index
      %c3_40 = arith.constant 3 : index
      %51 = vector.load %arg7[%c0_39, %c11, %c3_40] : memref<2x22x22xf32, #tpu.memory_space<vmem>>, vector<1x1x16xf32>
      %52 = vector.shape_cast %51 : vector<1x1x16xf32> to vector<1x16xf32>
      %53 = vector.shape_cast %50 : vector<1x16xf32> to vector<1x1x16xf32>
      tpu.vector_store %arg7[%c0_39, %c11, %c3_40], %53 {strides = array<i32>} : memref<2x22x22xf32, #tpu.memory_space<vmem>>, vector<1x1x16xf32>,
      %c0_41 = arith.constant 0 : index
      %c144 = arith.constant 144 : index
      %54 = vector.load %arg6[%c0_41, %c144] : memref<2x256xf32, #tpu.memory_space<vmem>>, vector<1x16xf32>
      %c0_42 = arith.constant 0 : index
      %c12 = arith.constant 12 : index
      %c3_43 = arith.constant 3 : index
      %55 = vector.load %arg7[%c0_42, %c12, %c3_43] : memref<2x22x22xf32, #tpu.memory_space<vmem>>, vector<1x1x16xf32>
      %56 = vector.shape_cast %55 : vector<1x1x16xf32> to vector<1x16xf32>
      %57 = vector.shape_cast %54 : vector<1x16xf32> to vector<1x1x16xf32>
      tpu.vector_store %arg7[%c0_42, %c12, %c3_43], %57 {strides = array<i32>} : memref<2x22x22xf32, #tpu.memory_space<vmem>>, vector<1x1x16xf32>,
      %c0_44 = arith.constant 0 : index
      %c160 = arith.constant 160 : index
      %58 = vector.load %arg6[%c0_44, %c160] : memref<2x256xf32, #tpu.memory_space<vmem>>, vector<1x16xf32>
      %c0_45 = arith.constant 0 : index
      %c13 = arith.constant 13 : index
      %c3_46 = arith.constant 3 : index
      %59 = vector.load %arg7[%c0_45, %c13, %c3_46] : memref<2x22x22xf32, #tpu.memory_space<vmem>>, vector<1x1x16xf32>
      %60 = vector.shape_cast %59 : vector<1x1x16xf32> to vector<1x16xf32>
      %61 = vector.shape_cast %58 : vector<1x16xf32> to vector<1x1x16xf32>
      tpu.vector_store %arg7[%c0_45, %c13, %c3_46], %61 {strides = array<i32>} : memref<2x22x22xf32, #tpu.memory_space<vmem>>, vector<1x1x16xf32>,
      %c0_47 = arith.constant 0 : index
      %c176 = arith.constant 176 : index
      %62 = vector.load %arg6[%c0_47, %c176] : memref<2x256xf32, #tpu.memory_space<vmem>>, vector<1x16xf32>
      %c0_48 = arith.constant 0 : index
      %c14 = arith.constant 14 : index
      %c3_49 = arith.constant 3 : index
      %63 = vector.load %arg7[%c0_48, %c14, %c3_49] : memref<2x22x22xf32, #tpu.memory_space<vmem>>, vector<1x1x16xf32>
      %64 = vector.shape_cast %63 : vector<1x1x16xf32> to vector<1x16xf32>
      %65 = vector.shape_cast %62 : vector<1x16xf32> to vector<1x1x16xf32>
      tpu.vector_store %arg7[%c0_48, %c14, %c3_49], %65 {strides = array<i32>} : memref<2x22x22xf32, #tpu.memory_space<vmem>>, vector<1x1x16xf32>,
      %c0_50 = arith.constant 0 : index
      %c192 = arith.constant 192 : index
      %66 = vector.load %arg6[%c0_50, %c192] : memref<2x256xf32, #tpu.memory_space<vmem>>, vector<1x16xf32>
      %c0_51 = arith.constant 0 : index
      %c15 = arith.constant 15 : index
      %c3_52 = arith.constant 3 : index
      %67 = vector.load %arg7[%c0_51, %c15, %c3_52] : memref<2x22x22xf32, #tpu.memory_space<vmem>>, vector<1x1x16xf32>
      %68 = vector.shape_cast %67 : vector<1x1x16xf32> to vector<1x16xf32>
      %69 = vector.shape_cast %66 : vector<1x16xf32> to vector<1x1x16xf32>
      tpu.vector_store %arg7[%c0_51, %c15, %c3_52], %69 {strides = array<i32>} : memref<2x22x22xf32, #tpu.memory_space<vmem>>, vector<1x1x16xf32>,
      %c0_53 = arith.constant 0 : index
      %c208 = arith.constant 208 : index
      %70 = vector.load %arg6[%c0_53, %c208] : memref<2x256xf32, #tpu.memory_space<vmem>>, vector<1x16xf32>
      %c0_54 = arith.constant 0 : index
      %c16_55 = arith.constant 16 : index
      %c3_56 = arith.constant 3 : index
      %71 = vector.load %arg7[%c0_54, %c16_55, %c3_56] : memref<2x22x22xf32, #tpu.memory_space<vmem>>, vector<1x1x16xf32>
      %72 = vector.shape_cast %71 : vector<1x1x16xf32> to vector<1x16xf32>
      %73 = vector.shape_cast %70 : vector<1x16xf32> to vector<1x1x16xf32>
      tpu.vector_store %arg7[%c0_54, %c16_55, %c3_56], %73 {strides = array<i32>} : memref<2x22x22xf32, #tpu.memory_space<vmem>>, vector<1x1x16xf32>,
      %c0_57 = arith.constant 0 : index
      %c224 = arith.constant 224 : index
      %74 = vector.load %arg6[%c0_57, %c224] : memref<2x256xf32, #tpu.memory_space<vmem>>, vector<1x16xf32>
      %c0_58 = arith.constant 0 : index
      %c17 = arith.constant 17 : index
      %c3_59 = arith.constant 3 : index
      %75 = vector.load %arg7[%c0_58, %c17, %c3_59] : memref<2x22x22xf32, #tpu.memory_space<vmem>>, vector<1x1x16xf32>
      %76 = vector.shape_cast %75 : vector<1x1x16xf32> to vector<1x16xf32>
      %77 = vector.shape_cast %74 : vector<1x16xf32> to vector<1x1x16xf32>
      tpu.vector_store %arg7[%c0_58, %c17, %c3_59], %77 {strides = array<i32>} : memref<2x22x22xf32, #tpu.memory_space<vmem>>, vector<1x1x16xf32>,
      %c0_60 = arith.constant 0 : index
      %c240 = arith.constant 240 : index
      %78 = vector.load %arg6[%c0_60, %c240] : memref<2x256xf32, #tpu.memory_space<vmem>>, vector<1x16xf32>
      %c0_61 = arith.constant 0 : index
      %c18 = arith.constant 18 : index
      %c3_62 = arith.constant 3 : index
      %79 = vector.load %arg7[%c0_61, %c18, %c3_62] : memref<2x22x22xf32, #tpu.memory_space<vmem>>, vector<1x1x16xf32>
      %80 = vector.shape_cast %79 : vector<1x1x16xf32> to vector<1x16xf32>
      %81 = vector.shape_cast %78 : vector<1x16xf32> to vector<1x1x16xf32>
      tpu.vector_store %arg7[%c0_61, %c18, %c3_62], %81 {strides = array<i32>} : memref<2x22x22xf32, #tpu.memory_space<vmem>>, vector<1x1x16xf32>,
      %c1_63 = arith.constant 1 : index
      %c0_64 = arith.constant 0 : index
      %82 = vector.load %arg6[%c1_63, %c0_64] : memref<2x256xf32, #tpu.memory_space<vmem>>, vector<1x16xf32>
      %c1_65 = arith.constant 1 : index
      %c3_66 = arith.constant 3 : index
      %c3_67 = arith.constant 3 : index
      %83 = vector.load %arg7[%c1_65, %c3_66, %c3_67] : memref<2x22x22xf32, #tpu.memory_space<vmem>>, vector<1x1x16xf32>
      %84 = vector.shape_cast %83 : vector<1x1x16xf32> to vector<1x16xf32>
      %85 = vector.shape_cast %82 : vector<1x16xf32> to vector<1x1x16xf32>
      tpu.vector_store %arg7[%c1_65, %c3_66, %c3_67], %85 {strides = array<i32>} : memref<2x22x22xf32, #tpu.memory_space<vmem>>, vector<1x1x16xf32>,
      %c1_68 = arith.constant 1 : index
      %c16_69 = arith.constant 16 : index
      %86 = vector.load %arg6[%c1_68, %c16_69] : memref<2x256xf32, #tpu.memory_space<vmem>>, vector<1x16xf32>
      %c1_70 = arith.constant 1 : index
      %c4_71 = arith.constant 4 : index
      %c3_72 = arith.constant 3 : index
      %87 = vector.load %arg7[%c1_70, %c4_71, %c3_72] : memref<2x22x22xf32, #tpu.memory_space<vmem>>, vector<1x1x16xf32>
      %88 = vector.shape_cast %87 : vector<1x1x16xf32> to vector<1x16xf32>
      %89 = vector.shape_cast %86 : vector<1x16xf32> to vector<1x1x16xf32>
      tpu.vector_store %arg7[%c1_70, %c4_71, %c3_72], %89 {strides = array<i32>} : memref<2x22x22xf32, #tpu.memory_space<vmem>>, vector<1x1x16xf32>,
      %c1_73 = arith.constant 1 : index
      %c32_74 = arith.constant 32 : index
      %90 = vector.load %arg6[%c1_73, %c32_74] : memref<2x256xf32, #tpu.memory_space<vmem>>, vector<1x16xf32>
      %c1_75 = arith.constant 1 : index
      %c5_76 = arith.constant 5 : index
      %c3_77 = arith.constant 3 : index
      %91 = vector.load %arg7[%c1_75, %c5_76, %c3_77] : memref<2x22x22xf32, #tpu.memory_space<vmem>>, vector<1x1x16xf32>
      %92 = vector.shape_cast %91 : vector<1x1x16xf32> to vector<1x16xf32>
      %93 = vector.shape_cast %90 : vector<1x16xf32> to vector<1x1x16xf32>
      tpu.vector_store %arg7[%c1_75, %c5_76, %c3_77], %93 {strides = array<i32>} : memref<2x22x22xf32, #tpu.memory_space<vmem>>, vector<1x1x16xf32>,
      %c1_78 = arith.constant 1 : index
      %c48_79 = arith.constant 48 : index
      %94 = vector.load %arg6[%c1_78, %c48_79] : memref<2x256xf32, #tpu.memory_space<vmem>>, vector<1x16xf32>
      %c1_80 = arith.constant 1 : index
      %c6_81 = arith.constant 6 : index
      %c3_82 = arith.constant 3 : index
      %95 = vector.load %arg7[%c1_80, %c6_81, %c3_82] : memref<2x22x22xf32, #tpu.memory_space<vmem>>, vector<1x1x16xf32>
      %96 = vector.shape_cast %95 : vector<1x1x16xf32> to vector<1x16xf32>
      %97 = vector.shape_cast %94 : vector<1x16xf32> to vector<1x1x16xf32>
      tpu.vector_store %arg7[%c1_80, %c6_81, %c3_82], %97 {strides = array<i32>} : memref<2x22x22xf32, #tpu.memory_space<vmem>>, vector<1x1x16xf32>,
      %c1_83 = arith.constant 1 : index
      %c64_84 = arith.constant 64 : index
      %98 = vector.load %arg6[%c1_83, %c64_84] : memref<2x256xf32, #tpu.memory_space<vmem>>, vector<1x16xf32>
      %c1_85 = arith.constant 1 : index
      %c7_86 = arith.constant 7 : index
      %c3_87 = arith.constant 3 : index
      %99 = vector.load %arg7[%c1_85, %c7_86, %c3_87] : memref<2x22x22xf32, #tpu.memory_space<vmem>>, vector<1x1x16xf32>
      %100 = vector.shape_cast %99 : vector<1x1x16xf32> to vector<1x16xf32>
      %101 = vector.shape_cast %98 : vector<1x16xf32> to vector<1x1x16xf32>
      tpu.vector_store %arg7[%c1_85, %c7_86, %c3_87], %101 {strides = array<i32>} : memref<2x22x22xf32, #tpu.memory_space<vmem>>, vector<1x1x16xf32>,
      %c1_88 = arith.constant 1 : index
      %c80_89 = arith.constant 80 : index
      %102 = vector.load %arg6[%c1_88, %c80_89] : memref<2x256xf32, #tpu.memory_space<vmem>>, vector<1x16xf32>
      %c1_90 = arith.constant 1 : index
      %c8_91 = arith.constant 8 : index
      %c3_92 = arith.constant 3 : index
      %103 = vector.load %arg7[%c1_90, %c8_91, %c3_92] : memref<2x22x22xf32, #tpu.memory_space<vmem>>, vector<1x1x16xf32>
      %104 = vector.shape_cast %103 : vector<1x1x16xf32> to vector<1x16xf32>
      %105 = vector.shape_cast %102 : vector<1x16xf32> to vector<1x1x16xf32>
      tpu.vector_store %arg7[%c1_90, %c8_91, %c3_92], %105 {strides = array<i32>} : memref<2x22x22xf32, #tpu.memory_space<vmem>>, vector<1x1x16xf32>,
      %c1_93 = arith.constant 1 : index
      %c96_94 = arith.constant 96 : index
      %106 = vector.load %arg6[%c1_93, %c96_94] : memref<2x256xf32, #tpu.memory_space<vmem>>, vector<1x16xf32>
      %c1_95 = arith.constant 1 : index
      %c9_96 = arith.constant 9 : index
      %c3_97 = arith.constant 3 : index
      %107 = vector.load %arg7[%c1_95, %c9_96, %c3_97] : memref<2x22x22xf32, #tpu.memory_space<vmem>>, vector<1x1x16xf32>
      %108 = vector.shape_cast %107 : vector<1x1x16xf32> to vector<1x16xf32>
      %109 = vector.shape_cast %106 : vector<1x16xf32> to vector<1x1x16xf32>
      tpu.vector_store %arg7[%c1_95, %c9_96, %c3_97], %109 {strides = array<i32>} : memref<2x22x22xf32, #tpu.memory_space<vmem>>, vector<1x1x16xf32>,
      %c1_98 = arith.constant 1 : index
      %c112_99 = arith.constant 112 : index
      %110 = vector.load %arg6[%c1_98, %c112_99] : memref<2x256xf32, #tpu.memory_space<vmem>>, vector<1x16xf32>
      %c1_100 = arith.constant 1 : index
      %c10_101 = arith.constant 10 : index
      %c3_102 = arith.constant 3 : index
      %111 = vector.load %arg7[%c1_100, %c10_101, %c3_102] : memref<2x22x22xf32, #tpu.memory_space<vmem>>, vector<1x1x16xf32>
      %112 = vector.shape_cast %111 : vector<1x1x16xf32> to vector<1x16xf32>
      %113 = vector.shape_cast %110 : vector<1x16xf32> to vector<1x1x16xf32>
      tpu.vector_store %arg7[%c1_100, %c10_101, %c3_102], %113 {strides = array<i32>} : memref<2x22x22xf32, #tpu.memory_space<vmem>>, vector<1x1x16xf32>,
      %c1_103 = arith.constant 1 : index
      %c128_104 = arith.constant 128 : index
      %114 = vector.load %arg6[%c1_103, %c128_104] : memref<2x256xf32, #tpu.memory_space<vmem>>, vector<1x16xf32>
      %c1_105 = arith.constant 1 : index
      %c11_106 = arith.constant 11 : index
      %c3_107 = arith.constant 3 : index
      %115 = vector.load %arg7[%c1_105, %c11_106, %c3_107] : memref<2x22x22xf32, #tpu.memory_space<vmem>>, vector<1x1x16xf32>
      %116 = vector.shape_cast %115 : vector<1x1x16xf32> to vector<1x16xf32>
      %117 = vector.shape_cast %114 : vector<1x16xf32> to vector<1x1x16xf32>
      tpu.vector_store %arg7[%c1_105, %c11_106, %c3_107], %117 {strides = array<i32>} : memref<2x22x22xf32, #tpu.memory_space<vmem>>, vector<1x1x16xf32>,
      %c1_108 = arith.constant 1 : index
      %c144_109 = arith.constant 144 : index
      %118 = vector.load %arg6[%c1_108, %c144_109] : memref<2x256xf32, #tpu.memory_space<vmem>>, vector<1x16xf32>
      %c1_110 = arith.constant 1 : index
      %c12_111 = arith.constant 12 : index
      %c3_112 = arith.constant 3 : index
      %119 = vector.load %arg7[%c1_110, %c12_111, %c3_112] : memref<2x22x22xf32, #tpu.memory_space<vmem>>, vector<1x1x16xf32>
      %120 = vector.shape_cast %119 : vector<1x1x16xf32> to vector<1x16xf32>
      %121 = vector.shape_cast %118 : vector<1x16xf32> to vector<1x1x16xf32>
      tpu.vector_store %arg7[%c1_110, %c12_111, %c3_112], %121 {strides = array<i32>} : memref<2x22x22xf32, #tpu.memory_space<vmem>>, vector<1x1x16xf32>,
      %c1_113 = arith.constant 1 : index
      %c160_114 = arith.constant 160 : index
      %122 = vector.load %arg6[%c1_113, %c160_114] : memref<2x256xf32, #tpu.memory_space<vmem>>, vector<1x16xf32>
      %c1_115 = arith.constant 1 : index
      %c13_116 = arith.constant 13 : index
      %c3_117 = arith.constant 3 : index
      %123 = vector.load %arg7[%c1_115, %c13_116, %c3_117] : memref<2x22x22xf32, #tpu.memory_space<vmem>>, vector<1x1x16xf32>
      %124 = vector.shape_cast %123 : vector<1x1x16xf32> to vector<1x16xf32>
      %125 = vector.shape_cast %122 : vector<1x16xf32> to vector<1x1x16xf32>
      tpu.vector_store %arg7[%c1_115, %c13_116, %c3_117], %125 {strides = array<i32>} : memref<2x22x22xf32, #tpu.memory_space<vmem>>, vector<1x1x16xf32>,
      %c1_118 = arith.constant 1 : index
      %c176_119 = arith.constant 176 : index
      %126 = vector.load %arg6[%c1_118, %c176_119] : memref<2x256xf32, #tpu.memory_space<vmem>>, vector<1x16xf32>
      %c1_120 = arith.constant 1 : index
      %c14_121 = arith.constant 14 : index
      %c3_122 = arith.constant 3 : index
      %127 = vector.load %arg7[%c1_120, %c14_121, %c3_122] : memref<2x22x22xf32, #tpu.memory_space<vmem>>, vector<1x1x16xf32>
      %128 = vector.shape_cast %127 : vector<1x1x16xf32> to vector<1x16xf32>
      %129 = vector.shape_cast %126 : vector<1x16xf32> to vector<1x1x16xf32>
      tpu.vector_store %arg7[%c1_120, %c14_121, %c3_122], %129 {strides = array<i32>} : memref<2x22x22xf32, #tpu.memory_space<vmem>>, vector<1x1x16xf32>,
      %c1_123 = arith.constant 1 : index
      %c192_124 = arith.constant 192 : index
      %130 = vector.load %arg6[%c1_123, %c192_124] : memref<2x256xf32, #tpu.memory_space<vmem>>, vector<1x16xf32>
      %c1_125 = arith.constant 1 : index
      %c15_126 = arith.constant 15 : index
      %c3_127 = arith.constant 3 : index
      %131 = vector.load %arg7[%c1_125, %c15_126, %c3_127] : memref<2x22x22xf32, #tpu.memory_space<vmem>>, vector<1x1x16xf32>
      %132 = vector.shape_cast %131 : vector<1x1x16xf32> to vector<1x16xf32>
      %133 = vector.shape_cast %130 : vector<1x16xf32> to vector<1x1x16xf32>
      tpu.vector_store %arg7[%c1_125, %c15_126, %c3_127], %133 {strides = array<i32>} : memref<2x22x22xf32, #tpu.memory_space<vmem>>, vector<1x1x16xf32>,
      %c1_128 = arith.constant 1 : index
      %c208_129 = arith.constant 208 : index
      %134 = vector.load %arg6[%c1_128, %c208_129] : memref<2x256xf32, #tpu.memory_space<vmem>>, vector<1x16xf32>
      %c1_130 = arith.constant 1 : index
      %c16_131 = arith.constant 16 : index
      %c3_132 = arith.constant 3 : index
      %135 = vector.load %arg7[%c1_130, %c16_131, %c3_132] : memref<2x22x22xf32, #tpu.memory_space<vmem>>, vector<1x1x16xf32>
      %136 = vector.shape_cast %135 : vector<1x1x16xf32> to vector<1x16xf32>
      %137 = vector.shape_cast %134 : vector<1x16xf32> to vector<1x1x16xf32>
      tpu.vector_store %arg7[%c1_130, %c16_131, %c3_132], %137 {strides = array<i32>} : memref<2x22x22xf32, #tpu.memory_space<vmem>>, vector<1x1x16xf32>,
      %c1_133 = arith.constant 1 : index
      %c224_134 = arith.constant 224 : index
      %138 = vector.load %arg6[%c1_133, %c224_134] : memref<2x256xf32, #tpu.memory_space<vmem>>, vector<1x16xf32>
      %c1_135 = arith.constant 1 : index
      %c17_136 = arith.constant 17 : index
      %c3_137 = arith.constant 3 : index
      %139 = vector.load %arg7[%c1_135, %c17_136, %c3_137] : memref<2x22x22xf32, #tpu.memory_space<vmem>>, vector<1x1x16xf32>
      %140 = vector.shape_cast %139 : vector<1x1x16xf32> to vector<1x16xf32>
      %141 = vector.shape_cast %138 : vector<1x16xf32> to vector<1x1x16xf32>
      tpu.vector_store %arg7[%c1_135, %c17_136, %c3_137], %141 {strides = array<i32>} : memref<2x22x22xf32, #tpu.memory_space<vmem>>, vector<1x1x16xf32>,
      %c1_138 = arith.constant 1 : index
      %c240_139 = arith.constant 240 : index
      %142 = vector.load %arg6[%c1_138, %c240_139] : memref<2x256xf32, #tpu.memory_space<vmem>>, vector<1x16xf32>
      %c1_140 = arith.constant 1 : index
      %c18_141 = arith.constant 18 : index
      %c3_142 = arith.constant 3 : index
      %143 = vector.load %arg7[%c1_140, %c18_141, %c3_142] : memref<2x22x22xf32, #tpu.memory_space<vmem>>, vector<1x1x16xf32>
      %144 = vector.shape_cast %143 : vector<1x1x16xf32> to vector<1x16xf32>
      %145 = vector.shape_cast %142 : vector<1x16xf32> to vector<1x1x16xf32>
      tpu.vector_store %arg7[%c1_140, %c18_141, %c3_142], %145 {strides = array<i32>} : memref<2x22x22xf32, #tpu.memory_space<vmem>>, vector<1x1x16xf32>,
      %c0_143 = arith.constant 0 : index
      %c6_144 = arith.constant 6 : index
      %c3_145 = arith.constant 3 : index
      %146 = vector.load %arg7[%c0_143, %c6_144, %c3_145] : memref<2x22x22xf32, #tpu.memory_space<vmem>>, vector<2x1x16xf32>
      %c0_146 = arith.constant 0 : index
      %c0_147 = arith.constant 0 : index
      %c3_148 = arith.constant 3 : index
      %147 = vector.load %arg7[%c0_146, %c0_147, %c3_148] : memref<2x22x22xf32, #tpu.memory_space<vmem>>, vector<2x1x16xf32>
      tpu.vector_store %arg7[%c0_146, %c0_147, %c3_148], %146 {strides = array<i32>} : memref<2x22x22xf32, #tpu.memory_space<vmem>>, vector<2x1x16xf32>,
      %c0_149 = arith.constant 0 : index
      %c17_150 = arith.constant 17 : index
      %c3_151 = arith.constant 3 : index
      %148 = vector.load %arg7[%c0_149, %c17_150, %c3_151] : memref<2x22x22xf32, #tpu.memory_space<vmem>>, vector<2x1x16xf32>
      %c0_152 = arith.constant 0 : index
      %c19 = arith.constant 19 : index
      %c3_153 = arith.constant 3 : index
      %149 = vector.load %arg7[%c0_152, %c19, %c3_153] : memref<2x22x22xf32, #tpu.memory_space<vmem>>, vector<2x1x16xf32>
      tpu.vector_store %arg7[%c0_152, %c19, %c3_153], %148 {strides = array<i32>} : memref<2x22x22xf32, #tpu.memory_space<vmem>>, vector<2x1x16xf32>,
      %c0_154 = arith.constant 0 : index
      %c5_155 = arith.constant 5 : index
      %c3_156 = arith.constant 3 : index
      %150 = vector.load %arg7[%c0_154, %c5_155, %c3_156] : memref<2x22x22xf32, #tpu.memory_space<vmem>>, vector<2x1x16xf32>
      %c0_157 = arith.constant 0 : index
      %c1_158 = arith.constant 1 : index
      %c3_159 = arith.constant 3 : index
      %151 = vector.load %arg7[%c0_157, %c1_158, %c3_159] : memref<2x22x22xf32, #tpu.memory_space<vmem>>, vector<2x1x16xf32>
      tpu.vector_store %arg7[%c0_157, %c1_158, %c3_159], %150 {strides = array<i32>} : memref<2x22x22xf32, #tpu.memory_space<vmem>>, vector<2x1x16xf32>,
      %c0_160 = arith.constant 0 : index
      %c16_161 = arith.constant 16 : index
      %c3_162 = arith.constant 3 : index
      %152 = vector.load %arg7[%c0_160, %c16_161, %c3_162] : memref<2x22x22xf32, #tpu.memory_space<vmem>>, vector<2x1x16xf32>
      %c0_163 = arith.constant 0 : index
      %c20 = arith.constant 20 : index
      %c3_164 = arith.constant 3 : index
      %153 = vector.load %arg7[%c0_163, %c20, %c3_164] : memref<2x22x22xf32, #tpu.memory_space<vmem>>, vector<2x1x16xf32>
      tpu.vector_store %arg7[%c0_163, %c20, %c3_164], %152 {strides = array<i32>} : memref<2x22x22xf32, #tpu.memory_space<vmem>>, vector<2x1x16xf32>,
      %c0_165 = arith.constant 0 : index
      %c4_166 = arith.constant 4 : index
      %c3_167 = arith.constant 3 : index
      %154 = vector.load %arg7[%c0_165, %c4_166, %c3_167] : memref<2x22x22xf32, #tpu.memory_space<vmem>>, vector<2x1x16xf32>
      %c0_168 = arith.constant 0 : index
      %c2 = arith.constant 2 : index
      %c3_169 = arith.constant 3 : index
      %155 = vector.load %arg7[%c0_168, %c2, %c3_169] : memref<2x22x22xf32, #tpu.memory_space<vmem>>, vector<2x1x16xf32>
      tpu.vector_store %arg7[%c0_168, %c2, %c3_169], %154 {strides = array<i32>} : memref<2x22x22xf32, #tpu.memory_space<vmem>>, vector<2x1x16xf32>,
      %c0_170 = arith.constant 0 : index
      %c15_171 = arith.constant 15 : index
      %c3_172 = arith.constant 3 : index
      %156 = vector.load %arg7[%c0_170, %c15_171, %c3_172] : memref<2x22x22xf32, #tpu.memory_space<vmem>>, vector<2x1x16xf32>
      %c0_173 = arith.constant 0 : index
      %c21 = arith.constant 21 : index
      %c3_174 = arith.constant 3 : index
      %157 = vector.load %arg7[%c0_173, %c21, %c3_174] : memref<2x22x22xf32, #tpu.memory_space<vmem>>, vector<2x1x16xf32>
      tpu.vector_store %arg7[%c0_173, %c21, %c3_174], %156 {strides = array<i32>} : memref<2x22x22xf32, #tpu.memory_space<vmem>>, vector<2x1x16xf32>,
      %c0_175 = arith.constant 0 : index
      %c0_176 = arith.constant 0 : index
      %c6_177 = arith.constant 6 : index
      %158 = vector.load %arg7[%c0_175, %c0_176, %c6_177] : memref<2x22x22xf32, #tpu.memory_space<vmem>>, vector<2x22x1xf32>
      %c0_178 = arith.constant 0 : index
      %c0_179 = arith.constant 0 : index
      %c0_180 = arith.constant 0 : index
      %159 = vector.load %arg7[%c0_178, %c0_179, %c0_180] : memref<2x22x22xf32, #tpu.memory_space<vmem>>, vector<2x22x1xf32>
      tpu.vector_store %arg7[%c0_178, %c0_179, %c0_180], %158 {strides = array<i32>} : memref<2x22x22xf32, #tpu.memory_space<vmem>>, vector<2x22x1xf32>,
      %c0_181 = arith.constant 0 : index
      %c0_182 = arith.constant 0 : index
      %c17_183 = arith.constant 17 : index
      %160 = vector.load %arg7[%c0_181, %c0_182, %c17_183] : memref<2x22x22xf32, #tpu.memory_space<vmem>>, vector<2x22x1xf32>
      %c0_184 = arith.constant 0 : index
      %c0_185 = arith.constant 0 : index
      %c19_186 = arith.constant 19 : index
      %161 = vector.load %arg7[%c0_184, %c0_185, %c19_186] : memref<2x22x22xf32, #tpu.memory_space<vmem>>, vector<2x22x1xf32>
      tpu.vector_store %arg7[%c0_184, %c0_185, %c19_186], %160 {strides = array<i32>} : memref<2x22x22xf32, #tpu.memory_space<vmem>>, vector<2x22x1xf32>,
      %c0_187 = arith.constant 0 : index
      %c0_188 = arith.constant 0 : index
      %c5_189 = arith.constant 5 : index
      %162 = vector.load %arg7[%c0_187, %c0_188, %c5_189] : memref<2x22x22xf32, #tpu.memory_space<vmem>>, vector<2x22x1xf32>
      %c0_190 = arith.constant 0 : index
      %c0_191 = arith.constant 0 : index
      %c1_192 = arith.constant 1 : index
      %163 = vector.load %arg7[%c0_190, %c0_191, %c1_192] : memref<2x22x22xf32, #tpu.memory_space<vmem>>, vector<2x22x1xf32>
      tpu.vector_store %arg7[%c0_190, %c0_191, %c1_192], %162 {strides = array<i32>} : memref<2x22x22xf32, #tpu.memory_space<vmem>>, vector<2x22x1xf32>,
      %c0_193 = arith.constant 0 : index
      %c0_194 = arith.constant 0 : index
      %c16_195 = arith.constant 16 : index
      %164 = vector.load %arg7[%c0_193, %c0_194, %c16_195] : memref<2x22x22xf32, #tpu.memory_space<vmem>>, vector<2x22x1xf32>
      %c0_196 = arith.constant 0 : index
      %c0_197 = arith.constant 0 : index
      %c20_198 = arith.constant 20 : index
      %165 = vector.load %arg7[%c0_196, %c0_197, %c20_198] : memref<2x22x22xf32, #tpu.memory_space<vmem>>, vector<2x22x1xf32>
      tpu.vector_store %arg7[%c0_196, %c0_197, %c20_198], %164 {strides = array<i32>} : memref<2x22x22xf32, #tpu.memory_space<vmem>>, vector<2x22x1xf32>,
      %c0_199 = arith.constant 0 : index
      %c0_200 = arith.constant 0 : index
      %c4_201 = arith.constant 4 : index
      %166 = vector.load %arg7[%c0_199, %c0_200, %c4_201] : memref<2x22x22xf32, #tpu.memory_space<vmem>>, vector<2x22x1xf32>
      %c0_202 = arith.constant 0 : index
      %c0_203 = arith.constant 0 : index
      %c2_204 = arith.constant 2 : index
      %167 = vector.load %arg7[%c0_202, %c0_203, %c2_204] : memref<2x22x22xf32, #tpu.memory_space<vmem>>, vector<2x22x1xf32>
      tpu.vector_store %arg7[%c0_202, %c0_203, %c2_204], %166 {strides = array<i32>} : memref<2x22x22xf32, #tpu.memory_space<vmem>>, vector<2x22x1xf32>,
      %c0_205 = arith.constant 0 : index
      %c0_206 = arith.constant 0 : index
      %c15_207 = arith.constant 15 : index
      %168 = vector.load %arg7[%c0_205, %c0_206, %c15_207] : memref<2x22x22xf32, #tpu.memory_space<vmem>>, vector<2x22x1xf32>
      %c0_208 = arith.constant 0 : index
      %c0_209 = arith.constant 0 : index
      %c21_210 = arith.constant 21 : index
      %169 = vector.load %arg7[%c0_208, %c0_209, %c21_210] : memref<2x22x22xf32, #tpu.memory_space<vmem>>, vector<2x22x1xf32>
      tpu.vector_store %arg7[%c0_208, %c0_209, %c21_210], %168 {strides = array<i32>} : memref<2x22x22xf32, #tpu.memory_space<vmem>>, vector<2x22x1xf32>,
      %cst_211 = arith.constant 0.000000e+00 : f32
      %170 = vector.broadcast %cst_211 : f32 to vector<16x16xf32>
      %cst_212 = arith.constant 0.000000e+00 : f32
      %171 = vector.broadcast %cst_212 : f32 to vector<16x16xf32>
      %cst_213 = arith.constant 0.000000e+00 : f32
      %172 = vector.broadcast %cst_213 : f32 to vector<16x16xf32>
      %cst_214 = arith.constant 0.000000e+00 : f32
      %173 = vector.broadcast %cst_214 : f32 to vector<16x16xf32>
      %c0_215 = arith.constant 0 : index
      %174 = memref.load %arg2[%c0_215] : memref<98xf32, #tpu.memory_space<smem>>
      %c0_216 = arith.constant 0 : index
      %c0_217 = arith.constant 0 : index
      %c0_218 = arith.constant 0 : index
      %175 = vector.load %arg7[%c0_216, %c0_217, %c0_218] : memref<2x22x22xf32, #tpu.memory_space<vmem>>, vector<1x16x16xf32>
      %176 = vector.shape_cast %175 : vector<1x16x16xf32> to vector<16x16xf32>
      %177 = vector.broadcast %174 : f32 to vector<16x16xf32>
      %178 = arith.mulf %177, %176 : vector<16x16xf32>
      %179 = arith.addf %170, %178 : vector<16x16xf32>
      %c1_219 = arith.constant 1 : index
      %180 = memref.load %arg2[%c1_219] : memref<98xf32, #tpu.memory_space<smem>>
      %c0_220 = arith.constant 0 : index
      %c0_221 = arith.constant 0 : index
      %c1_222 = arith.constant 1 : index
      %181 = vector.load %arg7[%c0_220, %c0_221, %c1_222] : memref<2x22x22xf32, #tpu.memory_space<vmem>>, vector<1x16x16xf32>
      %182 = vector.shape_cast %181 : vector<1x16x16xf32> to vector<16x16xf32>
      %183 = vector.broadcast %180 : f32 to vector<16x16xf32>
      %184 = arith.mulf %183, %182 : vector<16x16xf32>
      %185 = arith.addf %171, %184 : vector<16x16xf32>
      %c2_223 = arith.constant 2 : index
      %186 = memref.load %arg2[%c2_223] : memref<98xf32, #tpu.memory_space<smem>>
      %c0_224 = arith.constant 0 : index
      %c0_225 = arith.constant 0 : index
      %c2_226 = arith.constant 2 : index
      %187 = vector.load %arg7[%c0_224, %c0_225, %c2_226] : memref<2x22x22xf32, #tpu.memory_space<vmem>>, vector<1x16x16xf32>
      %188 = vector.shape_cast %187 : vector<1x16x16xf32> to vector<16x16xf32>
      %189 = vector.broadcast %186 : f32 to vector<16x16xf32>
      %190 = arith.mulf %189, %188 : vector<16x16xf32>
      %191 = arith.addf %172, %190 : vector<16x16xf32>
      %c3_227 = arith.constant 3 : index
      %192 = memref.load %arg2[%c3_227] : memref<98xf32, #tpu.memory_space<smem>>
      %c0_228 = arith.constant 0 : index
      %c0_229 = arith.constant 0 : index
      %c3_230 = arith.constant 3 : index
      %193 = vector.load %arg7[%c0_228, %c0_229, %c3_230] : memref<2x22x22xf32, #tpu.memory_space<vmem>>, vector<1x16x16xf32>
      %194 = vector.shape_cast %193 : vector<1x16x16xf32> to vector<16x16xf32>
      %195 = vector.broadcast %192 : f32 to vector<16x16xf32>
      %196 = arith.mulf %195, %194 : vector<16x16xf32>
      %197 = arith.addf %173, %196 : vector<16x16xf32>
      %c4_231 = arith.constant 4 : index
      %198 = memref.load %arg2[%c4_231] : memref<98xf32, #tpu.memory_space<smem>>
      %c0_232 = arith.constant 0 : index
      %c0_233 = arith.constant 0 : index
      %c4_234 = arith.constant 4 : index
      %199 = vector.load %arg7[%c0_232, %c0_233, %c4_234] : memref<2x22x22xf32, #tpu.memory_space<vmem>>, vector<1x16x16xf32>
      %200 = vector.shape_cast %199 : vector<1x16x16xf32> to vector<16x16xf32>
      %201 = vector.broadcast %198 : f32 to vector<16x16xf32>
      %202 = arith.mulf %201, %200 : vector<16x16xf32>
      %203 = arith.addf %179, %202 : vector<16x16xf32>
      %c5_235 = arith.constant 5 : index
      %204 = memref.load %arg2[%c5_235] : memref<98xf32, #tpu.memory_space<smem>>
      %c0_236 = arith.constant 0 : index
      %c0_237 = arith.constant 0 : index
      %c5_238 = arith.constant 5 : index
      %205 = vector.load %arg7[%c0_236, %c0_237, %c5_238] : memref<2x22x22xf32, #tpu.memory_space<vmem>>, vector<1x16x16xf32>
      %206 = vector.shape_cast %205 : vector<1x16x16xf32> to vector<16x16xf32>
      %207 = vector.broadcast %204 : f32 to vector<16x16xf32>
      %208 = arith.mulf %207, %206 : vector<16x16xf32>
      %209 = arith.addf %185, %208 : vector<16x16xf32>
      %c6_239 = arith.constant 6 : index
      %210 = memref.load %arg2[%c6_239] : memref<98xf32, #tpu.memory_space<smem>>
      %c0_240 = arith.constant 0 : index
      %c0_241 = arith.constant 0 : index
      %c6_242 = arith.constant 6 : index
      %211 = vector.load %arg7[%c0_240, %c0_241, %c6_242] : memref<2x22x22xf32, #tpu.memory_space<vmem>>, vector<1x16x16xf32>
      %212 = vector.shape_cast %211 : vector<1x16x16xf32> to vector<16x16xf32>
      %213 = vector.broadcast %210 : f32 to vector<16x16xf32>
      %214 = arith.mulf %213, %212 : vector<16x16xf32>
      %215 = arith.addf %191, %214 : vector<16x16xf32>
      %c7_243 = arith.constant 7 : index
      %216 = memref.load %arg2[%c7_243] : memref<98xf32, #tpu.memory_space<smem>>
      %c0_244 = arith.constant 0 : index
      %c1_245 = arith.constant 1 : index
      %c0_246 = arith.constant 0 : index
      %217 = vector.load %arg7[%c0_244, %c1_245, %c0_246] : memref<2x22x22xf32, #tpu.memory_space<vmem>>, vector<1x16x16xf32>
      %218 = vector.shape_cast %217 : vector<1x16x16xf32> to vector<16x16xf32>
      %219 = vector.broadcast %216 : f32 to vector<16x16xf32>
      %220 = arith.mulf %219, %218 : vector<16x16xf32>
      %221 = arith.addf %197, %220 : vector<16x16xf32>
      %c8_247 = arith.constant 8 : index
      %222 = memref.load %arg2[%c8_247] : memref<98xf32, #tpu.memory_space<smem>>
      %c0_248 = arith.constant 0 : index
      %c1_249 = arith.constant 1 : index
      %c1_250 = arith.constant 1 : index
      %223 = vector.load %arg7[%c0_248, %c1_249, %c1_250] : memref<2x22x22xf32, #tpu.memory_space<vmem>>, vector<1x16x16xf32>
      %224 = vector.shape_cast %223 : vector<1x16x16xf32> to vector<16x16xf32>
      %225 = vector.broadcast %222 : f32 to vector<16x16xf32>
      %226 = arith.mulf %225, %224 : vector<16x16xf32>
      %227 = arith.addf %203, %226 : vector<16x16xf32>
      %c9_251 = arith.constant 9 : index
      %228 = memref.load %arg2[%c9_251] : memref<98xf32, #tpu.memory_space<smem>>
      %c0_252 = arith.constant 0 : index
      %c1_253 = arith.constant 1 : index
      %c2_254 = arith.constant 2 : index
      %229 = vector.load %arg7[%c0_252, %c1_253, %c2_254] : memref<2x22x22xf32, #tpu.memory_space<vmem>>, vector<1x16x16xf32>
      %230 = vector.shape_cast %229 : vector<1x16x16xf32> to vector<16x16xf32>
      %231 = vector.broadcast %228 : f32 to vector<16x16xf32>
      %232 = arith.mulf %231, %230 : vector<16x16xf32>
      %233 = arith.addf %209, %232 : vector<16x16xf32>
      %c10_255 = arith.constant 10 : index
      %234 = memref.load %arg2[%c10_255] : memref<98xf32, #tpu.memory_space<smem>>
      %c0_256 = arith.constant 0 : index
      %c1_257 = arith.constant 1 : index
      %c3_258 = arith.constant 3 : index
      %235 = vector.load %arg7[%c0_256, %c1_257, %c3_258] : memref<2x22x22xf32, #tpu.memory_space<vmem>>, vector<1x16x16xf32>
      %236 = vector.shape_cast %235 : vector<1x16x16xf32> to vector<16x16xf32>
      %237 = vector.broadcast %234 : f32 to vector<16x16xf32>
      %238 = arith.mulf %237, %236 : vector<16x16xf32>
      %239 = arith.addf %215, %238 : vector<16x16xf32>
      %c11_259 = arith.constant 11 : index
      %240 = memref.load %arg2[%c11_259] : memref<98xf32, #tpu.memory_space<smem>>
      %c0_260 = arith.constant 0 : index
      %c1_261 = arith.constant 1 : index
      %c4_262 = arith.constant 4 : index
      %241 = vector.load %arg7[%c0_260, %c1_261, %c4_262] : memref<2x22x22xf32, #tpu.memory_space<vmem>>, vector<1x16x16xf32>
      %242 = vector.shape_cast %241 : vector<1x16x16xf32> to vector<16x16xf32>
      %243 = vector.broadcast %240 : f32 to vector<16x16xf32>
      %244 = arith.mulf %243, %242 : vector<16x16xf32>
      %245 = arith.addf %221, %244 : vector<16x16xf32>
      %c12_263 = arith.constant 12 : index
      %246 = memref.load %arg2[%c12_263] : memref<98xf32, #tpu.memory_space<smem>>
      %c0_264 = arith.constant 0 : index
      %c1_265 = arith.constant 1 : index
      %c5_266 = arith.constant 5 : index
      %247 = vector.load %arg7[%c0_264, %c1_265, %c5_266] : memref<2x22x22xf32, #tpu.memory_space<vmem>>, vector<1x16x16xf32>
      %248 = vector.shape_cast %247 : vector<1x16x16xf32> to vector<16x16xf32>
      %249 = vector.broadcast %246 : f32 to vector<16x16xf32>
      %250 = arith.mulf %249, %248 : vector<16x16xf32>
      %251 = arith.addf %227, %250 : vector<16x16xf32>
      %c13_267 = arith.constant 13 : index
      %252 = memref.load %arg2[%c13_267] : memref<98xf32, #tpu.memory_space<smem>>
      %c0_268 = arith.constant 0 : index
      %c1_269 = arith.constant 1 : index
      %c6_270 = arith.constant 6 : index
      %253 = vector.load %arg7[%c0_268, %c1_269, %c6_270] : memref<2x22x22xf32, #tpu.memory_space<vmem>>, vector<1x16x16xf32>
      %254 = vector.shape_cast %253 : vector<1x16x16xf32> to vector<16x16xf32>
      %255 = vector.broadcast %252 : f32 to vector<16x16xf32>
      %256 = arith.mulf %255, %254 : vector<16x16xf32>
      %257 = arith.addf %233, %256 : vector<16x16xf32>
      %c14_271 = arith.constant 14 : index
      %258 = memref.load %arg2[%c14_271] : memref<98xf32, #tpu.memory_space<smem>>
      %c0_272 = arith.constant 0 : index
      %c2_273 = arith.constant 2 : index
      %c0_274 = arith.constant 0 : index
      %259 = vector.load %arg7[%c0_272, %c2_273, %c0_274] : memref<2x22x22xf32, #tpu.memory_space<vmem>>, vector<1x16x16xf32>
      %260 = vector.shape_cast %259 : vector<1x16x16xf32> to vector<16x16xf32>
      %261 = vector.broadcast %258 : f32 to vector<16x16xf32>
      %262 = arith.mulf %261, %260 : vector<16x16xf32>
      %263 = arith.addf %239, %262 : vector<16x16xf32>
      %c15_275 = arith.constant 15 : index
      %264 = memref.load %arg2[%c15_275] : memref<98xf32, #tpu.memory_space<smem>>
      %c0_276 = arith.constant 0 : index
      %c2_277 = arith.constant 2 : index
      %c1_278 = arith.constant 1 : index
      %265 = vector.load %arg7[%c0_276, %c2_277, %c1_278] : memref<2x22x22xf32, #tpu.memory_space<vmem>>, vector<1x16x16xf32>
      %266 = vector.shape_cast %265 : vector<1x16x16xf32> to vector<16x16xf32>
      %267 = vector.broadcast %264 : f32 to vector<16x16xf32>
      %268 = arith.mulf %267, %266 : vector<16x16xf32>
      %269 = arith.addf %245, %268 : vector<16x16xf32>
      %c16_279 = arith.constant 16 : index
      %270 = memref.load %arg2[%c16_279] : memref<98xf32, #tpu.memory_space<smem>>
      %c0_280 = arith.constant 0 : index
      %c2_281 = arith.constant 2 : index
      %c2_282 = arith.constant 2 : index
      %271 = vector.load %arg7[%c0_280, %c2_281, %c2_282] : memref<2x22x22xf32, #tpu.memory_space<vmem>>, vector<1x16x16xf32>
      %272 = vector.shape_cast %271 : vector<1x16x16xf32> to vector<16x16xf32>
      %273 = vector.broadcast %270 : f32 to vector<16x16xf32>
      %274 = arith.mulf %273, %272 : vector<16x16xf32>
      %275 = arith.addf %251, %274 : vector<16x16xf32>
      %c17_283 = arith.constant 17 : index
      %276 = memref.load %arg2[%c17_283] : memref<98xf32, #tpu.memory_space<smem>>
      %c0_284 = arith.constant 0 : index
      %c2_285 = arith.constant 2 : index
      %c3_286 = arith.constant 3 : index
      %277 = vector.load %arg7[%c0_284, %c2_285, %c3_286] : memref<2x22x22xf32, #tpu.memory_space<vmem>>, vector<1x16x16xf32>
      %278 = vector.shape_cast %277 : vector<1x16x16xf32> to vector<16x16xf32>
      %279 = vector.broadcast %276 : f32 to vector<16x16xf32>
      %280 = arith.mulf %279, %278 : vector<16x16xf32>
      %281 = arith.addf %257, %280 : vector<16x16xf32>
      %c18_287 = arith.constant 18 : index
      %282 = memref.load %arg2[%c18_287] : memref<98xf32, #tpu.memory_space<smem>>
      %c0_288 = arith.constant 0 : index
      %c2_289 = arith.constant 2 : index
      %c4_290 = arith.constant 4 : index
      %283 = vector.load %arg7[%c0_288, %c2_289, %c4_290] : memref<2x22x22xf32, #tpu.memory_space<vmem>>, vector<1x16x16xf32>
      %284 = vector.shape_cast %283 : vector<1x16x16xf32> to vector<16x16xf32>
      %285 = vector.broadcast %282 : f32 to vector<16x16xf32>
      %286 = arith.mulf %285, %284 : vector<16x16xf32>
      %287 = arith.addf %263, %286 : vector<16x16xf32>
      %c19_291 = arith.constant 19 : index
      %288 = memref.load %arg2[%c19_291] : memref<98xf32, #tpu.memory_space<smem>>
      %c0_292 = arith.constant 0 : index
      %c2_293 = arith.constant 2 : index
      %c5_294 = arith.constant 5 : index
      %289 = vector.load %arg7[%c0_292, %c2_293, %c5_294] : memref<2x22x22xf32, #tpu.memory_space<vmem>>, vector<1x16x16xf32>
      %290 = vector.shape_cast %289 : vector<1x16x16xf32> to vector<16x16xf32>
      %291 = vector.broadcast %288 : f32 to vector<16x16xf32>
      %292 = arith.mulf %291, %290 : vector<16x16xf32>
      %293 = arith.addf %269, %292 : vector<16x16xf32>
      %c20_295 = arith.constant 20 : index
      %294 = memref.load %arg2[%c20_295] : memref<98xf32, #tpu.memory_space<smem>>
      %c0_296 = arith.constant 0 : index
      %c2_297 = arith.constant 2 : index
      %c6_298 = arith.constant 6 : index
      %295 = vector.load %arg7[%c0_296, %c2_297, %c6_298] : memref<2x22x22xf32, #tpu.memory_space<vmem>>, vector<1x16x16xf32>
      %296 = vector.shape_cast %295 : vector<1x16x16xf32> to vector<16x16xf32>
      %297 = vector.broadcast %294 : f32 to vector<16x16xf32>
      %298 = arith.mulf %297, %296 : vector<16x16xf32>
      %299 = arith.addf %275, %298 : vector<16x16xf32>
      %c21_299 = arith.constant 21 : index
      %300 = memref.load %arg2[%c21_299] : memref<98xf32, #tpu.memory_space<smem>>
      %c0_300 = arith.constant 0 : index
      %c3_301 = arith.constant 3 : index
      %c0_302 = arith.constant 0 : index
      %301 = vector.load %arg7[%c0_300, %c3_301, %c0_302] : memref<2x22x22xf32, #tpu.memory_space<vmem>>, vector<1x16x16xf32>
      %302 = vector.shape_cast %301 : vector<1x16x16xf32> to vector<16x16xf32>
      %303 = vector.broadcast %300 : f32 to vector<16x16xf32>
      %304 = arith.mulf %303, %302 : vector<16x16xf32>
      %305 = arith.addf %281, %304 : vector<16x16xf32>
      %c22 = arith.constant 22 : index
      %306 = memref.load %arg2[%c22] : memref<98xf32, #tpu.memory_space<smem>>
      %c0_303 = arith.constant 0 : index
      %c3_304 = arith.constant 3 : index
      %c1_305 = arith.constant 1 : index
      %307 = vector.load %arg7[%c0_303, %c3_304, %c1_305] : memref<2x22x22xf32, #tpu.memory_space<vmem>>, vector<1x16x16xf32>
      %308 = vector.shape_cast %307 : vector<1x16x16xf32> to vector<16x16xf32>
      %309 = vector.broadcast %306 : f32 to vector<16x16xf32>
      %310 = arith.mulf %309, %308 : vector<16x16xf32>
      %311 = arith.addf %287, %310 : vector<16x16xf32>
      %c23 = arith.constant 23 : index
      %312 = memref.load %arg2[%c23] : memref<98xf32, #tpu.memory_space<smem>>
      %c0_306 = arith.constant 0 : index
      %c3_307 = arith.constant 3 : index
      %c2_308 = arith.constant 2 : index
      %313 = vector.load %arg7[%c0_306, %c3_307, %c2_308] : memref<2x22x22xf32, #tpu.memory_space<vmem>>, vector<1x16x16xf32>
      %314 = vector.shape_cast %313 : vector<1x16x16xf32> to vector<16x16xf32>
      %315 = vector.broadcast %312 : f32 to vector<16x16xf32>
      %316 = arith.mulf %315, %314 : vector<16x16xf32>
      %317 = arith.addf %293, %316 : vector<16x16xf32>
      %c24 = arith.constant 24 : index
      %318 = memref.load %arg2[%c24] : memref<98xf32, #tpu.memory_space<smem>>
      %c0_309 = arith.constant 0 : index
      %c3_310 = arith.constant 3 : index
      %c3_311 = arith.constant 3 : index
      %319 = vector.load %arg7[%c0_309, %c3_310, %c3_311] : memref<2x22x22xf32, #tpu.memory_space<vmem>>, vector<1x16x16xf32>
      %320 = vector.shape_cast %319 : vector<1x16x16xf32> to vector<16x16xf32>
      %321 = vector.broadcast %318 : f32 to vector<16x16xf32>
      %322 = arith.mulf %321, %320 : vector<16x16xf32>
      %323 = arith.addf %299, %322 : vector<16x16xf32>
      %c25 = arith.constant 25 : index
      %324 = memref.load %arg2[%c25] : memref<98xf32, #tpu.memory_space<smem>>
      %c0_312 = arith.constant 0 : index
      %c3_313 = arith.constant 3 : index
      %c4_314 = arith.constant 4 : index
      %325 = vector.load %arg7[%c0_312, %c3_313, %c4_314] : memref<2x22x22xf32, #tpu.memory_space<vmem>>, vector<1x16x16xf32>
      %326 = vector.shape_cast %325 : vector<1x16x16xf32> to vector<16x16xf32>
      %327 = vector.broadcast %324 : f32 to vector<16x16xf32>
      %328 = arith.mulf %327, %326 : vector<16x16xf32>
      %329 = arith.addf %305, %328 : vector<16x16xf32>
      %c26 = arith.constant 26 : index
      %330 = memref.load %arg2[%c26] : memref<98xf32, #tpu.memory_space<smem>>
      %c0_315 = arith.constant 0 : index
      %c3_316 = arith.constant 3 : index
      %c5_317 = arith.constant 5 : index
      %331 = vector.load %arg7[%c0_315, %c3_316, %c5_317] : memref<2x22x22xf32, #tpu.memory_space<vmem>>, vector<1x16x16xf32>
      %332 = vector.shape_cast %331 : vector<1x16x16xf32> to vector<16x16xf32>
      %333 = vector.broadcast %330 : f32 to vector<16x16xf32>
      %334 = arith.mulf %333, %332 : vector<16x16xf32>
      %335 = arith.addf %311, %334 : vector<16x16xf32>
      %c27 = arith.constant 27 : index
      %336 = memref.load %arg2[%c27] : memref<98xf32, #tpu.memory_space<smem>>
      %c0_318 = arith.constant 0 : index
      %c3_319 = arith.constant 3 : index
      %c6_320 = arith.constant 6 : index
      %337 = vector.load %arg7[%c0_318, %c3_319, %c6_320] : memref<2x22x22xf32, #tpu.memory_space<vmem>>, vector<1x16x16xf32>
      %338 = vector.shape_cast %337 : vector<1x16x16xf32> to vector<16x16xf32>
      %339 = vector.broadcast %336 : f32 to vector<16x16xf32>
      %340 = arith.mulf %339, %338 : vector<16x16xf32>
      %341 = arith.addf %317, %340 : vector<16x16xf32>
      %c28 = arith.constant 28 : index
      %342 = memref.load %arg2[%c28] : memref<98xf32, #tpu.memory_space<smem>>
      %c0_321 = arith.constant 0 : index
      %c4_322 = arith.constant 4 : index
      %c0_323 = arith.constant 0 : index
      %343 = vector.load %arg7[%c0_321, %c4_322, %c0_323] : memref<2x22x22xf32, #tpu.memory_space<vmem>>, vector<1x16x16xf32>
      %344 = vector.shape_cast %343 : vector<1x16x16xf32> to vector<16x16xf32>
      %345 = vector.broadcast %342 : f32 to vector<16x16xf32>
      %346 = arith.mulf %345, %344 : vector<16x16xf32>
      %347 = arith.addf %323, %346 : vector<16x16xf32>
      %c29 = arith.constant 29 : index
      %348 = memref.load %arg2[%c29] : memref<98xf32, #tpu.memory_space<smem>>
      %c0_324 = arith.constant 0 : index
      %c4_325 = arith.constant 4 : index
      %c1_326 = arith.constant 1 : index
      %349 = vector.load %arg7[%c0_324, %c4_325, %c1_326] : memref<2x22x22xf32, #tpu.memory_space<vmem>>, vector<1x16x16xf32>
      %350 = vector.shape_cast %349 : vector<1x16x16xf32> to vector<16x16xf32>
      %351 = vector.broadcast %348 : f32 to vector<16x16xf32>
      %352 = arith.mulf %351, %350 : vector<16x16xf32>
      %353 = arith.addf %329, %352 : vector<16x16xf32>
      %c30 = arith.constant 30 : index
      %354 = memref.load %arg2[%c30] : memref<98xf32, #tpu.memory_space<smem>>
      %c0_327 = arith.constant 0 : index
      %c4_328 = arith.constant 4 : index
      %c2_329 = arith.constant 2 : index
      %355 = vector.load %arg7[%c0_327, %c4_328, %c2_329] : memref<2x22x22xf32, #tpu.memory_space<vmem>>, vector<1x16x16xf32>
      %356 = vector.shape_cast %355 : vector<1x16x16xf32> to vector<16x16xf32>
      %357 = vector.broadcast %354 : f32 to vector<16x16xf32>
      %358 = arith.mulf %357, %356 : vector<16x16xf32>
      %359 = arith.addf %335, %358 : vector<16x16xf32>
      %c31 = arith.constant 31 : index
      %360 = memref.load %arg2[%c31] : memref<98xf32, #tpu.memory_space<smem>>
      %c0_330 = arith.constant 0 : index
      %c4_331 = arith.constant 4 : index
      %c3_332 = arith.constant 3 : index
      %361 = vector.load %arg7[%c0_330, %c4_331, %c3_332] : memref<2x22x22xf32, #tpu.memory_space<vmem>>, vector<1x16x16xf32>
      %362 = vector.shape_cast %361 : vector<1x16x16xf32> to vector<16x16xf32>
      %363 = vector.broadcast %360 : f32 to vector<16x16xf32>
      %364 = arith.mulf %363, %362 : vector<16x16xf32>
      %365 = arith.addf %341, %364 : vector<16x16xf32>
      %c32_333 = arith.constant 32 : index
      %366 = memref.load %arg2[%c32_333] : memref<98xf32, #tpu.memory_space<smem>>
      %c0_334 = arith.constant 0 : index
      %c4_335 = arith.constant 4 : index
      %c4_336 = arith.constant 4 : index
      %367 = vector.load %arg7[%c0_334, %c4_335, %c4_336] : memref<2x22x22xf32, #tpu.memory_space<vmem>>, vector<1x16x16xf32>
      %368 = vector.shape_cast %367 : vector<1x16x16xf32> to vector<16x16xf32>
      %369 = vector.broadcast %366 : f32 to vector<16x16xf32>
      %370 = arith.mulf %369, %368 : vector<16x16xf32>
      %371 = arith.addf %347, %370 : vector<16x16xf32>
      %c33 = arith.constant 33 : index
      %372 = memref.load %arg2[%c33] : memref<98xf32, #tpu.memory_space<smem>>
      %c0_337 = arith.constant 0 : index
      %c4_338 = arith.constant 4 : index
      %c5_339 = arith.constant 5 : index
      %373 = vector.load %arg7[%c0_337, %c4_338, %c5_339] : memref<2x22x22xf32, #tpu.memory_space<vmem>>, vector<1x16x16xf32>
      %374 = vector.shape_cast %373 : vector<1x16x16xf32> to vector<16x16xf32>
      %375 = vector.broadcast %372 : f32 to vector<16x16xf32>
      %376 = arith.mulf %375, %374 : vector<16x16xf32>
      %377 = arith.addf %353, %376 : vector<16x16xf32>
      %c34 = arith.constant 34 : index
      %378 = memref.load %arg2[%c34] : memref<98xf32, #tpu.memory_space<smem>>
      %c0_340 = arith.constant 0 : index
      %c4_341 = arith.constant 4 : index
      %c6_342 = arith.constant 6 : index
      %379 = vector.load %arg7[%c0_340, %c4_341, %c6_342] : memref<2x22x22xf32, #tpu.memory_space<vmem>>, vector<1x16x16xf32>
      %380 = vector.shape_cast %379 : vector<1x16x16xf32> to vector<16x16xf32>
      %381 = vector.broadcast %378 : f32 to vector<16x16xf32>
      %382 = arith.mulf %381, %380 : vector<16x16xf32>
      %383 = arith.addf %359, %382 : vector<16x16xf32>
      %c35 = arith.constant 35 : index
      %384 = memref.load %arg2[%c35] : memref<98xf32, #tpu.memory_space<smem>>
      %c0_343 = arith.constant 0 : index
      %c5_344 = arith.constant 5 : index
      %c0_345 = arith.constant 0 : index
      %385 = vector.load %arg7[%c0_343, %c5_344, %c0_345] : memref<2x22x22xf32, #tpu.memory_space<vmem>>, vector<1x16x16xf32>
      %386 = vector.shape_cast %385 : vector<1x16x16xf32> to vector<16x16xf32>
      %387 = vector.broadcast %384 : f32 to vector<16x16xf32>
      %388 = arith.mulf %387, %386 : vector<16x16xf32>
      %389 = arith.addf %365, %388 : vector<16x16xf32>
      %c36 = arith.constant 36 : index
      %390 = memref.load %arg2[%c36] : memref<98xf32, #tpu.memory_space<smem>>
      %c0_346 = arith.constant 0 : index
      %c5_347 = arith.constant 5 : index
      %c1_348 = arith.constant 1 : index
      %391 = vector.load %arg7[%c0_346, %c5_347, %c1_348] : memref<2x22x22xf32, #tpu.memory_space<vmem>>, vector<1x16x16xf32>
      %392 = vector.shape_cast %391 : vector<1x16x16xf32> to vector<16x16xf32>
      %393 = vector.broadcast %390 : f32 to vector<16x16xf32>
      %394 = arith.mulf %393, %392 : vector<16x16xf32>
      %395 = arith.addf %371, %394 : vector<16x16xf32>
      %c37 = arith.constant 37 : index
      %396 = memref.load %arg2[%c37] : memref<98xf32, #tpu.memory_space<smem>>
      %c0_349 = arith.constant 0 : index
      %c5_350 = arith.constant 5 : index
      %c2_351 = arith.constant 2 : index
      %397 = vector.load %arg7[%c0_349, %c5_350, %c2_351] : memref<2x22x22xf32, #tpu.memory_space<vmem>>, vector<1x16x16xf32>
      %398 = vector.shape_cast %397 : vector<1x16x16xf32> to vector<16x16xf32>
      %399 = vector.broadcast %396 : f32 to vector<16x16xf32>
      %400 = arith.mulf %399, %398 : vector<16x16xf32>
      %401 = arith.addf %377, %400 : vector<16x16xf32>
      %c38 = arith.constant 38 : index
      %402 = memref.load %arg2[%c38] : memref<98xf32, #tpu.memory_space<smem>>
      %c0_352 = arith.constant 0 : index
      %c5_353 = arith.constant 5 : index
      %c3_354 = arith.constant 3 : index
      %403 = vector.load %arg7[%c0_352, %c5_353, %c3_354] : memref<2x22x22xf32, #tpu.memory_space<vmem>>, vector<1x16x16xf32>
      %404 = vector.shape_cast %403 : vector<1x16x16xf32> to vector<16x16xf32>
      %405 = vector.broadcast %402 : f32 to vector<16x16xf32>
      %406 = arith.mulf %405, %404 : vector<16x16xf32>
      %407 = arith.addf %383, %406 : vector<16x16xf32>
      %c39 = arith.constant 39 : index
      %408 = memref.load %arg2[%c39] : memref<98xf32, #tpu.memory_space<smem>>
      %c0_355 = arith.constant 0 : index
      %c5_356 = arith.constant 5 : index
      %c4_357 = arith.constant 4 : index
      %409 = vector.load %arg7[%c0_355, %c5_356, %c4_357] : memref<2x22x22xf32, #tpu.memory_space<vmem>>, vector<1x16x16xf32>
      %410 = vector.shape_cast %409 : vector<1x16x16xf32> to vector<16x16xf32>
      %411 = vector.broadcast %408 : f32 to vector<16x16xf32>
      %412 = arith.mulf %411, %410 : vector<16x16xf32>
      %413 = arith.addf %389, %412 : vector<16x16xf32>
      %c40 = arith.constant 40 : index
      %414 = memref.load %arg2[%c40] : memref<98xf32, #tpu.memory_space<smem>>
      %c0_358 = arith.constant 0 : index
      %c5_359 = arith.constant 5 : index
      %c5_360 = arith.constant 5 : index
      %415 = vector.load %arg7[%c0_358, %c5_359, %c5_360] : memref<2x22x22xf32, #tpu.memory_space<vmem>>, vector<1x16x16xf32>
      %416 = vector.shape_cast %415 : vector<1x16x16xf32> to vector<16x16xf32>
      %417 = vector.broadcast %414 : f32 to vector<16x16xf32>
      %418 = arith.mulf %417, %416 : vector<16x16xf32>
      %419 = arith.addf %395, %418 : vector<16x16xf32>
      %c41 = arith.constant 41 : index
      %420 = memref.load %arg2[%c41] : memref<98xf32, #tpu.memory_space<smem>>
      %c0_361 = arith.constant 0 : index
      %c5_362 = arith.constant 5 : index
      %c6_363 = arith.constant 6 : index
      %421 = vector.load %arg7[%c0_361, %c5_362, %c6_363] : memref<2x22x22xf32, #tpu.memory_space<vmem>>, vector<1x16x16xf32>
      %422 = vector.shape_cast %421 : vector<1x16x16xf32> to vector<16x16xf32>
      %423 = vector.broadcast %420 : f32 to vector<16x16xf32>
      %424 = arith.mulf %423, %422 : vector<16x16xf32>
      %425 = arith.addf %401, %424 : vector<16x16xf32>
      %c42 = arith.constant 42 : index
      %426 = memref.load %arg2[%c42] : memref<98xf32, #tpu.memory_space<smem>>
      %c0_364 = arith.constant 0 : index
      %c6_365 = arith.constant 6 : index
      %c0_366 = arith.constant 0 : index
      %427 = vector.load %arg7[%c0_364, %c6_365, %c0_366] : memref<2x22x22xf32, #tpu.memory_space<vmem>>, vector<1x16x16xf32>
      %428 = vector.shape_cast %427 : vector<1x16x16xf32> to vector<16x16xf32>
      %429 = vector.broadcast %426 : f32 to vector<16x16xf32>
      %430 = arith.mulf %429, %428 : vector<16x16xf32>
      %431 = arith.addf %407, %430 : vector<16x16xf32>
      %c43 = arith.constant 43 : index
      %432 = memref.load %arg2[%c43] : memref<98xf32, #tpu.memory_space<smem>>
      %c0_367 = arith.constant 0 : index
      %c6_368 = arith.constant 6 : index
      %c1_369 = arith.constant 1 : index
      %433 = vector.load %arg7[%c0_367, %c6_368, %c1_369] : memref<2x22x22xf32, #tpu.memory_space<vmem>>, vector<1x16x16xf32>
      %434 = vector.shape_cast %433 : vector<1x16x16xf32> to vector<16x16xf32>
      %435 = vector.broadcast %432 : f32 to vector<16x16xf32>
      %436 = arith.mulf %435, %434 : vector<16x16xf32>
      %437 = arith.addf %413, %436 : vector<16x16xf32>
      %c44 = arith.constant 44 : index
      %438 = memref.load %arg2[%c44] : memref<98xf32, #tpu.memory_space<smem>>
      %c0_370 = arith.constant 0 : index
      %c6_371 = arith.constant 6 : index
      %c2_372 = arith.constant 2 : index
      %439 = vector.load %arg7[%c0_370, %c6_371, %c2_372] : memref<2x22x22xf32, #tpu.memory_space<vmem>>, vector<1x16x16xf32>
      %440 = vector.shape_cast %439 : vector<1x16x16xf32> to vector<16x16xf32>
      %441 = vector.broadcast %438 : f32 to vector<16x16xf32>
      %442 = arith.mulf %441, %440 : vector<16x16xf32>
      %443 = arith.addf %419, %442 : vector<16x16xf32>
      %c45 = arith.constant 45 : index
      %444 = memref.load %arg2[%c45] : memref<98xf32, #tpu.memory_space<smem>>
      %c0_373 = arith.constant 0 : index
      %c6_374 = arith.constant 6 : index
      %c3_375 = arith.constant 3 : index
      %445 = vector.load %arg7[%c0_373, %c6_374, %c3_375] : memref<2x22x22xf32, #tpu.memory_space<vmem>>, vector<1x16x16xf32>
      %446 = vector.shape_cast %445 : vector<1x16x16xf32> to vector<16x16xf32>
      %447 = vector.broadcast %444 : f32 to vector<16x16xf32>
      %448 = arith.mulf %447, %446 : vector<16x16xf32>
      %449 = arith.addf %425, %448 : vector<16x16xf32>
      %c46 = arith.constant 46 : index
      %450 = memref.load %arg2[%c46] : memref<98xf32, #tpu.memory_space<smem>>
      %c0_376 = arith.constant 0 : index
      %c6_377 = arith.constant 6 : index
      %c4_378 = arith.constant 4 : index
      %451 = vector.load %arg7[%c0_376, %c6_377, %c4_378] : memref<2x22x22xf32, #tpu.memory_space<vmem>>, vector<1x16x16xf32>
      %452 = vector.shape_cast %451 : vector<1x16x16xf32> to vector<16x16xf32>
      %453 = vector.broadcast %450 : f32 to vector<16x16xf32>
      %454 = arith.mulf %453, %452 : vector<16x16xf32>
      %455 = arith.addf %431, %454 : vector<16x16xf32>
      %c47 = arith.constant 47 : index
      %456 = memref.load %arg2[%c47] : memref<98xf32, #tpu.memory_space<smem>>
      %c0_379 = arith.constant 0 : index
      %c6_380 = arith.constant 6 : index
      %c5_381 = arith.constant 5 : index
      %457 = vector.load %arg7[%c0_379, %c6_380, %c5_381] : memref<2x22x22xf32, #tpu.memory_space<vmem>>, vector<1x16x16xf32>
      %458 = vector.shape_cast %457 : vector<1x16x16xf32> to vector<16x16xf32>
      %459 = vector.broadcast %456 : f32 to vector<16x16xf32>
      %460 = arith.mulf %459, %458 : vector<16x16xf32>
      %461 = arith.addf %437, %460 : vector<16x16xf32>
      %c48_382 = arith.constant 48 : index
      %462 = memref.load %arg2[%c48_382] : memref<98xf32, #tpu.memory_space<smem>>
      %c0_383 = arith.constant 0 : index
      %c6_384 = arith.constant 6 : index
      %c6_385 = arith.constant 6 : index
      %463 = vector.load %arg7[%c0_383, %c6_384, %c6_385] : memref<2x22x22xf32, #tpu.memory_space<vmem>>, vector<1x16x16xf32>
      %464 = vector.shape_cast %463 : vector<1x16x16xf32> to vector<16x16xf32>
      %465 = vector.broadcast %462 : f32 to vector<16x16xf32>
      %466 = arith.mulf %465, %464 : vector<16x16xf32>
      %467 = arith.addf %443, %466 : vector<16x16xf32>
      %c49 = arith.constant 49 : index
      %468 = memref.load %arg2[%c49] : memref<98xf32, #tpu.memory_space<smem>>
      %c1_386 = arith.constant 1 : index
      %c0_387 = arith.constant 0 : index
      %c0_388 = arith.constant 0 : index
      %469 = vector.load %arg7[%c1_386, %c0_387, %c0_388] : memref<2x22x22xf32, #tpu.memory_space<vmem>>, vector<1x16x16xf32>
      %470 = vector.shape_cast %469 : vector<1x16x16xf32> to vector<16x16xf32>
      %471 = vector.broadcast %468 : f32 to vector<16x16xf32>
      %472 = arith.mulf %471, %470 : vector<16x16xf32>
      %473 = arith.addf %449, %472 : vector<16x16xf32>
      %c50 = arith.constant 50 : index
      %474 = memref.load %arg2[%c50] : memref<98xf32, #tpu.memory_space<smem>>
      %c1_389 = arith.constant 1 : index
      %c0_390 = arith.constant 0 : index
      %c1_391 = arith.constant 1 : index
      %475 = vector.load %arg7[%c1_389, %c0_390, %c1_391] : memref<2x22x22xf32, #tpu.memory_space<vmem>>, vector<1x16x16xf32>
      %476 = vector.shape_cast %475 : vector<1x16x16xf32> to vector<16x16xf32>
      %477 = vector.broadcast %474 : f32 to vector<16x16xf32>
      %478 = arith.mulf %477, %476 : vector<16x16xf32>
      %479 = arith.addf %455, %478 : vector<16x16xf32>
      %c51 = arith.constant 51 : index
      %480 = memref.load %arg2[%c51] : memref<98xf32, #tpu.memory_space<smem>>
      %c1_392 = arith.constant 1 : index
      %c0_393 = arith.constant 0 : index
      %c2_394 = arith.constant 2 : index
      %481 = vector.load %arg7[%c1_392, %c0_393, %c2_394] : memref<2x22x22xf32, #tpu.memory_space<vmem>>, vector<1x16x16xf32>
      %482 = vector.shape_cast %481 : vector<1x16x16xf32> to vector<16x16xf32>
      %483 = vector.broadcast %480 : f32 to vector<16x16xf32>
      %484 = arith.mulf %483, %482 : vector<16x16xf32>
      %485 = arith.addf %461, %484 : vector<16x16xf32>
      %c52 = arith.constant 52 : index
      %486 = memref.load %arg2[%c52] : memref<98xf32, #tpu.memory_space<smem>>
      %c1_395 = arith.constant 1 : index
      %c0_396 = arith.constant 0 : index
      %c3_397 = arith.constant 3 : index
      %487 = vector.load %arg7[%c1_395, %c0_396, %c3_397] : memref<2x22x22xf32, #tpu.memory_space<vmem>>, vector<1x16x16xf32>
      %488 = vector.shape_cast %487 : vector<1x16x16xf32> to vector<16x16xf32>
      %489 = vector.broadcast %486 : f32 to vector<16x16xf32>
      %490 = arith.mulf %489, %488 : vector<16x16xf32>
      %491 = arith.addf %467, %490 : vector<16x16xf32>
      %c53 = arith.constant 53 : index
      %492 = memref.load %arg2[%c53] : memref<98xf32, #tpu.memory_space<smem>>
      %c1_398 = arith.constant 1 : index
      %c0_399 = arith.constant 0 : index
      %c4_400 = arith.constant 4 : index
      %493 = vector.load %arg7[%c1_398, %c0_399, %c4_400] : memref<2x22x22xf32, #tpu.memory_space<vmem>>, vector<1x16x16xf32>
      %494 = vector.shape_cast %493 : vector<1x16x16xf32> to vector<16x16xf32>
      %495 = vector.broadcast %492 : f32 to vector<16x16xf32>
      %496 = arith.mulf %495, %494 : vector<16x16xf32>
      %497 = arith.addf %473, %496 : vector<16x16xf32>
      %c54 = arith.constant 54 : index
      %498 = memref.load %arg2[%c54] : memref<98xf32, #tpu.memory_space<smem>>
      %c1_401 = arith.constant 1 : index
      %c0_402 = arith.constant 0 : index
      %c5_403 = arith.constant 5 : index
      %499 = vector.load %arg7[%c1_401, %c0_402, %c5_403] : memref<2x22x22xf32, #tpu.memory_space<vmem>>, vector<1x16x16xf32>
      %500 = vector.shape_cast %499 : vector<1x16x16xf32> to vector<16x16xf32>
      %501 = vector.broadcast %498 : f32 to vector<16x16xf32>
      %502 = arith.mulf %501, %500 : vector<16x16xf32>
      %503 = arith.addf %479, %502 : vector<16x16xf32>
      %c55 = arith.constant 55 : index
      %504 = memref.load %arg2[%c55] : memref<98xf32, #tpu.memory_space<smem>>
      %c1_404 = arith.constant 1 : index
      %c0_405 = arith.constant 0 : index
      %c6_406 = arith.constant 6 : index
      %505 = vector.load %arg7[%c1_404, %c0_405, %c6_406] : memref<2x22x22xf32, #tpu.memory_space<vmem>>, vector<1x16x16xf32>
      %506 = vector.shape_cast %505 : vector<1x16x16xf32> to vector<16x16xf32>
      %507 = vector.broadcast %504 : f32 to vector<16x16xf32>
      %508 = arith.mulf %507, %506 : vector<16x16xf32>
      %509 = arith.addf %485, %508 : vector<16x16xf32>
      %c56 = arith.constant 56 : index
      %510 = memref.load %arg2[%c56] : memref<98xf32, #tpu.memory_space<smem>>
      %c1_407 = arith.constant 1 : index
      %c1_408 = arith.constant 1 : index
      %c0_409 = arith.constant 0 : index
      %511 = vector.load %arg7[%c1_407, %c1_408, %c0_409] : memref<2x22x22xf32, #tpu.memory_space<vmem>>, vector<1x16x16xf32>
      %512 = vector.shape_cast %511 : vector<1x16x16xf32> to vector<16x16xf32>
      %513 = vector.broadcast %510 : f32 to vector<16x16xf32>
      %514 = arith.mulf %513, %512 : vector<16x16xf32>
      %515 = arith.addf %491, %514 : vector<16x16xf32>
      %c57 = arith.constant 57 : index
      %516 = memref.load %arg2[%c57] : memref<98xf32, #tpu.memory_space<smem>>
      %c1_410 = arith.constant 1 : index
      %c1_411 = arith.constant 1 : index
      %c1_412 = arith.constant 1 : index
      %517 = vector.load %arg7[%c1_410, %c1_411, %c1_412] : memref<2x22x22xf32, #tpu.memory_space<vmem>>, vector<1x16x16xf32>
      %518 = vector.shape_cast %517 : vector<1x16x16xf32> to vector<16x16xf32>
      %519 = vector.broadcast %516 : f32 to vector<16x16xf32>
      %520 = arith.mulf %519, %518 : vector<16x16xf32>
      %521 = arith.addf %497, %520 : vector<16x16xf32>
      %c58 = arith.constant 58 : index
      %522 = memref.load %arg2[%c58] : memref<98xf32, #tpu.memory_space<smem>>
      %c1_413 = arith.constant 1 : index
      %c1_414 = arith.constant 1 : index
      %c2_415 = arith.constant 2 : index
      %523 = vector.load %arg7[%c1_413, %c1_414, %c2_415] : memref<2x22x22xf32, #tpu.memory_space<vmem>>, vector<1x16x16xf32>
      %524 = vector.shape_cast %523 : vector<1x16x16xf32> to vector<16x16xf32>
      %525 = vector.broadcast %522 : f32 to vector<16x16xf32>
      %526 = arith.mulf %525, %524 : vector<16x16xf32>
      %527 = arith.addf %503, %526 : vector<16x16xf32>
      %c59 = arith.constant 59 : index
      %528 = memref.load %arg2[%c59] : memref<98xf32, #tpu.memory_space<smem>>
      %c1_416 = arith.constant 1 : index
      %c1_417 = arith.constant 1 : index
      %c3_418 = arith.constant 3 : index
      %529 = vector.load %arg7[%c1_416, %c1_417, %c3_418] : memref<2x22x22xf32, #tpu.memory_space<vmem>>, vector<1x16x16xf32>
      %530 = vector.shape_cast %529 : vector<1x16x16xf32> to vector<16x16xf32>
      %531 = vector.broadcast %528 : f32 to vector<16x16xf32>
      %532 = arith.mulf %531, %530 : vector<16x16xf32>
      %533 = arith.addf %509, %532 : vector<16x16xf32>
      %c60 = arith.constant 60 : index
      %534 = memref.load %arg2[%c60] : memref<98xf32, #tpu.memory_space<smem>>
      %c1_419 = arith.constant 1 : index
      %c1_420 = arith.constant 1 : index
      %c4_421 = arith.constant 4 : index
      %535 = vector.load %arg7[%c1_419, %c1_420, %c4_421] : memref<2x22x22xf32, #tpu.memory_space<vmem>>, vector<1x16x16xf32>
      %536 = vector.shape_cast %535 : vector<1x16x16xf32> to vector<16x16xf32>
      %537 = vector.broadcast %534 : f32 to vector<16x16xf32>
      %538 = arith.mulf %537, %536 : vector<16x16xf32>
      %539 = arith.addf %515, %538 : vector<16x16xf32>
      %c61 = arith.constant 61 : index
      %540 = memref.load %arg2[%c61] : memref<98xf32, #tpu.memory_space<smem>>
      %c1_422 = arith.constant 1 : index
      %c1_423 = arith.constant 1 : index
      %c5_424 = arith.constant 5 : index
      %541 = vector.load %arg7[%c1_422, %c1_423, %c5_424] : memref<2x22x22xf32, #tpu.memory_space<vmem>>, vector<1x16x16xf32>
      %542 = vector.shape_cast %541 : vector<1x16x16xf32> to vector<16x16xf32>
      %543 = vector.broadcast %540 : f32 to vector<16x16xf32>
      %544 = arith.mulf %543, %542 : vector<16x16xf32>
      %545 = arith.addf %521, %544 : vector<16x16xf32>
      %c62 = arith.constant 62 : index
      %546 = memref.load %arg2[%c62] : memref<98xf32, #tpu.memory_space<smem>>
      %c1_425 = arith.constant 1 : index
      %c1_426 = arith.constant 1 : index
      %c6_427 = arith.constant 6 : index
      %547 = vector.load %arg7[%c1_425, %c1_426, %c6_427] : memref<2x22x22xf32, #tpu.memory_space<vmem>>, vector<1x16x16xf32>
      %548 = vector.shape_cast %547 : vector<1x16x16xf32> to vector<16x16xf32>
      %549 = vector.broadcast %546 : f32 to vector<16x16xf32>
      %550 = arith.mulf %549, %548 : vector<16x16xf32>
      %551 = arith.addf %527, %550 : vector<16x16xf32>
      %c63 = arith.constant 63 : index
      %552 = memref.load %arg2[%c63] : memref<98xf32, #tpu.memory_space<smem>>
      %c1_428 = arith.constant 1 : index
      %c2_429 = arith.constant 2 : index
      %c0_430 = arith.constant 0 : index
      %553 = vector.load %arg7[%c1_428, %c2_429, %c0_430] : memref<2x22x22xf32, #tpu.memory_space<vmem>>, vector<1x16x16xf32>
      %554 = vector.shape_cast %553 : vector<1x16x16xf32> to vector<16x16xf32>
      %555 = vector.broadcast %552 : f32 to vector<16x16xf32>
      %556 = arith.mulf %555, %554 : vector<16x16xf32>
      %557 = arith.addf %533, %556 : vector<16x16xf32>
      %c64_431 = arith.constant 64 : index
      %558 = memref.load %arg2[%c64_431] : memref<98xf32, #tpu.memory_space<smem>>
      %c1_432 = arith.constant 1 : index
      %c2_433 = arith.constant 2 : index
      %c1_434 = arith.constant 1 : index
      %559 = vector.load %arg7[%c1_432, %c2_433, %c1_434] : memref<2x22x22xf32, #tpu.memory_space<vmem>>, vector<1x16x16xf32>
      %560 = vector.shape_cast %559 : vector<1x16x16xf32> to vector<16x16xf32>
      %561 = vector.broadcast %558 : f32 to vector<16x16xf32>
      %562 = arith.mulf %561, %560 : vector<16x16xf32>
      %563 = arith.addf %539, %562 : vector<16x16xf32>
      %c65 = arith.constant 65 : index
      %564 = memref.load %arg2[%c65] : memref<98xf32, #tpu.memory_space<smem>>
      %c1_435 = arith.constant 1 : index
      %c2_436 = arith.constant 2 : index
      %c2_437 = arith.constant 2 : index
      %565 = vector.load %arg7[%c1_435, %c2_436, %c2_437] : memref<2x22x22xf32, #tpu.memory_space<vmem>>, vector<1x16x16xf32>
      %566 = vector.shape_cast %565 : vector<1x16x16xf32> to vector<16x16xf32>
      %567 = vector.broadcast %564 : f32 to vector<16x16xf32>
      %568 = arith.mulf %567, %566 : vector<16x16xf32>
      %569 = arith.addf %545, %568 : vector<16x16xf32>
      %c66 = arith.constant 66 : index
      %570 = memref.load %arg2[%c66] : memref<98xf32, #tpu.memory_space<smem>>
      %c1_438 = arith.constant 1 : index
      %c2_439 = arith.constant 2 : index
      %c3_440 = arith.constant 3 : index
      %571 = vector.load %arg7[%c1_438, %c2_439, %c3_440] : memref<2x22x22xf32, #tpu.memory_space<vmem>>, vector<1x16x16xf32>
      %572 = vector.shape_cast %571 : vector<1x16x16xf32> to vector<16x16xf32>
      %573 = vector.broadcast %570 : f32 to vector<16x16xf32>
      %574 = arith.mulf %573, %572 : vector<16x16xf32>
      %575 = arith.addf %551, %574 : vector<16x16xf32>
      %c67 = arith.constant 67 : index
      %576 = memref.load %arg2[%c67] : memref<98xf32, #tpu.memory_space<smem>>
      %c1_441 = arith.constant 1 : index
      %c2_442 = arith.constant 2 : index
      %c4_443 = arith.constant 4 : index
      %577 = vector.load %arg7[%c1_441, %c2_442, %c4_443] : memref<2x22x22xf32, #tpu.memory_space<vmem>>, vector<1x16x16xf32>
      %578 = vector.shape_cast %577 : vector<1x16x16xf32> to vector<16x16xf32>
      %579 = vector.broadcast %576 : f32 to vector<16x16xf32>
      %580 = arith.mulf %579, %578 : vector<16x16xf32>
      %581 = arith.addf %557, %580 : vector<16x16xf32>
      %c68 = arith.constant 68 : index
      %582 = memref.load %arg2[%c68] : memref<98xf32, #tpu.memory_space<smem>>
      %c1_444 = arith.constant 1 : index
      %c2_445 = arith.constant 2 : index
      %c5_446 = arith.constant 5 : index
      %583 = vector.load %arg7[%c1_444, %c2_445, %c5_446] : memref<2x22x22xf32, #tpu.memory_space<vmem>>, vector<1x16x16xf32>
      %584 = vector.shape_cast %583 : vector<1x16x16xf32> to vector<16x16xf32>
      %585 = vector.broadcast %582 : f32 to vector<16x16xf32>
      %586 = arith.mulf %585, %584 : vector<16x16xf32>
      %587 = arith.addf %563, %586 : vector<16x16xf32>
      %c69 = arith.constant 69 : index
      %588 = memref.load %arg2[%c69] : memref<98xf32, #tpu.memory_space<smem>>
      %c1_447 = arith.constant 1 : index
      %c2_448 = arith.constant 2 : index
      %c6_449 = arith.constant 6 : index
      %589 = vector.load %arg7[%c1_447, %c2_448, %c6_449] : memref<2x22x22xf32, #tpu.memory_space<vmem>>, vector<1x16x16xf32>
      %590 = vector.shape_cast %589 : vector<1x16x16xf32> to vector<16x16xf32>
      %591 = vector.broadcast %588 : f32 to vector<16x16xf32>
      %592 = arith.mulf %591, %590 : vector<16x16xf32>
      %593 = arith.addf %569, %592 : vector<16x16xf32>
      %c70 = arith.constant 70 : index
      %594 = memref.load %arg2[%c70] : memref<98xf32, #tpu.memory_space<smem>>
      %c1_450 = arith.constant 1 : index
      %c3_451 = arith.constant 3 : index
      %c0_452 = arith.constant 0 : index
      %595 = vector.load %arg7[%c1_450, %c3_451, %c0_452] : memref<2x22x22xf32, #tpu.memory_space<vmem>>, vector<1x16x16xf32>
      %596 = vector.shape_cast %595 : vector<1x16x16xf32> to vector<16x16xf32>
      %597 = vector.broadcast %594 : f32 to vector<16x16xf32>
      %598 = arith.mulf %597, %596 : vector<16x16xf32>
      %599 = arith.addf %575, %598 : vector<16x16xf32>
      %c71 = arith.constant 71 : index
      %600 = memref.load %arg2[%c71] : memref<98xf32, #tpu.memory_space<smem>>
      %c1_453 = arith.constant 1 : index
      %c3_454 = arith.constant 3 : index
      %c1_455 = arith.constant 1 : index
      %601 = vector.load %arg7[%c1_453, %c3_454, %c1_455] : memref<2x22x22xf32, #tpu.memory_space<vmem>>, vector<1x16x16xf32>
      %602 = vector.shape_cast %601 : vector<1x16x16xf32> to vector<16x16xf32>
      %603 = vector.broadcast %600 : f32 to vector<16x16xf32>
      %604 = arith.mulf %603, %602 : vector<16x16xf32>
      %605 = arith.addf %581, %604 : vector<16x16xf32>
      %c72 = arith.constant 72 : index
      %606 = memref.load %arg2[%c72] : memref<98xf32, #tpu.memory_space<smem>>
      %c1_456 = arith.constant 1 : index
      %c3_457 = arith.constant 3 : index
      %c2_458 = arith.constant 2 : index
      %607 = vector.load %arg7[%c1_456, %c3_457, %c2_458] : memref<2x22x22xf32, #tpu.memory_space<vmem>>, vector<1x16x16xf32>
      %608 = vector.shape_cast %607 : vector<1x16x16xf32> to vector<16x16xf32>
      %609 = vector.broadcast %606 : f32 to vector<16x16xf32>
      %610 = arith.mulf %609, %608 : vector<16x16xf32>
      %611 = arith.addf %587, %610 : vector<16x16xf32>
      %c73 = arith.constant 73 : index
      %612 = memref.load %arg2[%c73] : memref<98xf32, #tpu.memory_space<smem>>
      %c1_459 = arith.constant 1 : index
      %c3_460 = arith.constant 3 : index
      %c3_461 = arith.constant 3 : index
      %613 = vector.load %arg7[%c1_459, %c3_460, %c3_461] : memref<2x22x22xf32, #tpu.memory_space<vmem>>, vector<1x16x16xf32>
      %614 = vector.shape_cast %613 : vector<1x16x16xf32> to vector<16x16xf32>
      %615 = vector.broadcast %612 : f32 to vector<16x16xf32>
      %616 = arith.mulf %615, %614 : vector<16x16xf32>
      %617 = arith.addf %593, %616 : vector<16x16xf32>
      %c74 = arith.constant 74 : index
      %618 = memref.load %arg2[%c74] : memref<98xf32, #tpu.memory_space<smem>>
      %c1_462 = arith.constant 1 : index
      %c3_463 = arith.constant 3 : index
      %c4_464 = arith.constant 4 : index
      %619 = vector.load %arg7[%c1_462, %c3_463, %c4_464] : memref<2x22x22xf32, #tpu.memory_space<vmem>>, vector<1x16x16xf32>
      %620 = vector.shape_cast %619 : vector<1x16x16xf32> to vector<16x16xf32>
      %621 = vector.broadcast %618 : f32 to vector<16x16xf32>
      %622 = arith.mulf %621, %620 : vector<16x16xf32>
      %623 = arith.addf %599, %622 : vector<16x16xf32>
      %c75 = arith.constant 75 : index
      %624 = memref.load %arg2[%c75] : memref<98xf32, #tpu.memory_space<smem>>
      %c1_465 = arith.constant 1 : index
      %c3_466 = arith.constant 3 : index
      %c5_467 = arith.constant 5 : index
      %625 = vector.load %arg7[%c1_465, %c3_466, %c5_467] : memref<2x22x22xf32, #tpu.memory_space<vmem>>, vector<1x16x16xf32>
      %626 = vector.shape_cast %625 : vector<1x16x16xf32> to vector<16x16xf32>
      %627 = vector.broadcast %624 : f32 to vector<16x16xf32>
      %628 = arith.mulf %627, %626 : vector<16x16xf32>
      %629 = arith.addf %605, %628 : vector<16x16xf32>
      %c76 = arith.constant 76 : index
      %630 = memref.load %arg2[%c76] : memref<98xf32, #tpu.memory_space<smem>>
      %c1_468 = arith.constant 1 : index
      %c3_469 = arith.constant 3 : index
      %c6_470 = arith.constant 6 : index
      %631 = vector.load %arg7[%c1_468, %c3_469, %c6_470] : memref<2x22x22xf32, #tpu.memory_space<vmem>>, vector<1x16x16xf32>
      %632 = vector.shape_cast %631 : vector<1x16x16xf32> to vector<16x16xf32>
      %633 = vector.broadcast %630 : f32 to vector<16x16xf32>
      %634 = arith.mulf %633, %632 : vector<16x16xf32>
      %635 = arith.addf %611, %634 : vector<16x16xf32>
      %c77 = arith.constant 77 : index
      %636 = memref.load %arg2[%c77] : memref<98xf32, #tpu.memory_space<smem>>
      %c1_471 = arith.constant 1 : index
      %c4_472 = arith.constant 4 : index
      %c0_473 = arith.constant 0 : index
      %637 = vector.load %arg7[%c1_471, %c4_472, %c0_473] : memref<2x22x22xf32, #tpu.memory_space<vmem>>, vector<1x16x16xf32>
      %638 = vector.shape_cast %637 : vector<1x16x16xf32> to vector<16x16xf32>
      %639 = vector.broadcast %636 : f32 to vector<16x16xf32>
      %640 = arith.mulf %639, %638 : vector<16x16xf32>
      %641 = arith.addf %617, %640 : vector<16x16xf32>
      %c78 = arith.constant 78 : index
      %642 = memref.load %arg2[%c78] : memref<98xf32, #tpu.memory_space<smem>>
      %c1_474 = arith.constant 1 : index
      %c4_475 = arith.constant 4 : index
      %c1_476 = arith.constant 1 : index
      %643 = vector.load %arg7[%c1_474, %c4_475, %c1_476] : memref<2x22x22xf32, #tpu.memory_space<vmem>>, vector<1x16x16xf32>
      %644 = vector.shape_cast %643 : vector<1x16x16xf32> to vector<16x16xf32>
      %645 = vector.broadcast %642 : f32 to vector<16x16xf32>
      %646 = arith.mulf %645, %644 : vector<16x16xf32>
      %647 = arith.addf %623, %646 : vector<16x16xf32>
      %c79 = arith.constant 79 : index
      %648 = memref.load %arg2[%c79] : memref<98xf32, #tpu.memory_space<smem>>
      %c1_477 = arith.constant 1 : index
      %c4_478 = arith.constant 4 : index
      %c2_479 = arith.constant 2 : index
      %649 = vector.load %arg7[%c1_477, %c4_478, %c2_479] : memref<2x22x22xf32, #tpu.memory_space<vmem>>, vector<1x16x16xf32>
      %650 = vector.shape_cast %649 : vector<1x16x16xf32> to vector<16x16xf32>
      %651 = vector.broadcast %648 : f32 to vector<16x16xf32>
      %652 = arith.mulf %651, %650 : vector<16x16xf32>
      %653 = arith.addf %629, %652 : vector<16x16xf32>
      %c80_480 = arith.constant 80 : index
      %654 = memref.load %arg2[%c80_480] : memref<98xf32, #tpu.memory_space<smem>>
      %c1_481 = arith.constant 1 : index
      %c4_482 = arith.constant 4 : index
      %c3_483 = arith.constant 3 : index
      %655 = vector.load %arg7[%c1_481, %c4_482, %c3_483] : memref<2x22x22xf32, #tpu.memory_space<vmem>>, vector<1x16x16xf32>
      %656 = vector.shape_cast %655 : vector<1x16x16xf32> to vector<16x16xf32>
      %657 = vector.broadcast %654 : f32 to vector<16x16xf32>
      %658 = arith.mulf %657, %656 : vector<16x16xf32>
      %659 = arith.addf %635, %658 : vector<16x16xf32>
      %c81 = arith.constant 81 : index
      %660 = memref.load %arg2[%c81] : memref<98xf32, #tpu.memory_space<smem>>
      %c1_484 = arith.constant 1 : index
      %c4_485 = arith.constant 4 : index
      %c4_486 = arith.constant 4 : index
      %661 = vector.load %arg7[%c1_484, %c4_485, %c4_486] : memref<2x22x22xf32, #tpu.memory_space<vmem>>, vector<1x16x16xf32>
      %662 = vector.shape_cast %661 : vector<1x16x16xf32> to vector<16x16xf32>
      %663 = vector.broadcast %660 : f32 to vector<16x16xf32>
      %664 = arith.mulf %663, %662 : vector<16x16xf32>
      %665 = arith.addf %641, %664 : vector<16x16xf32>
      %c82 = arith.constant 82 : index
      %666 = memref.load %arg2[%c82] : memref<98xf32, #tpu.memory_space<smem>>
      %c1_487 = arith.constant 1 : index
      %c4_488 = arith.constant 4 : index
      %c5_489 = arith.constant 5 : index
      %667 = vector.load %arg7[%c1_487, %c4_488, %c5_489] : memref<2x22x22xf32, #tpu.memory_space<vmem>>, vector<1x16x16xf32>
      %668 = vector.shape_cast %667 : vector<1x16x16xf32> to vector<16x16xf32>
      %669 = vector.broadcast %666 : f32 to vector<16x16xf32>
      %670 = arith.mulf %669, %668 : vector<16x16xf32>
      %671 = arith.addf %647, %670 : vector<16x16xf32>
      %c83 = arith.constant 83 : index
      %672 = memref.load %arg2[%c83] : memref<98xf32, #tpu.memory_space<smem>>
      %c1_490 = arith.constant 1 : index
      %c4_491 = arith.constant 4 : index
      %c6_492 = arith.constant 6 : index
      %673 = vector.load %arg7[%c1_490, %c4_491, %c6_492] : memref<2x22x22xf32, #tpu.memory_space<vmem>>, vector<1x16x16xf32>
      %674 = vector.shape_cast %673 : vector<1x16x16xf32> to vector<16x16xf32>
      %675 = vector.broadcast %672 : f32 to vector<16x16xf32>
      %676 = arith.mulf %675, %674 : vector<16x16xf32>
      %677 = arith.addf %653, %676 : vector<16x16xf32>
      %c84 = arith.constant 84 : index
      %678 = memref.load %arg2[%c84] : memref<98xf32, #tpu.memory_space<smem>>
      %c1_493 = arith.constant 1 : index
      %c5_494 = arith.constant 5 : index
      %c0_495 = arith.constant 0 : index
      %679 = vector.load %arg7[%c1_493, %c5_494, %c0_495] : memref<2x22x22xf32, #tpu.memory_space<vmem>>, vector<1x16x16xf32>
      %680 = vector.shape_cast %679 : vector<1x16x16xf32> to vector<16x16xf32>
      %681 = vector.broadcast %678 : f32 to vector<16x16xf32>
      %682 = arith.mulf %681, %680 : vector<16x16xf32>
      %683 = arith.addf %659, %682 : vector<16x16xf32>
      %c85 = arith.constant 85 : index
      %684 = memref.load %arg2[%c85] : memref<98xf32, #tpu.memory_space<smem>>
      %c1_496 = arith.constant 1 : index
      %c5_497 = arith.constant 5 : index
      %c1_498 = arith.constant 1 : index
      %685 = vector.load %arg7[%c1_496, %c5_497, %c1_498] : memref<2x22x22xf32, #tpu.memory_space<vmem>>, vector<1x16x16xf32>
      %686 = vector.shape_cast %685 : vector<1x16x16xf32> to vector<16x16xf32>
      %687 = vector.broadcast %684 : f32 to vector<16x16xf32>
      %688 = arith.mulf %687, %686 : vector<16x16xf32>
      %689 = arith.addf %665, %688 : vector<16x16xf32>
      %c86 = arith.constant 86 : index
      %690 = memref.load %arg2[%c86] : memref<98xf32, #tpu.memory_space<smem>>
      %c1_499 = arith.constant 1 : index
      %c5_500 = arith.constant 5 : index
      %c2_501 = arith.constant 2 : index
      %691 = vector.load %arg7[%c1_499, %c5_500, %c2_501] : memref<2x22x22xf32, #tpu.memory_space<vmem>>, vector<1x16x16xf32>
      %692 = vector.shape_cast %691 : vector<1x16x16xf32> to vector<16x16xf32>
      %693 = vector.broadcast %690 : f32 to vector<16x16xf32>
      %694 = arith.mulf %693, %692 : vector<16x16xf32>
      %695 = arith.addf %671, %694 : vector<16x16xf32>
      %c87 = arith.constant 87 : index
      %696 = memref.load %arg2[%c87] : memref<98xf32, #tpu.memory_space<smem>>
      %c1_502 = arith.constant 1 : index
      %c5_503 = arith.constant 5 : index
      %c3_504 = arith.constant 3 : index
      %697 = vector.load %arg7[%c1_502, %c5_503, %c3_504] : memref<2x22x22xf32, #tpu.memory_space<vmem>>, vector<1x16x16xf32>
      %698 = vector.shape_cast %697 : vector<1x16x16xf32> to vector<16x16xf32>
      %699 = vector.broadcast %696 : f32 to vector<16x16xf32>
      %700 = arith.mulf %699, %698 : vector<16x16xf32>
      %701 = arith.addf %677, %700 : vector<16x16xf32>
      %c88 = arith.constant 88 : index
      %702 = memref.load %arg2[%c88] : memref<98xf32, #tpu.memory_space<smem>>
      %c1_505 = arith.constant 1 : index
      %c5_506 = arith.constant 5 : index
      %c4_507 = arith.constant 4 : index
      %703 = vector.load %arg7[%c1_505, %c5_506, %c4_507] : memref<2x22x22xf32, #tpu.memory_space<vmem>>, vector<1x16x16xf32>
      %704 = vector.shape_cast %703 : vector<1x16x16xf32> to vector<16x16xf32>
      %705 = vector.broadcast %702 : f32 to vector<16x16xf32>
      %706 = arith.mulf %705, %704 : vector<16x16xf32>
      %707 = arith.addf %683, %706 : vector<16x16xf32>
      %c89 = arith.constant 89 : index
      %708 = memref.load %arg2[%c89] : memref<98xf32, #tpu.memory_space<smem>>
      %c1_508 = arith.constant 1 : index
      %c5_509 = arith.constant 5 : index
      %c5_510 = arith.constant 5 : index
      %709 = vector.load %arg7[%c1_508, %c5_509, %c5_510] : memref<2x22x22xf32, #tpu.memory_space<vmem>>, vector<1x16x16xf32>
      %710 = vector.shape_cast %709 : vector<1x16x16xf32> to vector<16x16xf32>
      %711 = vector.broadcast %708 : f32 to vector<16x16xf32>
      %712 = arith.mulf %711, %710 : vector<16x16xf32>
      %713 = arith.addf %689, %712 : vector<16x16xf32>
      %c90 = arith.constant 90 : index
      %714 = memref.load %arg2[%c90] : memref<98xf32, #tpu.memory_space<smem>>
      %c1_511 = arith.constant 1 : index
      %c5_512 = arith.constant 5 : index
      %c6_513 = arith.constant 6 : index
      %715 = vector.load %arg7[%c1_511, %c5_512, %c6_513] : memref<2x22x22xf32, #tpu.memory_space<vmem>>, vector<1x16x16xf32>
      %716 = vector.shape_cast %715 : vector<1x16x16xf32> to vector<16x16xf32>
      %717 = vector.broadcast %714 : f32 to vector<16x16xf32>
      %718 = arith.mulf %717, %716 : vector<16x16xf32>
      %719 = arith.addf %695, %718 : vector<16x16xf32>
      %c91 = arith.constant 91 : index
      %720 = memref.load %arg2[%c91] : memref<98xf32, #tpu.memory_space<smem>>
      %c1_514 = arith.constant 1 : index
      %c6_515 = arith.constant 6 : index
      %c0_516 = arith.constant 0 : index
      %721 = vector.load %arg7[%c1_514, %c6_515, %c0_516] : memref<2x22x22xf32, #tpu.memory_space<vmem>>, vector<1x16x16xf32>
      %722 = vector.shape_cast %721 : vector<1x16x16xf32> to vector<16x16xf32>
      %723 = vector.broadcast %720 : f32 to vector<16x16xf32>
      %724 = arith.mulf %723, %722 : vector<16x16xf32>
      %725 = arith.addf %701, %724 : vector<16x16xf32>
      %c92 = arith.constant 92 : index
      %726 = memref.load %arg2[%c92] : memref<98xf32, #tpu.memory_space<smem>>
      %c1_517 = arith.constant 1 : index
      %c6_518 = arith.constant 6 : index
      %c1_519 = arith.constant 1 : index
      %727 = vector.load %arg7[%c1_517, %c6_518, %c1_519] : memref<2x22x22xf32, #tpu.memory_space<vmem>>, vector<1x16x16xf32>
      %728 = vector.shape_cast %727 : vector<1x16x16xf32> to vector<16x16xf32>
      %729 = vector.broadcast %726 : f32 to vector<16x16xf32>
      %730 = arith.mulf %729, %728 : vector<16x16xf32>
      %731 = arith.addf %707, %730 : vector<16x16xf32>
      %c93 = arith.constant 93 : index
      %732 = memref.load %arg2[%c93] : memref<98xf32, #tpu.memory_space<smem>>
      %c1_520 = arith.constant 1 : index
      %c6_521 = arith.constant 6 : index
      %c2_522 = arith.constant 2 : index
      %733 = vector.load %arg7[%c1_520, %c6_521, %c2_522] : memref<2x22x22xf32, #tpu.memory_space<vmem>>, vector<1x16x16xf32>
      %734 = vector.shape_cast %733 : vector<1x16x16xf32> to vector<16x16xf32>
      %735 = vector.broadcast %732 : f32 to vector<16x16xf32>
      %736 = arith.mulf %735, %734 : vector<16x16xf32>
      %737 = arith.addf %713, %736 : vector<16x16xf32>
      %c94 = arith.constant 94 : index
      %738 = memref.load %arg2[%c94] : memref<98xf32, #tpu.memory_space<smem>>
      %c1_523 = arith.constant 1 : index
      %c6_524 = arith.constant 6 : index
      %c3_525 = arith.constant 3 : index
      %739 = vector.load %arg7[%c1_523, %c6_524, %c3_525] : memref<2x22x22xf32, #tpu.memory_space<vmem>>, vector<1x16x16xf32>
      %740 = vector.shape_cast %739 : vector<1x16x16xf32> to vector<16x16xf32>
      %741 = vector.broadcast %738 : f32 to vector<16x16xf32>
      %742 = arith.mulf %741, %740 : vector<16x16xf32>
      %743 = arith.addf %719, %742 : vector<16x16xf32>
      %c95 = arith.constant 95 : index
      %744 = memref.load %arg2[%c95] : memref<98xf32, #tpu.memory_space<smem>>
      %c1_526 = arith.constant 1 : index
      %c6_527 = arith.constant 6 : index
      %c4_528 = arith.constant 4 : index
      %745 = vector.load %arg7[%c1_526, %c6_527, %c4_528] : memref<2x22x22xf32, #tpu.memory_space<vmem>>, vector<1x16x16xf32>
      %746 = vector.shape_cast %745 : vector<1x16x16xf32> to vector<16x16xf32>
      %747 = vector.broadcast %744 : f32 to vector<16x16xf32>
      %748 = arith.mulf %747, %746 : vector<16x16xf32>
      %749 = arith.addf %725, %748 : vector<16x16xf32>
      %c96_529 = arith.constant 96 : index
      %750 = memref.load %arg2[%c96_529] : memref<98xf32, #tpu.memory_space<smem>>
      %c1_530 = arith.constant 1 : index
      %c6_531 = arith.constant 6 : index
      %c5_532 = arith.constant 5 : index
      %751 = vector.load %arg7[%c1_530, %c6_531, %c5_532] : memref<2x22x22xf32, #tpu.memory_space<vmem>>, vector<1x16x16xf32>
      %752 = vector.shape_cast %751 : vector<1x16x16xf32> to vector<16x16xf32>
      %753 = vector.broadcast %750 : f32 to vector<16x16xf32>
      %754 = arith.mulf %753, %752 : vector<16x16xf32>
      %755 = arith.addf %731, %754 : vector<16x16xf32>
      %c97 = arith.constant 97 : index
      %756 = memref.load %arg2[%c97] : memref<98xf32, #tpu.memory_space<smem>>
      %c1_533 = arith.constant 1 : index
      %c6_534 = arith.constant 6 : index
      %c6_535 = arith.constant 6 : index
      %757 = vector.load %arg7[%c1_533, %c6_534, %c6_535] : memref<2x22x22xf32, #tpu.memory_space<vmem>>, vector<1x16x16xf32>
      %758 = vector.shape_cast %757 : vector<1x16x16xf32> to vector<16x16xf32>
      %759 = vector.broadcast %756 : f32 to vector<16x16xf32>
      %760 = arith.mulf %759, %758 : vector<16x16xf32>
      %761 = arith.addf %737, %760 : vector<16x16xf32>
      %762 = arith.addf %755, %761 : vector<16x16xf32>
      %763 = arith.addf %743, %749 : vector<16x16xf32>
      %764 = arith.addf %762, %763 : vector<16x16xf32>
      %c0_536 = arith.constant 0 : index
      %765 = memref.load %arg3[%c0_536] : memref<1xf32, #tpu.memory_space<smem>>
      %766 = vector.broadcast %765 : f32 to vector<16x16xf32>
      %767 = arith.addf %764, %766 : vector<16x16xf32>
      %c0_537 = arith.constant 0 : index
      %c0_538 = arith.constant 0 : index
      %c0_539 = arith.constant 0 : index
      %c0_540 = arith.constant 0 : index
      %768 = vector.load %arg5[%c0_537, %c0_538, %c0_539, %c0_540] : memref<1x1x16x16xf32, #tpu.memory_space<vmem>>, vector<1x1x16x16xf32>
      %769 = vector.shape_cast %768 : vector<1x1x16x16xf32> to vector<16x16xf32>
      %770 = vector.shape_cast %767 : vector<16x16xf32> to vector<1x1x16x16xf32>
      tpu.vector_store %arg5[%c0_537, %c0_538, %c0_539, %c0_540], %770 {strides = array<i32>} : memref<1x1x16x16xf32, #tpu.memory_space<vmem>>, vector<1x1x16x16xf32>,
    } else {
    }
    return
  }
  func.func @transform_0(%arg0: i32, %arg1: i32) -> i32 {
    %c0_i32 = arith.constant 0 : i32
    %c0_i32_0 = arith.constant 0 : i32
    return %c0_i32 : i32
  }
  func.func @transform_1(%arg0: i32, %arg1: i32) -> i32 {
    %c0_i32 = arith.constant 0 : i32
    %c0_i32_0 = arith.constant 0 : i32
    return %c0_i32 : i32
  }
  func.func @transform_2(%arg0: i32, %arg1: i32) -> (i32, i32, i32) {
    %c0_i32 = arith.constant 0 : i32
    %c0_i32_0 = arith.constant 0 : i32
    return %arg0, %arg1, %c0_i32 : i32, i32, i32
  }
  func.func @transform_3(%arg0: i32, %arg1: i32) -> (i32, i32, i32, i32) {
    %c0_i32 = arith.constant 0 : i32
    %c0_i32_0 = arith.constant 0 : i32
    %c0_i32_1 = arith.constant 0 : i32
    %c0_i32_2 = arith.constant 0 : i32
    return %arg0, %c0_i32, %c0_i32_0, %c0_i32_1 : i32, i32, i32, i32
  }
}

</mosaic_0001>

<bundles_post_ra>
// kernel: tpu_custom_call.1
= control target key start
LH: loop header
LB: loop body
LE: loop exit
PB: predicated region body
PF: predicated region fallthrough
CT: control target
= control target key end

     0   :  { %s4057_s0 = inlined_call_operand.vmem [shape: f32[98], index: 0, kind: input, shape index: {}]   ;;  %s4058_s1 = inlined_call_operand.<no memory space> [shape: f32[1], index: 1, kind: input, shape index: {}]   ;;  %s4059_s2 = inlined_call_operand.hbm [shape: f32[2,4,256], index: 2, kind: input, shape index: {}]   ;;  %s4060_s3 = inlined_call_operand.hbm [shape: f32[2,1,16,16], index: 3, kind: output, shape index: {}]  }
   0x1   :  { %4101 = sst [smem:[#allocation24_spill]] %s4057_s0 }
   0x2   :  { %4102 = sst [smem:[#allocation25_spill]] %s4059_s2 }
   0x3   :  { %8 = sst [smem:[#allocation4]] %s4058_s1 }
   0x4   :  { %9 = vsyncpa [#allocation8], 0 }
   0x5   :  { %10 = vsyncpa [#allocation6], 0 }
   0x6   :  { %12 = vsyncpa [#allocation6 + $0x1], 0 }
   0x7   :  { %13 = vsyncpa [#allocation7], 0 }
   0x8   :  { %15 = vsyncpa [#allocation7 + $0x1], 0  ;;  %s2734_s14 = smov 0   ;;  %s2736_s15 = smov 0  }
   0x9   :  { %s2738_s16 = smov 0   ;;  %s2740_s17 = smov 0  }
   0xa   :  { %s2742_s18 = smov 0   ;;  %s2744_s19 = smov 0  }
   0xb LB: > { %4103 = sst [smem:[#allocation14_spill]] %s2667_s15  ;;  %s2305_s1 = sadd.s32 4294967295, %s2683_s19   ;;  %s2683_s19 = sphi %s2744_s19, %s21_s19   ;;  %s2679_s18 = sphi %s2742_s18, %s4160_s18   ;;  %s2675_s17 = sphi %s2740_s17, %s4159_s17   ;;  %s2671_s16 = sphi %s2738_s16, %s4158_s16   ;;  %s2667_s15 = sphi %s2736_s15, %s4157_s15   ;;  %s2663_s14 = sphi %s2734_s14, %s4156_s14  }
   0xc   : > { %4104 = sst [smem:[#allocation15_spill]] %s2671_s16  ;;  %s2306_s20 = sadd.s32 4294967294, %s2683_s19  }
   0xd   : > { %4105 = sst [smem:[#allocation16_spill]] %s2679_s18  ;;  %p97_p0 = scmp.ne.s32.totalorder %s2667_s15, %s2663_s14 }
   0xe   : > { %4106 = sst [smem:[#allocation17_spill]] %s2683_s19  ;;  %p2768_p1 = scmp.eq.s32.totalorder %s2305_s1, 0 }
   0xf   : > { %p2772_p2 = scmp.eq.s32.totalorder %s2305_s1, 1  ;;  %p127_p3 = scmp.eq.s32.totalorder %s2306_s20, 1 }
  0x10   : > { %p2778_p4 = por %p2768_p1, %p97_p0  ;;  %p2307_p5 = scmp.ge.s32.totalorder %s2683_s19, 1 }
  0x11   : > { %p2783_p6 = por %p127_p3, %p97_p0  ;;  %p134_p7 = scmp.lt.s32.totalorder %s2683_s19, 3 }
  0x12   : > { %s4109_s23 = scalar_select %p2778_p4, 1, 0 }
  0x13   : > { %s4110_s24 = scalar_select %p2783_p6, 1, 0 }
  0x14   : > { %s4112_s0 = sld [smem:[#allocation24_spill]]  ;;  %p2791_p8 = pnand %p2307_p5, %p134_p7 }
  0x15   : > { %4111 = sst [smem:[#allocation18_spill]] %s4110_s24  ;;  %s33_s30 = sadd.s32 1, %s2679_s18 }
  0x16   : > { %p2461_p10 = pneg %p2791_p8  ;;  %s84_s4 = sadd.s32 1, %s2671_s16 }
  0x17   : > { %p35_p12 = scmp.ge.s32.totalorder %s33_s30, 2 }
  0x18   : > { %p2800_p11 = pnand %p2461_p10, %p2768_p1 }
  0x1a   : > { %s147_s27 = sshll.u32 %s4112_s0, 4  ;;  %p2558_p0 = pneg %p2800_p11  ;;  %s148_s27 = int_to_ptr.vmem [resolvable:$true] %s147_s27 }
  0x1b   : > { %s2556_s5 = scalar_lea.vmem %s148_s27, 16  ;;  %p2564_p7 = scmp.lt.s32.totalorder %s148_s27, %s148_s27 }
  0x1c   : > { %p2557_p13 = scmp.ne.s32.totalorder %s148_s27, %s2556_s5  ;;  %p2565_p6 = scmp.lt.s32.totalorder %s2556_s5, %s2556_s5 }
  0x1e   : > { %p2559_p3 = pnand %p2558_p0, %p2557_p13  ;;  %p2566_p9 = por %p2565_p6, %p2564_p7 }
  0x20   : > { %p2560_p5 = pneg %p2559_p3 }
  0x22   : > { %p2567_p4 = pnand %p2566_p9, %p2560_p5 }
  0x24   : > { %2570 = shalt.err (!%p2567_p4)
}
  0x25   : > { %s2685_s6 = smov [#allocation5]   ;;  %s4162_s30 = smov (%p35_p12, %s33_s30), 0 }
  0x26   : > { %2464 = dma.vmem_to_smem (!%p2800_p11), %s148_s27, 16, %s2685_s6, [#allocation8]  }
  0x27   : > { %4115 = sst [smem:[#allocation19_spill]] %s4162_s30  ;;  %p91_p10 = scmp.ne.s32.totalorder %s2671_s16, %s2667_s15 }
  0x28   : > { %p92_p6 = scmp.eq.s32.totalorder %s2683_s19, 0  ;;  %s79_s7 = ssub.s32 %s2679_s18, %s4162_s30 }
  0x29   : > { %p2474_p4 = scmp.lt.s32.totalorder %s2683_s19, 2  ;;  %p82_p9 = scmp.eq.s32.totalorder %s79_s7, 0 }
  0x2a   : > { %p93_p13 = por %p92_p6, %p91_p10  ;;  %p2820_p0 = por %p2772_p2, %p91_p10 }
  0x2b   : > { %s161_s9 = sand.u32 1, %s2671_s16   ;;  %s2451_s12 = sshll.u32 %s2679_s18, 7 }
  0x2c   : > { %s2826_s10 = scalar_select %p82_p9, %s2671_s16, %s84_s4  }
  0x2d   : > { %s2310_s11 = sshll.u32 %s161_s9, 3  ;;  %s4118_s2 = sld [smem:[#allocation25_spill]] }
  0x2e   : > { %4117 = sst [smem:[#allocation20_spill]] %s2826_s10  ;;  %s165_s25 = scalar_lea.vmem [#allocation9], %s2310_s11 }
  0x2f   : > { %s175_s26 = sshll.u32 %s165_s25, 4  ;;  %p2832_p11 = pnand %p2474_p4, %p93_p13  ;;  %s176_s26 = int_to_ptr.vmem [resolvable:$true] %s175_s26 }
  0x30   : > { %s162_s22 = scalar_lea.sflag [#allocation6], %s161_s9  ;;  %s2584_s29 = scalar_lea.vmem %s176_s26, 128 }
  0x31   : > { %p2573_p2 = pneg %p2832_p11  ;;  %p2585_p12 = scmp.ne.s32.totalorder %s176_s26, %s2584_s29 }
  0x32   : > { %s2686_s4 = smov [#allocation9]  }
  0x33   : > { %s173_s20 = scalar_lea.hbm %s4118_s2, %s2451_s12  ;;  %p2587_p3 = pnand %p2585_p12, %p2573_p2 }
  0x34   : > { %s2589_s5 = sshll.u32 %s2686_s4, 4  ;;  %s2590_s5 = int_to_ptr.vmem [resolvable:$false] %s2589_s5 }
  0x35   : > { %p2588_p5 = pneg %p2587_p3  ;;  %s2591_s6 = scalar_lea.vmem %s2590_s5, 256 }
  0x36   : > { %p2592_p7 = scmp.lt.s32.totalorder %s176_s26, %s2590_s5  ;;  %p2593_p10 = scmp.lt.s32.totalorder %s2591_s6, %s2584_s29 }
  0x38   : > { %p2594_p6 = por %p2593_p10, %p2592_p7 }
  0x3a   : > { %p2595_p9 = pnand %p2594_p6, %p2588_p5 }
  0x3c   : > { %2598 = shalt.err (!%p2595_p9)
}
  0x3d   : > { %2468 = dma.hbm_to_vmem [thread:$0]  (!%p2832_p11), %s173_s20, 128, %s176_s26, %s162_s22  }
  0x3e   : > { %184 = sbr.rel (%p2791_p8) target bundleno = 1589 (0x635), region = 32 }
  0x43   : > { %2650 = dma.done.wait (%p2768_p1), [#allocation8], 16  }
  0x44   : > { %2652 = vsyncadd (%p2768_p1), [#allocation8], 4294967280  ;;  %s2847_s7 = sand.u32 1, %s2667_s15   ;;  %p4120_p4 = scmp.ne.s32.totalorder %s4109_s23, 0 }
  0x45   : > { %s2315_s9 = sshll.u32 %s2847_s7, 3  ;;  %s191_s11 = scalar_lea.sflag [#allocation6], %s2847_s7 }
  0x46   : > { %s194_s12 = scalar_lea.vmem [#allocation9], %s2315_s9 }
  0x47   : > { %2654 = dma.done.wait (%p4120_p4), %s191_s11, 128  }
  0x48   : > { %2656 = vsyncadd (%p4120_p4), %s191_s11, 4294967168 }
  0x49   : > { %199 = sfence }
  0x4a   : > { %v222_v0 = vlaneseq  ;;  %v229_v1 = vld [vmem:[%s194_s12] sm:$0xff]  ;;  %vm234_vm0 = vcmask 1043456   ;;  %v2687_v7 = vmov 0.0   ;;  %v2688_v9 = vmov -inf   ;;  %s2690_s21 = smov 83   ;;  %s2691_s23 = smov 115  }
  0x4b   : > { %v232_v2 = vcombine.high %v229_v1, %v229_v1  ;;  %v235_v3 = vsel %vm234_vm0, %v229_v1, 0.0  ;;  %v275_v6 = vsel %vm234_vm0, %v229_v1, -inf  ;;  %v2689_v18 = vmov 1966171168   ;;  %s2692_s28 = smov 67   ;;  %s2693_s13 = smov 99  }
  0x4c   : > { %vm2855_vm1 = vcmp.lt.s32.totalorder %v222_v0, 256  ;;  %v236_v5 = vrot.slane %v235_v3, 4  ;;  %v276_v10 = vrot.slane %v275_v6, 4  ;;  %v253_v19 = vunpack.c.l.s4 %v2689_v18  ;;  %s2694_s1 = smov 35   ;;  %s2695_s20 = smov 51  }
  0x4d   : > { %226 = vst.msk [vmem:[#allocation2] ss:$2 sm:$0x3] %vm2855_vm1, %v2687_v7  ;;  %v242_v8 = vsel %vm234_vm0, %v232_v2, 0.0  ;;  %v282_v11 = vsel %vm234_vm0, %v232_v2, -inf  ;;  %v256_v25 = vshrl.u32 %v222_v0, 7 }
  0x4e   : > { %228 = vst.msk [vmem:[#allocation2 + $0x1] ss:$2 sm:$0x3] %vm2855_vm1, %v2688_v9  ;;  %v237_v12 = vadd.f32 %v236_v5, %v235_v3  ;;  %v243_v13 = vrot.slane %v242_v8, 4  ;;  %v283_v14 = vrot.slane %v282_v11, 4  ;;  %v277_v15 = vmax.f32 %v275_v6, %v276_v10  ;;  %s4070_s25 = smov 3  }
  0x4f   : > { %v254_v29 = vunpack.c.0.s8 %v253_v19  ;;  %s2697_s26 = smov 19   ;;  %vm321_vm2 = vcmask 147480   ;;  %s4062_s27 = smov 122   ;;  %vm688_vm3 = vcmask 7168   ;;  %vm691_vm4 = vcmask 5120  }
  0x50   : > { %v238_v16 = vrot.slane %v237_v12, 2  ;;  %v244_v17 = vadd.f32 %v243_v13, %v242_v8  ;;  %v284_v20 = vmax.f32 %v282_v11, %v283_v14  ;;  %v278_v21 = vrot.slane %v277_v15, 2  ;;  %s4066_s22 = smov 2   ;;  %s4076_s29 = smov 124  }
  0x51   : > { %v257_v37 = vsub.s32 %v254_v29, %v256_v25  ;;  %vm726_vm5 = vcmask 162968   ;;  %vm729_vm6 = vcmask 160920   ;;  %vm764_vm7 = vcmask 15368   ;;  %s2701_s4 = smov 4   ;;  %s4064_s5 = smov 126  }
  0x52   : > { %v239_v22 = vadd.f32 %v238_v16, %v237_v12  ;;  %v245_v23 = vrot.slane %v244_v17, 2  ;;  %v285_v24 = vrot.slane %v284_v20, 2  ;;  %v279_v26 = vmax.f32 %v277_v15, %v278_v21  ;;  %s2703_s6 = smov 6   ;;  %s2971_s9 = sld [smem:[#allocation5 + $0x4]] }
  0x53   : > { %vm767_vm8 = vcmask 13320   ;;  %vm802_vm9 = vcmask 171168   ;;  %vm805_vm10 = vcmask 169120   ;;  %vm840_vm11 = vcmask 23568   ;;  %s2974_s11 = sld [smem:[#allocation5 + $0x5]]  ;;  %s4134_s15 = smov 125  }
  0x54   : > { %v240_v27 = vrot.slane %v239_v22, 1  ;;  %v246_v28 = vadd.f32 %v245_v23, %v244_v17  ;;  %v286_v30 = vmax.f32 %v284_v20, %v285_v24  ;;  %v280_v31 = vrot.slane %v279_v26, 1  ;;  %v230_v43 = vld [vmem:[#allocation2] ss:$2 sm:$0x3]  ;;  %s2977_s12 = sld [smem:[#allocation5 + $0x6]] }
  0x55   : > { %v274_v44 = vld [vmem:[#allocation2 + $0x1] ss:$2 sm:$0x3]  ;;  %vm843_vm12 = vcmask 21520   ;;  %vm878_vm13 = vcmask 179368   ;;  %vm881_vm14 = vcmask 177320  }
  0x56   : > { %v241_v32 = vadd.f32 %v240_v27, %v239_v22  ;;  %v247_v33 = vrot.slane %v246_v28, 1  ;;  %v287_v34 = vrot.slane %v286_v30, 1  ;;  %v281_v35 = vmax.f32 %v279_v26, %v280_v31  ;;  %s3197_s0 = sld [smem:[#allocation5 + $0x26]] }
  0x57   : > { %s3214_s2 = sld [smem:[#allocation5 + $0x28]]  ;;  %vm2192_vm15 = vcmask 130048  }
  0x58   : > { %v248_v36 = vadd.f32 %v247_v33, %v246_v28  ;;  %v288_v38 = vmax.f32 %v286_v30, %v287_v34  ;;  %s3299_s30 = sld [smem:[#allocation5 + $0x4f]] }
  0x59   : > { %s3314_s18 = sld [smem:[#allocation5 + $0x53]] }
  0x5a   : > { %v251_v39 = vcombine.low %v241_v32, %v248_v36  ;;  %v291_v40 = vcombine.low %v281_v35, %v288_v38  ;;  %s3329_s10 = sld [smem:[#allocation5 + $0x5b]] }
  0x5b   : > { %s3344_s16 = sld [smem:[#allocation5 + $0x5f]] }
  0x5c   : > { %v258_v41 = vrot.slane %v251_v39, %v257_v37  ;;  %v298_v42 = vrot.slane %v291_v40, %v257_v37  ;;  %s3363_s19 = sld [smem:[#allocation5 + $0x29]] }
  0x5d   : > { %s3411_s24 = sld [smem:[#allocation5]] }
  0x5e   : > { %v265_v45 = vrot.slane %v258_v41, %v257_v37  ;;  %v305_v46 = vrot.slane %v298_v42, %v257_v37 }
  0x60   : > { %v267_v47 = vadd.f32 %v265_v45, %v230_v43  ;;  %v307_v48 = vmax.f32 %v274_v44, %v305_v46 }
  0x62   : > { %272 = vst.msk [vmem:[#allocation2] ss:$2 sm:$0x3] %vm2855_vm1, %v267_v47  ;;  %308 = vst.msk [vmem:[#allocation2 + $0x1] ss:$2 sm:$0x3] %vm2855_vm1, %v307_v48 }
  0x69   : > { %v2320_v49 = vld [vmem:[#allocation2] ss:$0 sm:$0xff]  ;;  %v2329_v50 = vld [vmem:[#allocation2 + $0x2] ss:$0 sm:$0xff]  ;;  %v2335_v51 = vld [vmem:[#allocation2 + $0x1] ss:$0 sm:$0xff] }
  0x6a   : > { %349 = vrot.lane.b32.xlu1 %v2320_v49, %s2690_s21  ;;  %329 = vrot.lane.b32.xlu0 %v2320_v49, %s2691_s23  ;;  %v2345_v52 = vld [vmem:[#allocation2 + $0x3] ss:$0 sm:$0xff] }
  0x6e   : > { %439 = vrot.lane.b32.xlu1 %v2329_v50, %s2692_s28  ;;  %339 = vrot.lane.b32.xlu0 %v2320_v49, %s2693_s13 }
  0x72   : > { %459 = vrot.lane.b32.xlu1 %v2329_v50, %s2694_s1  ;;  %449 = vrot.lane.b32.xlu0 %v2329_v50, %s2695_s20 }
  0x76   : > { %359 = vrot.lane.b32.xlu1 %v2320_v49, %s2692_s28  ;;  %318 = vrot.lane.b32.xlu0 %v2320_v49, %s4070_s25 }
  0x7a   : > { %379 = vrot.lane.b32.xlu1 %v2320_v49, %s2694_s1  ;;  %369 = vrot.lane.b32.xlu0 %v2320_v49, %s2695_s20 }
  0x7e   : > { %399 = vrot.lane.b32.xlu1 %v2329_v50, %s4070_s25  ;;  %389 = vrot.lane.b32.xlu0 %v2320_v49, %s2697_s26 }
  0x82   : > { %419 = vrot.lane.b32.xlu1 %v2329_v50, %s2693_s13  ;;  %409 = vrot.lane.b32.xlu0 %v2329_v50, %s2691_s23 }
  0x86   : > { %469 = vrot.lane.b32.xlu1 %v2329_v50, %s2697_s26  ;;  %429 = vrot.lane.b32.xlu0 %v2329_v50, %s2690_s21 }
  0x8a   : > { %500 = vrot.lane.b32.xlu1 %v2335_v51, %s2693_s13  ;;  %490 = vrot.lane.b32.xlu0 %v2335_v51, %s2691_s23 }
  0x8e   : > { %600 = vrot.lane.b32.xlu1 %v2345_v52, %s2692_s28  ;;  %510 = vrot.lane.b32.xlu0 %v2335_v51, %s2690_s21 }
  0x92   : > { %620 = vrot.lane.b32.xlu1 %v2345_v52, %s2694_s1  ;;  %610 = vrot.lane.b32.xlu0 %v2345_v52, %s2695_s20 }
  0x96   : > { %520 = vrot.lane.b32.xlu1 %v2335_v51, %s2692_s28  ;;  %479 = vrot.lane.b32.xlu0 %v2335_v51, %s4070_s25  ;;  %s3002_s28 = sld [smem:[#allocation5 + $0x37]] }
  0x9a   : > { %540 = vrot.lane.b32.xlu1 %v2335_v51, %s2694_s1  ;;  %530 = vrot.lane.b32.xlu0 %v2335_v51, %s2695_s20  ;;  %s3007_s1 = sld [smem:[#allocation5 + $0x35]] }
  0x9b   : > { %s3011_s20 = sld [smem:[#allocation5 + $0x7]] }
  0x9e   : > { %560 = vrot.lane.b32.xlu1 %v2345_v52, %s4070_s25  ;;  %550 = vrot.lane.b32.xlu0 %v2335_v51, %s2697_s26 }
  0xa2   : > { %580 = vrot.lane.b32.xlu1 %v2345_v52, %s2693_s13  ;;  %570 = vrot.lane.b32.xlu0 %v2345_v52, %s2691_s23  ;;  %s2998_s23 = sld [smem:[#allocation5 + $0x31]] }
  0xa3   : > { %s3004_s13 = sld [smem:[#allocation5 + $0x32]] }
  0xa6   : > { %630 = vrot.lane.b32.xlu1 %v2345_v52, %s2697_s26  ;;  %590 = vrot.lane.b32.xlu0 %v2345_v52, %s2690_s21  ;;  %s2996_s21 = sld [smem:[#allocation5 + $0x33]]  ;;  %s4068_s26 = smov 1  }
  0xdc   : > { %v350_v53 = vpop.permute.xlu1 %349  ;;  %v330_v54 = vpop.permute.xlu0 %329 }
  0xdd   : > { %352 = vst.msk [vmem:[#allocation3 + $0x6] sm:$0x1] %vm321_vm2, %v350_v53  ;;  %332 = vst.msk [vmem:[#allocation3 + $0x4] sm:$0x1] %vm321_vm2, %v330_v54 }
  0xe0   : > { %v440_v55 = vpop.permute.xlu1 %439  ;;  %v340_v56 = vpop.permute.xlu0 %339 }
  0xe1   : > { %442 = vst.msk [vmem:[#allocation3 + $0xf] sm:$0x1] %vm321_vm2, %v440_v55  ;;  %342 = vst.msk [vmem:[#allocation3 + $0x5] sm:$0x1] %vm321_vm2, %v340_v56 }
  0xe4   : > { %v634_v57 = vld [vmem:[#allocation3 + $0x6] sm:$0x1]  ;;  %v650_v58 = vld [vmem:[#allocation3 + $0x4] sm:$0x1]  ;;  %v460_v59 = vpop.permute.xlu1 %459  ;;  %v450_v60 = vpop.permute.xlu0 %449 }
  0xe5   : > { %636 = vst.msk [vmem:[#allocation3] sm:$0x1] %vm321_vm2, %v634_v57  ;;  %652 = vst.msk [vmem:[#allocation3 + $0x2] sm:$0x1] %vm321_vm2, %v650_v58 }
  0xe6   : > { %462 = vst.msk [vmem:[#allocation3 + $0x11] sm:$0x1] %vm321_vm2, %v460_v59  ;;  %452 = vst.msk [vmem:[#allocation3 + $0x10] sm:$0x1] %vm321_vm2, %v450_v60 }
  0xe8   : > { %v654_v61 = vld [vmem:[#allocation3 + $0xf] sm:$0x1]  ;;  %v642_v62 = vld [vmem:[#allocation3 + $0x5] sm:$0x1]  ;;  %v360_v63 = vpop.permute.xlu1 %359  ;;  %v319_v0 = vpop.permute.xlu0 %318 }
  0xe9   : > { %656 = vst.msk [vmem:[#allocation3 + $0x15] sm:$0x1] %vm321_vm2, %v654_v61  ;;  %644 = vst.msk [vmem:[#allocation3 + $0x1] sm:$0x1] %vm321_vm2, %v642_v62 }
  0xea   : > { %362 = vst.msk [vmem:[#allocation3 + $0x7] sm:$0x1] %vm321_vm2, %v360_v63  ;;  %322 = vst.msk [vmem:[#allocation3 + $0x3] sm:$0x1] %vm321_vm2, %v319_v0 }
  0xec   : > { %v380_v3 = vpop.permute.xlu1 %379  ;;  %v370_v4 = vpop.permute.xlu0 %369 }
  0xed   : > { %v638_v1 = vld [vmem:[#allocation3 + $0x11] sm:$0x1]  ;;  %v646_v2 = vld [vmem:[#allocation3 + $0x10] sm:$0x1]  ;;  %382 = vst.msk [vmem:[#allocation3 + $0x9] sm:$0x1] %vm321_vm2, %v380_v3 }
  0xee   : > { %640 = vst.msk [vmem:[#allocation3 + $0x13] sm:$0x1] %vm321_vm2, %v638_v1  ;;  %648 = vst.msk [vmem:[#allocation3 + $0x14] sm:$0x1] %vm321_vm2, %v646_v2 }
  0xef   : > { %372 = vst.msk [vmem:[#allocation3 + $0x8] sm:$0x1] %vm321_vm2, %v370_v4 }
  0xf0   : > { %v400_v5 = vpop.permute.xlu1 %399  ;;  %v390_v6 = vpop.permute.xlu0 %389 }
  0xf1   : > { %v658_v7 = vld [vmem:[#allocation3] sm:$0xff]  ;;  %402 = vst.msk [vmem:[#allocation3 + $0xb] sm:$0x1] %vm321_vm2, %v400_v5  ;;  %392 = vst.msk [vmem:[#allocation3 + $0xa] sm:$0x1] %vm321_vm2, %v390_v6 }
  0xf2   : > { %670 = vrot.lane.b32.xlu0 %v658_v7, %s4062_s27 }
  0xf4   : > { %v420_v8 = vpop.permute.xlu1 %419  ;;  %v410_v9 = vpop.permute.xlu0 %409 }
  0xf5   : > { %422 = vst.msk [vmem:[#allocation3 + $0xd] sm:$0x1] %vm321_vm2, %v420_v8  ;;  %412 = vst.msk [vmem:[#allocation3 + $0xc] sm:$0x1] %vm321_vm2, %v410_v9 }
  0xf8   : > { %v470_v10 = vpop.permute.xlu1 %469  ;;  %v430_v11 = vpop.permute.xlu0 %429 }
  0xf9   : > { %472 = vst.msk [vmem:[#allocation3 + $0x12] sm:$0x1] %vm321_vm2, %v470_v10  ;;  %432 = vst.msk [vmem:[#allocation3 + $0xe] sm:$0x1] %vm321_vm2, %v430_v11 }
  0xfc   : > { %v501_v12 = vpop.permute.xlu1 %500  ;;  %v491_v13 = vpop.permute.xlu0 %490 }
  0xfd   : > { %503 = vst.msk [vmem:[#allocation3 + $0x1d] sm:$0x1] %vm321_vm2, %v501_v12  ;;  %493 = vst.msk [vmem:[#allocation3 + $0x1c] sm:$0x1] %vm321_vm2, %v491_v13 }
 0x100   : > { %v601_v14 = vpop.permute.xlu1 %600  ;;  %v511_v15 = vpop.permute.xlu0 %510  ;;  %v660_v16 = vld [vmem:[#allocation3 + $0x10] sm:$0x3f]  ;;  %v659_v17 = vld [vmem:[#allocation3 + $0x8] sm:$0xff] }
 0x101   : > { %603 = vst.msk [vmem:[#allocation3 + $0x27] sm:$0x1] %vm321_vm2, %v601_v14  ;;  %513 = vst.msk [vmem:[#allocation3 + $0x1e] sm:$0x1] %vm321_vm2, %v511_v15  ;;  %674 = vrot.lane.b32.xlu0 %v660_v16, %s4062_s27  ;;  %672 = vrot.lane.b32.xlu1 %v659_v17, %s4062_s27 }
 0x104   : > { %v643_v18 = vld [vmem:[#allocation3 + $0x1d] sm:$0x1]  ;;  %v651_v19 = vld [vmem:[#allocation3 + $0x1c] sm:$0x1]  ;;  %v621_v20 = vpop.permute.xlu1 %620  ;;  %v611_v21 = vpop.permute.xlu0 %610 }
 0x105   : > { %645 = vst.msk [vmem:[#allocation3 + $0x19] sm:$0x1] %vm321_vm2, %v643_v18  ;;  %653 = vst.msk [vmem:[#allocation3 + $0x1a] sm:$0x1] %vm321_vm2, %v651_v19 }
 0x106   : > { %623 = vst.msk [vmem:[#allocation3 + $0x29] sm:$0x1] %vm321_vm2, %v621_v20  ;;  %613 = vst.msk [vmem:[#allocation3 + $0x28] sm:$0x1] %vm321_vm2, %v611_v21 }
 0x108   : > { %v655_v22 = vld [vmem:[#allocation3 + $0x27] sm:$0x1]  ;;  %v635_v23 = vld [vmem:[#allocation3 + $0x1e] sm:$0x1]  ;;  %v521_v24 = vpop.permute.xlu1 %520  ;;  %v480_v25 = vpop.permute.xlu0 %479 }
 0x109   : > { %657 = vst.msk [vmem:[#allocation3 + $0x2d] sm:$0x1] %vm321_vm2, %v655_v22  ;;  %637 = vst.msk [vmem:[#allocation3 + $0x18] sm:$0x1] %vm321_vm2, %v635_v23 }
 0x10a   : > { %523 = vst.msk [vmem:[#allocation3 + $0x1f] sm:$0x1] %vm321_vm2, %v521_v24  ;;  %483 = vst.msk [vmem:[#allocation3 + $0x1b] sm:$0x1] %vm321_vm2, %v480_v25 }
 0x10c   : > { %v541_v28 = vpop.permute.xlu1 %540  ;;  %v531_v29 = vpop.permute.xlu0 %530 }
 0x10d   : > { %v639_v26 = vld [vmem:[#allocation3 + $0x29] sm:$0x1]  ;;  %v647_v27 = vld [vmem:[#allocation3 + $0x28] sm:$0x1]  ;;  %543 = vst.msk [vmem:[#allocation3 + $0x21] sm:$0x1] %vm321_vm2, %v541_v28 }
 0x10e   : > { %641 = vst.msk [vmem:[#allocation3 + $0x2b] sm:$0x1] %vm321_vm2, %v639_v26  ;;  %649 = vst.msk [vmem:[#allocation3 + $0x2c] sm:$0x1] %vm321_vm2, %v647_v27 }
 0x10f   : > { %533 = vst.msk [vmem:[#allocation3 + $0x20] sm:$0x1] %vm321_vm2, %v531_v29 }
 0x110   : > { %v561_v30 = vpop.permute.xlu1 %560  ;;  %v551_v31 = vpop.permute.xlu0 %550 }
 0x111   : > { %v661_v32 = vld [vmem:[#allocation3 + $0x18] sm:$0xff]  ;;  %563 = vst.msk [vmem:[#allocation3 + $0x23] sm:$0x1] %vm321_vm2, %v561_v30  ;;  %553 = vst.msk [vmem:[#allocation3 + $0x22] sm:$0x1] %vm321_vm2, %v551_v31 }
 0x112   : > { %676 = vrot.lane.b32.xlu1 %v661_v32, %s4062_s27 }
 0x114   : > { %v581_v33 = vpop.permute.xlu1 %580  ;;  %v571_v34 = vpop.permute.xlu0 %570 }
 0x115   : > { %583 = vst.msk [vmem:[#allocation3 + $0x25] sm:$0x1] %vm321_vm2, %v581_v33  ;;  %573 = vst.msk [vmem:[#allocation3 + $0x24] sm:$0x1] %vm321_vm2, %v571_v34 }
 0x118   : > { %v631_v35 = vpop.permute.xlu1 %630  ;;  %v591_v36 = vpop.permute.xlu0 %590 }
 0x119   : > { %633 = vst.msk [vmem:[#allocation3 + $0x2a] sm:$0x1] %vm321_vm2, %v631_v35  ;;  %593 = vst.msk [vmem:[#allocation3 + $0x26] sm:$0x1] %vm321_vm2, %v591_v36  ;;  %v913_v36 = vstv %s2971_s9  ;;  %s4072_s9 = smov 123  }
 0x120   : > { %v663_v37 = vld [vmem:[#allocation3 + $0x28] sm:$0x3f]  ;;  %v662_v38 = vld [vmem:[#allocation3 + $0x20] sm:$0xff] }
 0x121   : > { %680 = vrot.lane.b32.xlu1 %v663_v37, %s4062_s27  ;;  %678 = vrot.lane.b32.xlu0 %v662_v38, %s4062_s27  ;;  %s4078_s27 = smov 125  }
 0x164   : > { %v671_v39 = vpop.permute.xlu0 %670 }
 0x165   : > { %689 = vst.msk [vmem:[#allocation3] sm:$0xff] %vm688_vm3, %v671_v39  ;;  %v927_v39 = vstv %s2974_s11  ;;  %s3080_s11 = sld [smem:[#allocation5 + $0xf]] }
 0x16c   : > { %v696_v40 = vld [vmem:[#allocation3] sm:$0xff] }
 0x16d   : > { %708 = vrot.lane.b32.xlu0 %v696_v40, %s4066_s22 }
 0x173   : > { %v673_v41 = vpop.permute.xlu1 %672  ;;  %v675_v42 = vpop.permute.xlu0 %674 }
 0x174   : > { %690 = vst.msk [vmem:[#allocation3 + $0x8] sm:$0xff] %vm688_vm3, %v673_v41  ;;  %v941_v41 = vstv %s2977_s12  ;;  %s3082_s12 = sld [smem:[#allocation5 + $0x2c]] }
 0x175   : > { %692 = vst.msk [vmem:[#allocation3 + $0x10] sm:$0x3f] %vm691_vm4, %v675_v42 }
 0x17b   : > { %v697_v43 = vld [vmem:[#allocation3 + $0x8] sm:$0xff] }
 0x17c   : > { %v698_v44 = vld [vmem:[#allocation3 + $0x10] sm:$0x3f]  ;;  %710 = vrot.lane.b32.xlu1 %v697_v43, %s4066_s22 }
 0x17d   : > { %712 = vrot.lane.b32.xlu0 %v698_v44, %s4066_s22 }
 0x184   : > { %v677_v45 = vpop.permute.xlu1 %676 }
 0x185   : > { %693 = vst.msk [vmem:[#allocation3 + $0x18] sm:$0xff] %vm688_vm3, %v677_v45 }
 0x18c   : > { %v699_v46 = vld [vmem:[#allocation3 + $0x18] sm:$0xff] }
 0x18d   : > { %714 = vrot.lane.b32.xlu1 %v699_v46, %s4066_s22 }
 0x193   : > { %v681_v47 = vpop.permute.xlu1 %680  ;;  %v679_v48 = vpop.permute.xlu0 %678 }
 0x194   : > { %695 = vst.msk [vmem:[#allocation3 + $0x28] sm:$0x3f] %vm691_vm4, %v681_v47 }
 0x195   : > { %694 = vst.msk [vmem:[#allocation3 + $0x20] sm:$0xff] %vm688_vm3, %v679_v48 }
 0x19b   : > { %v701_v49 = vld [vmem:[#allocation3 + $0x28] sm:$0x3f] }
 0x19c   : > { %v700_v50 = vld [vmem:[#allocation3 + $0x20] sm:$0xff]  ;;  %718 = vrot.lane.b32.xlu1 %v701_v49, %s4066_s22  ;;  %v1553_v49 = vstv %s2996_s21  ;;  %s3380_s21 = sld [smem:[#allocation5 + $0x2a]] }
 0x19d   : > { %716 = vrot.lane.b32.xlu0 %v700_v50, %s4066_s22  ;;  %v1525_v50 = vstv %s2998_s23  ;;  %s3042_s22 = sld [smem:[#allocation5 + $0xa]] }
 0x19e   : > { %s3497_s23 = sld [smem:[#allocation5 + $0x1d]] }
 0x1df   : > { %v709_v51 = vpop.permute.xlu0 %708 }
 0x1e0   : > { %727 = vst.msk [vmem:[#allocation3] sm:$0xff] %vm726_vm5, %v709_v51 }
 0x1e7   : > { %v734_v52 = vld [vmem:[#allocation3] sm:$0xff] }
 0x1e8   : > { %746 = vrot.lane.b32.xlu0 %v734_v52, %s4076_s29 }
 0x1ee   : > { %v711_v53 = vpop.permute.xlu1 %710 }
 0x1ef   : > { %v713_v54 = vpop.permute.xlu0 %712  ;;  %728 = vst.msk [vmem:[#allocation3 + $0x8] sm:$0xff] %vm726_vm5, %v711_v53  ;;  %v1609_v53 = vstv %s3002_s28  ;;  %s3392_s28 = sld [smem:[#allocation5 + $0x2d]] }
 0x1f0   : > { %730 = vst.msk [vmem:[#allocation3 + $0x10] sm:$0x3f] %vm729_vm6, %v713_v54  ;;  %v4095_v54 = vstv %s3004_s13 }
 0x1f6   : > { %v735_v55 = vld [vmem:[#allocation3 + $0x8] sm:$0xff] }
 0x1f7   : > { %v736_v56 = vld [vmem:[#allocation3 + $0x10] sm:$0x3f]  ;;  %748 = vrot.lane.b32.xlu1 %v735_v55, %s4076_s29 }
 0x1f8   : > { %750 = vrot.lane.b32.xlu0 %v736_v56, %s4076_s29 }
 0x1ff   : > { %v715_v57 = vpop.permute.xlu1 %714 }
 0x200   : > { %731 = vst.msk [vmem:[#allocation3 + $0x18] sm:$0xff] %vm726_vm5, %v715_v57  ;;  %v4092_v57 = vstv %s3007_s1 }
 0x207   : > { %v737_v58 = vld [vmem:[#allocation3 + $0x18] sm:$0xff] }
 0x208   : > { %752 = vrot.lane.b32.xlu1 %v737_v58, %s4076_s29 }
 0x20e   : > { %v719_v59 = vpop.permute.xlu1 %718 }
 0x20f   : > { %v717_v60 = vpop.permute.xlu0 %716  ;;  %733 = vst.msk [vmem:[#allocation3 + $0x28] sm:$0x3f] %vm729_vm6, %v719_v59  ;;  %v957_v59 = vstv %s3011_s20  ;;  %s4074_s20 = smov 127  }
 0x210   : > { %732 = vst.msk [vmem:[#allocation3 + $0x20] sm:$0xff] %vm726_vm5, %v717_v60 }
 0x216   : > { %v739_v61 = vld [vmem:[#allocation3 + $0x28] sm:$0x3f] }
 0x217   : > { %v738_v62 = vld [vmem:[#allocation3 + $0x20] sm:$0xff]  ;;  %756 = vrot.lane.b32.xlu1 %v739_v61, %s4076_s29 }
 0x218   : > { %754 = vrot.lane.b32.xlu0 %v738_v62, %s4076_s29 }
 0x25a   : > { %v747_v63 = vpop.permute.xlu0 %746 }
 0x25b   : > { %765 = vst.msk [vmem:[#allocation3] sm:$0xff] %vm764_vm7, %v747_v63 }
 0x262   : > { %v772_v9 = vld [vmem:[#allocation3] sm:$0xff] }
 0x269   : > { %v749_v0 = vpop.permute.xlu1 %748 }
 0x26a   : > { %v751_v1 = vpop.permute.xlu0 %750  ;;  %766 = vst.msk [vmem:[#allocation3 + $0x8] sm:$0xff] %vm764_vm7, %v749_v0 }
 0x26b   : > { %768 = vst.msk [vmem:[#allocation3 + $0x10] sm:$0x3f] %vm767_vm8, %v751_v1 }
 0x271   : > { %v773_v2 = vld [vmem:[#allocation3 + $0x8] sm:$0xff] }
 0x272   : > { %786 = vrot.lane.b32.xlu1 %v773_v2, %s2701_s4  ;;  %v774_v10 = vld [vmem:[#allocation3 + $0x10] sm:$0x3f] }
 0x27a   : > { %v753_v3 = vpop.permute.xlu1 %752 }
 0x27b   : > { %769 = vst.msk [vmem:[#allocation3 + $0x18] sm:$0xff] %vm764_vm7, %v753_v3 }
 0x282   : > { %v775_v4 = vld [vmem:[#allocation3 + $0x18] sm:$0xff] }
 0x283   : > { %790 = vrot.lane.b32.xlu1 %v775_v4, %s2701_s4 }
 0x289   : > { %v757_v5 = vpop.permute.xlu1 %756 }
 0x28a   : > { %v755_v6 = vpop.permute.xlu0 %754  ;;  %771 = vst.msk [vmem:[#allocation3 + $0x28] sm:$0x3f] %vm767_vm8, %v757_v5 }
 0x28b   : > { %770 = vst.msk [vmem:[#allocation3 + $0x20] sm:$0xff] %vm764_vm7, %v755_v6  ;;  %v999_v6 = vstv %s3042_s22  ;;  %s3075_s22 = sld [smem:[#allocation5 + $0xe]] }
 0x291   : > { %v777_v7 = vld [vmem:[#allocation3 + $0x28] sm:$0x3f] }
 0x292   : > { %v776_v8 = vld [vmem:[#allocation3 + $0x20] sm:$0xff]  ;;  %794 = vrot.lane.b32.xlu1 %v777_v7, %s2701_s4 }
 0x293   : > { %792 = vrot.lane.b32.xlu0 %v776_v8, %s2701_s4 }
 0x297   : > { %784 = vrot.lane.b32.xlu0 %v772_v9, %s2701_s4 }
 0x29b   : > { %788 = vrot.lane.b32.xlu0 %v774_v10, %s2701_s4  ;;  %s3020_s4 = sld [smem:[#allocation5 + $0x36]] }
 0x2a1   : > { %v4090_v62 = vstv %s3020_s4 }
 0x2e4   : > { %v787_v11 = vpop.permute.xlu1 %786 }
 0x2e5   : > { %804 = vst.msk [vmem:[#allocation3 + $0x8] sm:$0xff] %vm802_vm9, %v787_v11 }
 0x2ec   : > { %v811_v12 = vld [vmem:[#allocation3 + $0x8] sm:$0xff] }
 0x2ed   : > { %824 = vrot.lane.b32.xlu1 %v811_v12, %s4064_s5 }
 0x2f5   : > { %v791_v13 = vpop.permute.xlu1 %790 }
 0x2f6   : > { %807 = vst.msk [vmem:[#allocation3 + $0x18] sm:$0xff] %vm802_vm9, %v791_v13 }
 0x2fd   : > { %v813_v14 = vld [vmem:[#allocation3 + $0x18] sm:$0xff] }
 0x2fe   : > { %828 = vrot.lane.b32.xlu1 %v813_v14, %s4064_s5 }
 0x304   : > { %v795_v15 = vpop.permute.xlu1 %794 }
 0x305   : > { %v793_v16 = vpop.permute.xlu0 %792  ;;  %809 = vst.msk [vmem:[#allocation3 + $0x28] sm:$0x3f] %vm805_vm10, %v795_v15 }
 0x306   : > { %808 = vst.msk [vmem:[#allocation3 + $0x20] sm:$0xff] %vm802_vm9, %v793_v16 }
 0x309   : > { %v785_v17 = vpop.permute.xlu0 %784 }
 0x30a   : > { %803 = vst.msk [vmem:[#allocation3] sm:$0xff] %vm802_vm9, %v785_v17 }
 0x30c   : > { %v815_v19 = vld [vmem:[#allocation3 + $0x28] sm:$0x3f] }
 0x30d   : > { %v789_v18 = vpop.permute.xlu0 %788  ;;  %v814_v20 = vld [vmem:[#allocation3 + $0x20] sm:$0xff]  ;;  %832 = vrot.lane.b32.xlu1 %v815_v19, %s4064_s5 }
 0x30e   : > { %806 = vst.msk [vmem:[#allocation3 + $0x10] sm:$0x3f] %vm805_vm10, %v789_v18  ;;  %830 = vrot.lane.b32.xlu0 %v814_v20, %s4064_s5  ;;  %v1057_v20 = vstv %s3075_s22  ;;  %s3105_s22 = sld [smem:[#allocation5 + $0x12]] }
 0x311   : > { %v810_v21 = vld [vmem:[#allocation3] sm:$0xff] }
 0x312   : > { %822 = vrot.lane.b32.xlu0 %v810_v21, %s4064_s5 }
 0x315   : > { %v812_v22 = vld [vmem:[#allocation3 + $0x10] sm:$0x3f] }
 0x316   : > { %826 = vrot.lane.b32.xlu0 %v812_v22, %s4064_s5  ;;  %s3034_s5 = sld [smem:[#allocation5 + $0x9]] }
 0x31c   : > { %v985_v3 = vstv %s3034_s5  ;;  %s3067_s5 = sld [smem:[#allocation5 + $0xd]] }
 0x322   : > { %v1041_v16 = vstv %s3067_s5  ;;  %s3094_s5 = sld [smem:[#allocation5 + $0x11]] }
 0x35f   : > { %v825_v23 = vpop.permute.xlu1 %824 }
 0x360   : > { %842 = vst.msk [vmem:[#allocation3 + $0x8] sm:$0xff] %vm840_vm11, %v825_v23 }
 0x367   : > { %v849_v24 = vld [vmem:[#allocation3 + $0x8] sm:$0xff] }
 0x368   : > { %862 = vrot.lane.b32.xlu1 %v849_v24, %s2703_s6  ;;  %v1071_v24 = vstv %s3080_s11  ;;  %s4124_s11 = smov 126  }
 0x370   : > { %v829_v25 = vpop.permute.xlu1 %828 }
 0x371   : > { %845 = vst.msk [vmem:[#allocation3 + $0x18] sm:$0xff] %vm840_vm11, %v829_v25 }
 0x378   : > { %v851_v26 = vld [vmem:[#allocation3 + $0x18] sm:$0xff] }
 0x379   : > { %866 = vrot.lane.b32.xlu1 %v851_v26, %s2703_s6 }
 0x37f   : > { %v833_v27 = vpop.permute.xlu1 %832 }
 0x380   : > { %v831_v28 = vpop.permute.xlu0 %830  ;;  %847 = vst.msk [vmem:[#allocation3 + $0x28] sm:$0x3f] %vm843_vm12, %v833_v27  ;;  %v4087_v27 = vstv %s3082_s12 }
 0x381   : > { %846 = vst.msk [vmem:[#allocation3 + $0x20] sm:$0xff] %vm840_vm11, %v831_v28 }
 0x384   : > { %v823_v29 = vpop.permute.xlu0 %822 }
 0x385   : > { %841 = vst.msk [vmem:[#allocation3] sm:$0xff] %vm840_vm11, %v823_v29 }
 0x387   : > { %v853_v31 = vld [vmem:[#allocation3 + $0x28] sm:$0x3f] }
 0x388   : > { %v827_v30 = vpop.permute.xlu0 %826  ;;  %v852_v32 = vld [vmem:[#allocation3 + $0x20] sm:$0xff]  ;;  %870 = vrot.lane.b32.xlu1 %v853_v31, %s2703_s6 }
 0x389   : > { %844 = vst.msk [vmem:[#allocation3 + $0x10] sm:$0x3f] %vm843_vm12, %v827_v30  ;;  %868 = vrot.lane.b32.xlu0 %v852_v32, %s2703_s6  ;;  %v1099_v32 = vstv %s3094_s5  ;;  %s3120_s5 = sld [smem:[#allocation5 + $0x15]] }
 0x38c   : > { %v848_v33 = vld [vmem:[#allocation3] sm:$0xff] }
 0x38d   : > { %860 = vrot.lane.b32.xlu0 %v848_v33, %s2703_s6 }
 0x390   : > { %v850_v34 = vld [vmem:[#allocation3 + $0x10] sm:$0x3f] }
 0x391   : > { %864 = vrot.lane.b32.xlu0 %v850_v34, %s2703_s6  ;;  %s3024_s6 = sld [smem:[#allocation5 + $0x8]] }
 0x397   : > { %v971_v63 = vstv %s3024_s6  ;;  %s3059_s6 = sld [smem:[#allocation5 + $0xc]] }
 0x39d   : > { %v1027_v13 = vstv %s3059_s6  ;;  %s4123_s6 = smov 2  }
 0x3da   : > { %v863_v35 = vpop.permute.xlu1 %862 }
 0x3db   : > { %880 = vst.msk [vmem:[#allocation3 + $0x8] sm:$0xff] %vm878_vm13, %v863_v35  ;;  %v1113_v35 = vstv %s3105_s22  ;;  %s3125_s22 = sld [smem:[#allocation5 + $0x16]] }
 0x3e2   : > { %v2979_v37 = vld [vmem:[#allocation3 + $0x8] sm:$0xff] }
 0x3e3   : > { %v915_v38 = vmul.f32 %v913_v36, %v2979_v37  ;;  %v929_v40 = vmul.f32 %v927_v39, %v2979_v37  ;;  %v943_v43 = vmul.f32 %v941_v41, %v2979_v37 }
 0x3e5   : > { %920 = vrot.lane.b32.xlu1 %v915_v38, %s4076_s29 }
 0x3e9   : > { %934 = vrot.lane.b32.xlu1 %v929_v40, %s4076_s29 }
 0x3eb   : > { %v867_v42 = vpop.permute.xlu1 %866 }
 0x3ec   : > { %883 = vst.msk [vmem:[#allocation3 + $0x18] sm:$0xff] %vm878_vm13, %v867_v42 }
 0x3ed   : > { %948 = vrot.lane.b32.xlu1 %v943_v43, %s4076_s29 }
 0x3fa   : > { %v871_v44 = vpop.permute.xlu1 %870 }
 0x3fb   : > { %v869_v45 = vpop.permute.xlu0 %868  ;;  %885 = vst.msk [vmem:[#allocation3 + $0x28] sm:$0x3f] %vm881_vm14, %v871_v44 }
 0x3fc   : > { %884 = vst.msk [vmem:[#allocation3 + $0x20] sm:$0xff] %vm878_vm13, %v869_v45 }
 0x3ff   : > { %v861_v46 = vpop.permute.xlu0 %860 }
 0x400   : > { %879 = vst.msk [vmem:[#allocation3] sm:$0xff] %vm878_vm13, %v861_v46 }
 0x403   : > { %v865_v47 = vpop.permute.xlu0 %864  ;;  %v1524_v48 = vld [vmem:[#allocation3 + $0x20] sm:$0xff] }
 0x404   : > { %882 = vst.msk [vmem:[#allocation3 + $0x10] sm:$0x3f] %vm881_vm14, %v865_v47  ;;  %v1555_v51 = vmul.f32 %v1553_v49, %v1524_v48  ;;  %v1527_v52 = vmul.f32 %v1525_v50, %v1524_v48  ;;  %v1611_v55 = vmul.f32 %v1609_v53, %v1524_v48  ;;  %v1541_v56 = vmul.f32 %v4095_v54, %v1524_v48 }
 0x405   : > { %v1583_v60 = vmul.f32 %v4092_v57, %v1524_v48  ;;  %v1597_v0 = vmul.f32 %v4090_v62, %v1524_v48  ;;  %v1157_v47 = vstv %s3120_s5  ;;  %s3140_s5 = sld [smem:[#allocation5 + $0x19]]  ;;  %v3439_v62 = vld [vmem:[#allocation3 + $0x1c] sm:$0xff]  ;;  %v4098_v57 = vstv %s3411_s24 }
 0x406   : > { %1560 = vrot.lane.b32.xlu1 %v1555_v51, %s4068_s26  ;;  %1532 = vrot.lane.b32.xlu0 %v1527_v52, %s4068_s26  ;;  %v1171_v52 = vstv %s3125_s22  ;;  %s3145_s22 = sld [smem:[#allocation5 + $0x1a]] }
 0x407   : > { %v3046_v2 = vld [vmem:[#allocation3] sm:$0xff] }
 0x408   : > { %v914_v4 = vmul.f32 %v913_v36, %v3046_v2  ;;  %v928_v7 = vmul.f32 %v927_v39, %v3046_v2  ;;  %v942_v10 = vmul.f32 %v941_v41, %v3046_v2  ;;  %v955_v12 = vld [vmem:[#allocation3 + $0x1] sm:$0xff] }
 0x409   : > { %v958_v14 = vmul.f32 %v957_v59, %v955_v12  ;;  %v972_v17 = vmul.f32 %v971_v63, %v955_v12  ;;  %v986_v21 = vmul.f32 %v985_v3, %v955_v12  ;;  %v1000_v25 = vmul.f32 %v999_v6, %v955_v12  ;;  %v1055_v39 = vld [vmem:[#allocation3 + $0x2] sm:$0xff] }
 0x40a   : > { %1616 = vrot.lane.b32.xlu1 %v1611_v55, %s4078_s27  ;;  %1546 = vrot.lane.b32.xlu0 %v1541_v56, %s4068_s26  ;;  %s3051_s26 = sld [smem:[#allocation5 + $0xb]]  ;;  %v1028_v33 = vmul.f32 %v1027_v13, %v955_v12  ;;  %v1042_v36 = vmul.f32 %v1041_v16, %v955_v12  ;;  %v1058_v41 = vmul.f32 %v1057_v20, %v1055_v39 }
 0x40b   : > { %v956_v58 = vld [vmem:[#allocation3 + $0x9] sm:$0xff]  ;;  %v1072_v44 = vmul.f32 %v1071_v24, %v1055_v39  ;;  %v1100_v55 = vmul.f32 %v1099_v32, %v1055_v39 }
 0x40c   : > { %v959_v61 = vmul.f32 %v957_v59, %v956_v58  ;;  %v973_v1 = vmul.f32 %v971_v63, %v956_v58  ;;  %v987_v5 = vmul.f32 %v985_v3, %v956_v58  ;;  %v1001_v8 = vmul.f32 %v999_v6, %v956_v58  ;;  %v1056_v19 = vld [vmem:[#allocation3 + $0xa] sm:$0xff] }
 0x40d   : > { %v1029_v15 = vmul.f32 %v1027_v13, %v956_v58  ;;  %v1043_v18 = vmul.f32 %v1041_v16, %v956_v58  ;;  %v1059_v22 = vmul.f32 %v1057_v20, %v1056_v19  ;;  %v3091_v23 = vld [vmem:[#allocation3 + $0xe] sm:$0xff]  ;;  %v1073_v26 = vmul.f32 %v1071_v24, %v1056_v19 }
 0x40e   : > { %1588 = vrot.lane.b32.xlu0 %v1583_v60, %s4078_s27  ;;  %964 = vrot.lane.b32.xlu1 %v959_v61, %s4070_s25  ;;  %v3100_v28 = vmul.f32 %v4087_v27, %v3091_v23  ;;  %v1101_v34 = vmul.f32 %v1099_v32, %v1056_v19  ;;  %v1115_v38 = vmul.f32 %v1113_v35, %v1056_v19  ;;  %v1156_v46 = vld [vmem:[#allocation3 + $0xb] sm:$0xff]  ;;  %v1227_v6 = vstv %s3145_s22  ;;  %s3167_s22 = sld [smem:[#allocation5 + $0x22]] }
 0x40f   : > { %v1159_v51 = vmul.f32 %v1157_v47, %v1156_v46  ;;  %v1173_v56 = vmul.f32 %v1171_v52, %v1156_v46  ;;  %v1114_v59 = vmul.f32 %v1113_v35, %v1055_v39  ;;  %v3184_v24 = vld [vmem:[#allocation3 + $0xd] sm:$0xff] }
 0x410   : > { %v1013_v9 = vstv %s3051_s26  ;;  %s3087_s26 = sld [smem:[#allocation5 + $0x10]] }
 0x411   : > { %v1015_v11 = vmul.f32 %v1013_v9, %v956_v58  ;;  %v1014_v30 = vmul.f32 %v1013_v9, %v955_v12  ;;  %v3162_v12 = vld [vmem:[#allocation3 + $0xc] sm:$0xff] }
 0x412   : > { %1602 = vrot.lane.b32.xlu0 %v1597_v0, %s4078_s27  ;;  %978 = vrot.lane.b32.xlu1 %v973_v1, %s4074_s20  ;;  %v1213_v1 = vstv %s3140_s5  ;;  %s3160_s5 = sld [smem:[#allocation5 + $0x21]] }
 0x416   : > { %918 = vrot.lane.b32.xlu0 %v914_v4, %s4076_s29  ;;  %992 = vrot.lane.b32.xlu1 %v987_v5, %s4074_s20  ;;  %v1085_v29 = vstv %s3087_s26  ;;  %s3115_s26 = sld [smem:[#allocation5 + $0x14]]  ;;  %v1215_v4 = vmul.f32 %v1213_v1, %v1156_v46  ;;  %v1155_v5 = vld [vmem:[#allocation3 + $0x3] sm:$0xff] }
 0x417   : > { %v1087_v31 = vmul.f32 %v1085_v29, %v1056_v19  ;;  %v1086_v48 = vmul.f32 %v1085_v29, %v1055_v39 }
 0x418   : > { %v1295_v16 = vstv %s3160_s5  ;;  %s3189_s5 = sld [smem:[#allocation5 + $0x25]] }
 0x41a   : > { %932 = vrot.lane.b32.xlu0 %v928_v7, %s4076_s29  ;;  %1006 = vrot.lane.b32.xlu1 %v1001_v8, %s4074_s20  ;;  %v1158_v7 = vmul.f32 %v1157_v47, %v1155_v5  ;;  %v1229_v8 = vmul.f32 %v1227_v6, %v1156_v46 }
 0x41c   : > { %v1141_v43 = vstv %s3115_s26  ;;  %s3135_s26 = sld [smem:[#allocation5 + $0x18]] }
 0x41d   : > { %v1143_v45 = vmul.f32 %v1141_v43, %v1056_v19  ;;  %v1142_v3 = vmul.f32 %v1141_v43, %v1055_v39 }
 0x41e   : > { %946 = vrot.lane.b32.xlu0 %v942_v10, %s4076_s29  ;;  %1020 = vrot.lane.b32.xlu1 %v1015_v11, %s4074_s20  ;;  %v1172_v10 = vmul.f32 %v1171_v52, %v1155_v5  ;;  %v1353_v35 = vstv %s3189_s5  ;;  %s3225_s5 = sld [smem:[#allocation5 + $0x2b]]  ;;  %v3233_v52 = vld [vmem:[#allocation3 + $0x5] sm:$0xff] }
 0x422   : > { %962 = vrot.lane.b32.xlu0 %v958_v14, %s4070_s25  ;;  %1034 = vrot.lane.b32.xlu1 %v1029_v15, %s4072_s9  ;;  %s3110_s25 = sld [smem:[#allocation5 + $0x13]]  ;;  %v1199_v61 = vstv %s3135_s26 }
 0x423   : > { %v1201_v0 = vmul.f32 %v1199_v61, %v1156_v46  ;;  %s3155_s26 = sld [smem:[#allocation5 + $0x20]] }
 0x426   : > { %976 = vrot.lane.b32.xlu0 %v972_v17, %s4074_s20  ;;  %1048 = vrot.lane.b32.xlu1 %v1043_v18, %s4072_s9  ;;  %v1200_v17 = vmul.f32 %v1199_v61, %v1155_v5  ;;  %v1297_v18 = vmul.f32 %v1295_v16, %v3162_v12  ;;  %v1439_v61 = vstv %s3225_s5  ;;  %s3271_s5 = sld [smem:[#allocation5 + $0x47]] }
 0x428   : > { %v1127_v40 = vstv %s3110_s25  ;;  %s3130_s25 = sld [smem:[#allocation5 + $0x17]] }
 0x429   : > { %v1129_v42 = vmul.f32 %v1127_v40, %v1056_v19  ;;  %v1128_v63 = vmul.f32 %v1127_v40, %v1055_v39  ;;  %v1281_v13 = vstv %s3155_s26  ;;  %v1309_v19 = vstv %s3167_s22  ;;  %s3179_s26 = sld [smem:[#allocation5 + $0x24]]  ;;  %s4127_s22 = smov 3  }
 0x42a   : > { %990 = vrot.lane.b32.xlu0 %v986_v21, %s4074_s20  ;;  %1064 = vrot.lane.b32.xlu1 %v1059_v22, %s4123_s6  ;;  %v1283_v15 = vmul.f32 %v1281_v13, %v3162_v12  ;;  %v1214_v21 = vmul.f32 %v1213_v1, %v1155_v5  ;;  %v1311_v22 = vmul.f32 %v1309_v19, %v3162_v12  ;;  %v1367_v40 = vstv %s3197_s0  ;;  %s3238_s0 = sld [smem:[#allocation5 + $0x2f]] }
 0x42b   : > { %v1355_v39 = vmul.f32 %v1353_v35, %v3184_v24 }
 0x42e   : > { %1004 = vrot.lane.b32.xlu0 %v1000_v25, %s4074_s20  ;;  %1078 = vrot.lane.b32.xlu1 %v1073_v26, %s4123_s6  ;;  %v1185_v58 = vstv %s3130_s25  ;;  %s3150_s25 = sld [smem:[#allocation5 + $0x1b]]  ;;  %v1228_v26 = vmul.f32 %v1227_v6, %v1155_v5 }
 0x42f   : > { %v1187_v60 = vmul.f32 %v1185_v58, %v1156_v46  ;;  %v1186_v14 = vmul.f32 %v1185_v58, %v1155_v5 }
 0x432   : > { %1018 = vrot.lane.b32.xlu0 %v1014_v30, %s4074_s20  ;;  %1092 = vrot.lane.b32.xlu1 %v1087_v31, %s4124_s11  ;;  %s4126_s20 = smov 1   ;;  %v1339_v31 = vstv %s3179_s26  ;;  %s4129_s26 = smov 124  }
 0x433   : > { %v1340_v1 = vmul.f32 %v1339_v31, %v3233_v52 }
 0x434   : > { %v1241_v9 = vstv %s3150_s25  ;;  %s3173_s25 = sld [smem:[#allocation5 + $0x23]] }
 0x435   : > { %v1243_v11 = vmul.f32 %v1241_v9, %v1156_v46  ;;  %v1242_v32 = vmul.f32 %v1241_v9, %v1155_v5  ;;  %v3268_v9 = vld [vmem:[#allocation3 + $0x22] sm:$0xff] }
 0x436   : > { %1032 = vrot.lane.b32.xlu0 %v1028_v33, %s4072_s9  ;;  %1106 = vrot.lane.b32.xlu1 %v1101_v34, %s4124_s11  ;;  %v1341_v33 = vmul.f32 %v1339_v31, %v3184_v24  ;;  %v3200_v34 = vld [vmem:[#allocation3 + $0x4] sm:$0xff] }
 0x437   : > { %v1296_v43 = vmul.f32 %v1295_v16, %v3200_v34 }
 0x43a   : > { %1046 = vrot.lane.b32.xlu0 %v1042_v36, %s4072_s9  ;;  %1120 = vrot.lane.b32.xlu1 %v1115_v38, %s4124_s11  ;;  %s4125_s9 = smov 122   ;;  %v1325_v25 = vstv %s3173_s25  ;;  %s4128_s25 = smov 127   ;;  %v1282_v38 = vmul.f32 %v1281_v13, %v3200_v34 }
 0x43b   : > { %v1327_v29 = vmul.f32 %v1325_v25, %v3184_v24 }
 0x43e   : > { %1062 = vrot.lane.b32.xlu0 %v1058_v41, %s4123_s6  ;;  %1134 = vrot.lane.b32.xlu1 %v1129_v42, %s4124_s11 }
 0x442   : > { %1076 = vrot.lane.b32.xlu0 %v1072_v44, %s4123_s6  ;;  %1148 = vrot.lane.b32.xlu1 %v1143_v45, %s4125_s9  ;;  %v1369_v44 = vmul.f32 %v1367_v40, %v3184_v24 }
 0x446   : > { %1090 = vrot.lane.b32.xlu0 %v1086_v48, %s4124_s11  ;;  %1164 = vrot.lane.b32.xlu1 %v1159_v51, %s4126_s20  ;;  %v1310_v48 = vmul.f32 %v1309_v19, %v3200_v34 }
 0x44a   : > { %1104 = vrot.lane.b32.xlu0 %v1100_v55, %s4124_s11  ;;  %1178 = vrot.lane.b32.xlu1 %v1173_v56, %s4126_s20  ;;  %v1395_v55 = vstv %s3214_s2  ;;  %s3257_s2 = sld [smem:[#allocation5 + $0x43]] }
 0x44b   : > { %v1396_v31 = vmul.f32 %v1395_v55, %v3233_v52 }
 0x44e   : > { %1118 = vrot.lane.b32.xlu0 %v1114_v59, %s4124_s11  ;;  %1192 = vrot.lane.b32.xlu1 %v1187_v60, %s4126_s20  ;;  %v1326_v59 = vmul.f32 %v1325_v25, %v3233_v52  ;;  %v1397_v60 = vmul.f32 %v1395_v55, %v3184_v24  ;;  %v1807_v25 = vstv %s3271_s5  ;;  %s3443_s5 = sld [smem:[#allocation5 + $0x2]] }
 0x450   : > { %v1749_v16 = vstv %s3257_s2  ;;  %s3427_s2 = sld [smem:[#allocation5 + $0x1]] }
 0x452   : > { %1132 = vrot.lane.b32.xlu0 %v1128_v63, %s4124_s11  ;;  %1206 = vrot.lane.b32.xlu1 %v1201_v0, %s4078_s27 }
 0x456   : > { %1146 = vrot.lane.b32.xlu0 %v1142_v3, %s4125_s9  ;;  %1220 = vrot.lane.b32.xlu1 %v1215_v4, %s4078_s27  ;;  %v1441_v3 = vmul.f32 %v1439_v61, %v3091_v23  ;;  %v1495_v4 = vstv %s3238_s0  ;;  %s3284_s0 = sld [smem:[#allocation5 + $0x4b]]  ;;  %v4099_v54 = vstv %s3427_s2 }
 0x457   : > { %v3181_v20 = vpop.permute.xlu1 %920 }
 0x45a   : > { %1162 = vrot.lane.b32.xlu0 %v1158_v7, %s4126_s20  ;;  %1234 = vrot.lane.b32.xlu1 %v1229_v8, %s4078_s27  ;;  %v1354_v7 = vmul.f32 %v1353_v35, %v3233_v52  ;;  %v1497_v8 = vmul.f32 %v1495_v4, %v3091_v23 }
 0x45b   : > { %v3192_v30 = vpop.permute.xlu1 %934 }
 0x45c   : > { %v1863_v35 = vstv %s3284_s0  ;;  %s3458_s0 = sld [smem:[#allocation5 + $0x3]] }
 0x45e   : > { %1176 = vrot.lane.b32.xlu0 %v1172_v10, %s4126_s20  ;;  %1248 = vrot.lane.b32.xlu1 %v1243_v11, %s4078_s27 }
 0x45f   : > { %v3207_v36 = vpop.permute.xlu1 %948 }
 0x462   : > { %1190 = vrot.lane.b32.xlu0 %v1186_v14, %s4126_s20  ;;  %1288 = vrot.lane.b32.xlu1 %v1283_v15, %s4076_s29  ;;  %v1368_v14 = vmul.f32 %v1367_v40, %v3233_v52 }
 0x466   : > { %1204 = vrot.lane.b32.xlu0 %v1200_v17, %s4078_s27  ;;  %1302 = vrot.lane.b32.xlu1 %v1297_v18, %s4076_s29 }
 0x46a   : > { %1218 = vrot.lane.b32.xlu0 %v1214_v21, %s4078_s27  ;;  %1316 = vrot.lane.b32.xlu1 %v1311_v22, %s4076_s29  ;;  %s3205_s29 = sld [smem:[#allocation5 + $0x27]]  ;;  %v1751_v21 = vmul.f32 %v1749_v16, %v3268_v9  ;;  %v3296_v22 = vld [vmem:[#allocation3 + $0x23] sm:$0xff] }
 0x46e   : > { %1232 = vrot.lane.b32.xlu0 %v1228_v26, %s4078_s27  ;;  %1332 = vrot.lane.b32.xlu1 %v1327_v29, %s4127_s22 }
 0x470   : > { %v1381_v45 = vstv %s3205_s29  ;;  %s3246_s29 = sld [smem:[#allocation5 + $0x3f]] }
 0x471   : > { %v1383_v51 = vmul.f32 %v1381_v45, %v3184_v24  ;;  %v1382_v19 = vmul.f32 %v1381_v45, %v3233_v52  ;;  %v1921_v45 = vstv %s3299_s30  ;;  %s3472_s30 = sld [smem:[#allocation5 + $0x1c]] }
 0x472   : > { %1246 = vrot.lane.b32.xlu0 %v1242_v32, %s4078_s27  ;;  %1346 = vrot.lane.b32.xlu1 %v1341_v33, %s4128_s25  ;;  %s4132_s27 = smov 123   ;;  %v1809_v32 = vmul.f32 %v1807_v25, %v3296_v22  ;;  %v3311_v33 = vld [vmem:[#allocation3 + $0x6] sm:$0xff] }
 0x473   : > { %v1440_v40 = vmul.f32 %v1439_v61, %v3311_v33  ;;  %v1496_v55 = vmul.f32 %v1495_v4, %v3311_v33  ;;  %v4096_v61 = vstv %s3314_s18 }
 0x476   : > { %1286 = vrot.lane.b32.xlu0 %v1282_v38, %s4129_s26  ;;  %1360 = vrot.lane.b32.xlu1 %v1355_v39, %s4128_s25  ;;  %v1693_v10 = vstv %s3246_s29  ;;  %s3409_s29 = sld [smem:[#allocation5 + $0x2e]] }
 0x477   : > { %v1695_v15 = vmul.f32 %v1693_v10, %v3268_v9 }
 0x478   : > { %v3216_v41 = vpop.permute.xlu1 %1560  ;;  %v3218_v42 = vpop.permute.xlu0 %1532 }
 0x47a   : > { %1300 = vrot.lane.b32.xlu0 %v1296_v43, %s4129_s26  ;;  %1374 = vrot.lane.b32.xlu1 %v1369_v44, %s4128_s25  ;;  %v1865_v43 = vmul.f32 %v1863_v35, %v3296_v22  ;;  %v3326_v44 = vld [vmem:[#allocation3 + $0x24] sm:$0xff] }
 0x47c   : > { %v3227_v46 = vpop.permute.xlu1 %1616  ;;  %v3229_v47 = vpop.permute.xlu0 %1546 }
 0x47d   : > { %4130 = vst [vmem:[#allocation21_spill] sm:$0xff] %v3229_v47 }
 0x47e   : > { %1314 = vrot.lane.b32.xlu0 %v1310_v48, %s4129_s26  ;;  %1388 = vrot.lane.b32.xlu1 %v1383_v51, %s4128_s25 }
 0x480   : > { %v3240_v56 = vpop.permute.xlu1 %964  ;;  %v3242_v58 = vpop.permute.xlu0 %1588 }
 0x481   : > { %4131 = vst [vmem:[#allocation22_spill] sm:$0xff] %v3242_v58  ;;  %v4138_v58 = vstv %s3007_s1  ;;  %s3546_s1 = sld [smem:[#allocation5 + $0x1f]] }
 0x482   : > { %1330 = vrot.lane.b32.xlu0 %v1326_v59, %s4127_s22  ;;  %1402 = vrot.lane.b32.xlu1 %v1397_v60, %s4132_s27  ;;  %v1923_v59 = vmul.f32 %v1921_v45, %v3326_v44  ;;  %v3341_v60 = vld [vmem:[#allocation3 + $0x18] sm:$0xff] }
 0x484   : > { %v3251_v63 = vpop.permute.xlu1 %978  ;;  %v3253_v0 = vpop.permute.xlu0 %1602 }
 0x485   : > { %4133 = vst [vmem:[#allocation23_spill] sm:$0xff] %v3253_v0  ;;  %v4136_v0 = vstv %s3004_s13  ;;  %s3523_s13 = sld [smem:[#allocation5 + $0x1e]] }
 0x486   : > { %1344 = vrot.lane.b32.xlu0 %v1340_v1, %s4128_s25  ;;  %1446 = vrot.lane.b32.xlu1 %v1441_v3, %s4123_s6  ;;  %v1554_v1 = vmul.f32 %v1553_v49, %v3341_v60  ;;  %v1610_v49 = vmul.f32 %v1609_v53, %v3341_v60  ;;  %v1540_v47 = vmul.f32 %v4136_v0, %v3341_v60 }
 0x488   : > { %v3262_v5 = vpop.permute.xlu1 %992  ;;  %v3264_v6 = vpop.permute.xlu0 %918 }
 0x48a   : > { %1358 = vrot.lane.b32.xlu0 %v1354_v7, %s4128_s25  ;;  %1502 = vrot.lane.b32.xlu1 %v1497_v8, %s4124_s11  ;;  %v1979_v7 = vmul.f32 %v4096_v61, %v3326_v44  ;;  %v3358_v8 = vld [vmem:[#allocation3 + $0x26] sm:$0xff] }
 0x48c   : > { %v3275_v11 = vpop.permute.xlu1 %1006  ;;  %v3277_v13 = vpop.permute.xlu0 %932 }
 0x48e   : > { %1372 = vrot.lane.b32.xlu0 %v1368_v14, %s4128_s25  ;;  %1700 = vrot.lane.b32.xlu1 %v1695_v15, %s4127_s22  ;;  %v4094_v14 = vstv %s3329_s10 }
 0x490   : > { %v3288_v17 = vpop.permute.xlu1 %1020  ;;  %v3290_v18 = vpop.permute.xlu0 %946 }
 0x492   : > { %1386 = vrot.lane.b32.xlu0 %v1382_v19, %s4128_s25  ;;  %1756 = vrot.lane.b32.xlu1 %v1751_v21, %s4128_s25  ;;  %v2063_v21 = vmul.f32 %v4094_v14, %v3358_v8  ;;  %v891_v14 = vmul.f32 %v4098_v57, %v2979_v37 }
 0x494   : > { %v3303_v26 = vpop.permute.xlu1 %1034  ;;  %v3305_v29 = vpop.permute.xlu0 %962 }
 0x496   : > { %1400 = vrot.lane.b32.xlu0 %v1396_v31, %s4132_s27  ;;  %1814 = vrot.lane.b32.xlu1 %v1809_v32, %s4123_s6  ;;  %v3375_v31 = vld [vmem:[#allocation3 + $0x1a] sm:$0xff]  ;;  %v4091_v32 = vstv %s3344_s16 }
 0x498   : > { %v3318_v38 = vpop.permute.xlu1 %1048  ;;  %v3320_v39 = vpop.permute.xlu0 %976 }
 0x49a   : > { %1444 = vrot.lane.b32.xlu0 %v1440_v40, %s4123_s6  ;;  %1870 = vrot.lane.b32.xlu1 %v1865_v43, %s4124_s11  ;;  %v1694_v43 = vmul.f32 %v1693_v10, %v3375_v31  ;;  %v1750_v10 = vmul.f32 %v1749_v16, %v3375_v31 }
 0x49c   : > { %v3333_v48 = vpop.permute.xlu1 %1064  ;;  %v3335_v51 = vpop.permute.xlu0 %990 }
 0x49e   : > { %1500 = vrot.lane.b32.xlu0 %v1496_v55, %s4124_s11  ;;  %1928 = vrot.lane.b32.xlu1 %v1923_v59, %s4126_s20  ;;  %v2119_v55 = vmul.f32 %v4091_v32, %v3358_v8  ;;  %v4088_v59 = vstv %s3363_s19  ;;  %v4097_v32 = vstv %s3409_s29 }
 0x4a0   : > { %v3351_v3 = vpop.permute.xlu1 %1078  ;;  %v3353_v4 = vpop.permute.xlu0 %1004 }
 0x4a2   : > { %1558 = vrot.lane.b32.xlu0 %v1554_v1, %s4126_s20  ;;  %1984 = vrot.lane.b32.xlu1 %v1979_v7, %s4134_s15 }
 0x4a4   : > { %v3368_v15 = vpop.permute.xlu1 %1092  ;;  %v3370_v19 = vpop.permute.xlu0 %1018 }
 0x4a6   : > { %1614 = vrot.lane.b32.xlu0 %v1610_v49, %s4134_s15  ;;  %2068 = vrot.lane.b32.xlu1 %v2063_v21, %s4127_s22  ;;  %v1411_v49 = vmul.f32 %v4088_v59, %v3184_v24  ;;  %v3407_v21 = vld [vmem:[#allocation3 + $0x1b] sm:$0xff]  ;;  %v4093_v59 = vstv %s3392_s28 }
 0x4a7   : > { %v1808_v24 = vmul.f32 %v1807_v25, %v3407_v21  ;;  %v1864_v25 = vmul.f32 %v1863_v35, %v3407_v21  ;;  %v1922_v35 = vmul.f32 %v1921_v45, %v3439_v62  ;;  %v1526_v45 = vmul.f32 %v1525_v50, %v3341_v60 }
 0x4a8   : > { %v3382_v53 = vpop.permute.xlu1 %1106  ;;  %v3384_v40 = vpop.permute.xlu0 %1032 }
 0x4aa   : > { %1698 = vrot.lane.b32.xlu0 %v1694_v43, %s4127_s22  ;;  %2124 = vrot.lane.b32.xlu1 %v2119_v55, %s4128_s25  ;;  %v4089_v43 = vstv %s3380_s21 }
 0x4ab   : > { %v1427_v27 = vmul.f32 %v4089_v43, %v3091_v23  ;;  %v1468_v43 = vmul.f32 %v4093_v59, %v3311_v33  ;;  %v1482_v59 = vmul.f32 %v4097_v32, %v3311_v33  ;;  %v4135_v32 = vstv %s3314_s18  ;;  %s3485_s18 = sld [smem:[#allocation5 + $0x3d]] }
 0x4ac   : > { %v3397_v1 = vpop.permute.xlu1 %1120  ;;  %v3399_v7 = vpop.permute.xlu0 %1046  ;;  %v1978_v57 = vmul.f32 %v4135_v32, %v3439_v62 }
 0x4ae   : > { %1754 = vrot.lane.b32.xlu0 %v1750_v10, %s4128_s25  ;;  %1416 = vrot.lane.b32.xlu1 %v1411_v49, %s4132_s27 }
 0x4b0   : > { %v3416_v55 = vpop.permute.xlu1 %1134  ;;  %v3418_v16 = vpop.permute.xlu0 %1062 }
 0x4b2   : > { %1812 = vrot.lane.b32.xlu0 %v1808_v24, %s4123_s6  ;;  %1432 = vrot.lane.b32.xlu1 %v1427_v27, %s4123_s6 }
 0x4b4   : > { %v1149_v10 = vpop.permute.xlu1 %1148  ;;  %v3431_v49 = vpop.permute.xlu0 %1076 }
 0x4b6   : > { %1868 = vrot.lane.b32.xlu0 %v1864_v25, %s4124_s11  ;;  %1472 = vrot.lane.b32.xlu1 %v1468_v43, %s4124_s11  ;;  %v925_v43 = vadd.f32 %v3181_v20, %v891_v14  ;;  %v3478_v20 = vld [vmem:[#allocation3 + $0x1e] sm:$0xff]  ;;  %v4100_v14 = vstv %s3443_s5 }
 0x4b8   : > { %v1165_v27 = vpop.permute.xlu1 %1164  ;;  %v3447_v24 = vpop.permute.xlu0 %1090 }
 0x4ba   : > { %1926 = vrot.lane.b32.xlu0 %v1922_v35, %s4126_s20  ;;  %1486 = vrot.lane.b32.xlu1 %v1482_v59, %s4124_s11  ;;  %v897_v59 = vmul.f32 %v4099_v54, %v2979_v37  ;;  %v983_v35 = vadd.f32 %v3251_v63, %v925_v43  ;;  %v4137_v43 = vstv %s3329_s10  ;;  %s3509_s10 = sld [smem:[#allocation5 + $0x3e]] }
 0x4bc   : > { %v1179_v25 = vpop.permute.xlu1 %1178  ;;  %v3467_v61 = vpop.permute.xlu0 %1104  ;;  %v939_v50 = vadd.f32 %v3192_v30, %v897_v59  ;;  %v1039_v32 = vadd.f32 %v3303_v26, %v983_v35  ;;  %v903_v30 = vmul.f32 %v4100_v14, %v2979_v37  ;;  %v907_v26 = vstv %s3458_s0  ;;  %s3747_s0 = sld [smem:[#allocation5 + $0x5a]] }
 0x4bd   : > { %v1582_v14 = vmul.f32 %v4138_v58, %v3341_v60 }
 0x4be   : > { %1982 = vrot.lane.b32.xlu0 %v1978_v57, %s4134_s15  ;;  %1530 = vrot.lane.b32.xlu1 %v1526_v45, %s4126_s20  ;;  %v2062_v57 = vmul.f32 %v4137_v43, %v3478_v20  ;;  %v997_v45 = vadd.f32 %v3262_v5, %v939_v50  ;;  %v1097_v0 = vadd.f32 %v3368_v15, %v1039_v32  ;;  %v4139_v32 = vstv %s3344_s16  ;;  %s3536_s16 = sld [smem:[#allocation5 + $0x41]] }
 0x4bf   : > { %v953_v59 = vadd.f32 %v3207_v36, %v903_v30  ;;  %v909_v5 = vmul.f32 %v907_v26, %v2979_v37 }
 0x4c0   : > { %v3490_v54 = vpop.permute.xlu1 %1192  ;;  %v3492_v63 = vpop.permute.xlu0 %1118  ;;  %v1053_v35 = vadd.f32 %v3318_v38, %v997_v45  ;;  %v1153_v43 = vadd.f32 %v1149_v10, %v1097_v0 }
 0x4c1   : > { %v1011_v36 = vadd.f32 %v3275_v11, %v953_v59  ;;  %v969_v10 = vadd.f32 %v3240_v56, %v909_v5  ;;  %v4140_v11 = vstv %s3020_s4  ;;  %v1263_v56 = vstv %s3497_s23  ;;  %s3614_s4 = sld [smem:[#allocation5 + $0x46]] }
 0x4c2   : > { %2066 = vrot.lane.b32.xlu0 %v2062_v57, %s4127_s22  ;;  %1544 = vrot.lane.b32.xlu1 %v1540_v47, %s4126_s20  ;;  %v2118_v47 = vmul.f32 %v4139_v32, %v3478_v20  ;;  %v1257_v57 = vstv %s3472_s30  ;;  %v1111_v58 = vadd.f32 %v3382_v53, %v1053_v35  ;;  %v1596_v53 = vmul.f32 %v4140_v11, %v3341_v60  ;;  %v3550_v32 = vld [vmem:[#allocation3 + $0x19] sm:$0xff]  ;;  %s3664_s22 = sld [smem:[#allocation5 + $0x4a]] }
 0x4c3   : > { %v1259_v37 = vmul.f32 %v1257_v57, %v3162_v12  ;;  %v1069_v30 = vadd.f32 %v3333_v48, %v1011_v36  ;;  %v1025_v48 = vadd.f32 %v3288_v17, %v969_v10  ;;  %v4143_v11 = vstv %s3411_s24  ;;  %s3590_s24 = sld [smem:[#allocation5 + $0x45]] }
 0x4c4   : > { %v1207_v50 = vpop.permute.xlu1 %1206  ;;  %v3517_v15 = vpop.permute.xlu0 %1132  ;;  %v1169_v45 = vadd.f32 %v1165_v27, %v1111_v58  ;;  %s3752_s30 = sld [smem:[#allocation5 + $0x3b]] }
 0x4c5   : > { %v1211_v38 = vadd.f32 %v1207_v50, %v1153_v43  ;;  %v4141_v43 = vstv %s3363_s19  ;;  %v1663_v50 = vstv %s3485_s18  ;;  %v1125_v27 = vadd.f32 %v3397_v1, %v1069_v30  ;;  %s3572_s19 = sld [smem:[#allocation5 + $0x42]] }
 0x4c6   : > { %1586 = vrot.lane.b32.xlu1 %v1582_v14, %s4134_s15  ;;  %2122 = vrot.lane.b32.xlu0 %v2118_v47, %s4128_s25  ;;  %v1410_v14 = vmul.f32 %v4141_v43, %v3233_v52  ;;  %v1265_v47 = vmul.f32 %v1263_v56, %v3162_v12  ;;  %v1083_v52 = vadd.f32 %v3351_v3, %v1025_v48  ;;  %v1677_v30 = vstv %s3509_s10  ;;  %s3768_s18 = sld [smem:[#allocation5 + $0x5e]] }
 0x4c7   : > { %v3534_v0 = vadd.f32 %v1259_v37, %v1211_v38  ;;  %v1183_v36 = vadd.f32 %v1179_v25, %v1125_v27  ;;  %v1664_v1 = vmul.f32 %v1663_v50, %v3550_v32  ;;  %v4142_v37 = vstv %s3380_s21  ;;  %s3680_s21 = sld [smem:[#allocation5 + $0x4d]] }
 0x4c8   : > { %v1221_v59 = vpop.permute.xlu1 %1220  ;;  %v1147_v35 = vpop.permute.xlu0 %1146  ;;  %v1426_v10 = vmul.f32 %v4142_v37, %v3311_v33  ;;  %v1139_v3 = vadd.f32 %v3416_v55, %v1083_v52  ;;  %s3780_s23 = sld [smem:[#allocation5 + $0x61]] }
 0x4c9   : > { %v1225_v5 = vadd.f32 %v1221_v59, %v1169_v45  ;;  %v1269_v45 = vstv %s3523_s13  ;;  %s3817_s10 = sld [smem:[#allocation5 + $0x30]] }
 0x4ca   : > { %1600 = vrot.lane.b32.xlu1 %v1596_v53, %s4134_s15  ;;  %1414 = vrot.lane.b32.xlu0 %v1410_v14, %s4132_s27  ;;  %v890_v53 = vmul.f32 %v4143_v11, %v3046_v2  ;;  %v1271_v59 = vmul.f32 %v1269_v45, %v3162_v12  ;;  %v1197_v14 = vadd.f32 %v3490_v54, %v1139_v3  ;;  %s3823_s13 = sld [smem:[#allocation5 + $0x34]] }
 0x4cb   : > { %v3558_v58 = vadd.f32 %v1265_v47, %v1225_v5  ;;  %v1678_v5 = vmul.f32 %v1677_v30, %v3550_v32  ;;  %v4144_v47 = vstv %s3082_s12  ;;  %s3642_s12 = sld [smem:[#allocation5 + $0x49]] }
 0x4cc   : > { %v1235_v17 = vpop.permute.xlu1 %1234  ;;  %v1163_v38 = vpop.permute.xlu0 %1162  ;;  %v924_v43 = vadd.f32 %v3264_v6, %v890_v53  ;;  %v1454_v52 = vmul.f32 %v4144_v47, %v3311_v33  ;;  %v4145_v6 = vstv %s3427_s2  ;;  %s3727_s2 = sld [smem:[#allocation5 + $0x52]] }
 0x4cd   : > { %v1239_v25 = vadd.f32 %v1235_v17, %v1183_v36  ;;  %v1721_v36 = vstv %s3536_s16  ;;  %v1275_v17 = vstv %s3546_s1  ;;  %v896_v54 = vmul.f32 %v4145_v6, %v3046_v2  ;;  %s3832_s16 = sld [smem:[#allocation5 + $0x3c]] }
 0x4ce   : > { %1668 = vrot.lane.b32.xlu1 %v1664_v1, %s4129_s26  ;;  %1430 = vrot.lane.b32.xlu0 %v1426_v10, %s4123_s6  ;;  %v982_v1 = vadd.f32 %v3320_v39, %v924_v43  ;;  %v1277_v10 = vmul.f32 %v1275_v17, %v3162_v12  ;;  %v1722_v39 = vmul.f32 %v1721_v36, %v3375_v31  ;;  %v4146_v12 = vstv %s3392_s28  ;;  %s3696_s28 = sld [smem:[#allocation5 + $0x4e]] }
 0x4cf   : > { %v3581_v48 = vadd.f32 %v1271_v59, %v1239_v25  ;;  %v938_v11 = vadd.f32 %v3277_v13, %v896_v54  ;;  %v1469_v43 = vmul.f32 %v4146_v12, %v3091_v23  ;;  %v4147_v13 = vstv %s3443_s5  ;;  %s3736_s5 = sld [smem:[#allocation5 + $0x59]] }
 0x4d0   : > { %v1249_v27 = vpop.permute.xlu1 %1248  ;;  %v1177_v55 = vpop.permute.xlu0 %1176  ;;  %v1038_v53 = vadd.f32 %v3384_v40, %v982_v1  ;;  %v902_v40 = vmul.f32 %v4147_v13, %v3046_v2  ;;  %v908_v54 = vmul.f32 %v907_v26, %v3046_v2  ;;  %v1258_v2 = vmul.f32 %v1257_v57, %v3200_v34  ;;  %s3842_s1 = sld [smem:[#allocation5 + $0x40]] }
 0x4d1   : > { %v1253_v37 = vadd.f32 %v1249_v27, %v1197_v14  ;;  %v996_v14 = vadd.f32 %v3335_v51, %v938_v11  ;;  %v1777_v11 = vstv %s3590_s24  ;;  %v1793_v13 = vstv %s3614_s4  ;;  %s3856_s24 = sld [smem:[#allocation5 + $0x48]] }
 0x4d2   : > { %1682 = vrot.lane.b32.xlu1 %v1678_v5, %s4129_s26  ;;  %1458 = vrot.lane.b32.xlu0 %v1454_v52, %s4124_s11  ;;  %v1096_v27 = vadd.f32 %v3447_v24, %v1038_v53  ;;  %v1735_v5 = vstv %s3572_s19  ;;  %v952_v47 = vadd.f32 %v3290_v18, %v902_v40  ;;  %v4148_v24 = vstv %s3409_s29  ;;  %v3640_v53 = vld [vmem:[#allocation3 + $0x21] sm:$0xff]  ;;  %s3714_s29 = sld [smem:[#allocation5 + $0x51]] }
 0x4d3   : > { %v3604_v3 = vadd.f32 %v1277_v10, %v1253_v37  ;;  %v1052_v52 = vadd.f32 %v3399_v7, %v996_v14  ;;  %v1736_v51 = vmul.f32 %v1735_v5, %v3375_v31  ;;  %v1483_v10 = vmul.f32 %v4148_v24, %v3091_v23  ;;  %s3849_s19 = sld [smem:[#allocation5 + $0x44]] }
 0x4d4   : > { %v3606_v25 = vpop.permute.xlu1 %1288  ;;  %v1191_v59 = vpop.permute.xlu0 %1190  ;;  %v1152_v6 = vadd.f32 %v1147_v35, %v1096_v27  ;;  %v1010_v18 = vadd.f32 %v3353_v4, %v952_v47  ;;  %v968_v23 = vadd.f32 %v3305_v29, %v908_v54  ;;  %v1665_v57 = vmul.f32 %v1663_v50, %v3640_v53  ;;  %s3864_s4 = sld [smem:[#allocation5 + $0x4c]] }
 0x4d5   : > { %v1110_v7 = vadd.f32 %v3467_v61, %v1052_v52  ;;  %v1679_v52 = vmul.f32 %v1677_v30, %v3640_v53  ;;  %v1835_v54 = vstv %s3642_s12  ;;  %v1723_v24 = vmul.f32 %v1721_v36, %v3268_v9  ;;  %s3871_s12 = sld [smem:[#allocation5 + $0x50]] }
 0x4d6   : > { %1726 = vrot.lane.b32.xlu1 %v1722_v39, %s4128_s25  ;;  %1474 = vrot.lane.b32.xlu0 %v1469_v43, %s4124_s11  ;;  %v1068_v4 = vadd.f32 %v3418_v16, %v1010_v18  ;;  %v1778_v43 = vmul.f32 %v1777_v11, %v3375_v31  ;;  %v1024_v40 = vadd.f32 %v3370_v19, %v968_v23  ;;  %v1849_v18 = vstv %s3664_s22  ;;  %s3877_s22 = sld [smem:[#allocation5 + $0x39]] }
 0x4d7   : > { %v1168_v26 = vadd.f32 %v1163_v38, %v1110_v7  ;;  %v1264_v38 = vmul.f32 %v1263_v56, %v3200_v34  ;;  %v1850_v36 = vmul.f32 %v1849_v18, %v3407_v21  ;;  %v1893_v23 = vstv %s3680_s21  ;;  %s3882_s21 = sld [smem:[#allocation5 + $0x58]] }
 0x4d8   : > { %v3629_v1 = vpop.permute.xlu1 %1302  ;;  %v1205_v37 = vpop.permute.xlu0 %1204  ;;  %v1124_v29 = vadd.f32 %v3492_v63, %v1068_v4  ;;  %v1082_v14 = vadd.f32 %v3431_v49, %v1024_v40  ;;  %v1794_v63 = vmul.f32 %v1793_v13, %v3407_v21  ;;  %v1270_v49 = vmul.f32 %v1269_v45, %v3200_v34 }
 0x4d9   : > { %v1210_v35 = vadd.f32 %v1205_v37, %v1152_v6  ;;  %v1276_v45 = vmul.f32 %v1275_v17, %v3200_v34  ;;  %v1894_v4 = vmul.f32 %v1893_v23, %v3439_v62  ;;  %v1795_v40 = vmul.f32 %v1793_v13, %v3296_v22 }
 0x4da   : > { %1740 = vrot.lane.b32.xlu1 %v1736_v51, %s4128_s25  ;;  %1488 = vrot.lane.b32.xlu0 %v1483_v10, %s4124_s11  ;;  %v1182_v50 = vadd.f32 %v1177_v55, %v1124_v29  ;;  %v1138_v56 = vadd.f32 %v3517_v15, %v1082_v14  ;;  %v1836_v51 = vmul.f32 %v1835_v54, %v3407_v21  ;;  %v1949_v29 = vstv %s3714_s29  ;;  %s3892_s29 = sld [smem:[#allocation5 + $0x5c]] }
 0x4db   : > { %v3651_v39 = vadd.f32 %v1258_v2, %v1210_v35  ;;  %v1737_v2 = vmul.f32 %v1735_v5, %v3268_v9  ;;  %v1963_v14 = vstv %s3727_s2  ;;  %s3910_s2 = sld [smem:[#allocation5 + $0x60]] }
 0x4dc   : > { %v3653_v61 = vpop.permute.xlu1 %1316  ;;  %v1219_v12 = vpop.permute.xlu0 %1218  ;;  %v1196_v55 = vadd.f32 %v1191_v59, %v1138_v56 }
 0x4dd   : > { %v1224_v16 = vadd.f32 %v1219_v12, %v1168_v26  ;;  %v1779_v26 = vmul.f32 %v1777_v11, %v3268_v9  ;;  %v1907_v12 = vstv %s3696_s28  ;;  %s3887_s28 = sld [smem:[#allocation5 + $0x3a]] }
 0x4de   : > { %1782 = vrot.lane.b32.xlu1 %v1778_v43, %s4132_s27  ;;  %1670 = vrot.lane.b32.xlu0 %v1665_v57, %s4129_s26  ;;  %v1908_v57 = vmul.f32 %v1907_v12, %v3439_v62 }
 0x4df   : > { %v3672_v27 = vadd.f32 %v1264_v38, %v1224_v16  ;;  %v1950_v16 = vmul.f32 %v1949_v29, %v3439_v62  ;;  %v1837_v38 = vmul.f32 %v1835_v54, %v3296_v22  ;;  %v2031_v54 = vstv %s3736_s5  ;;  %s3962_s5 = sld [smem:[#allocation5 + $0x55]] }
 0x4e0   : > { %v1333_v19 = vpop.permute.xlu1 %1332  ;;  %v1233_v47 = vpop.permute.xlu0 %1232 }
 0x4e1   : > { %v1238_v6 = vadd.f32 %v1233_v47, %v1182_v50  ;;  %v1337_v13 = vadd.f32 %v1333_v19, %v3604_v3 }
 0x4e2   : > { %1798 = vrot.lane.b32.xlu1 %v1794_v63, %s4123_s6  ;;  %1684 = vrot.lane.b32.xlu0 %v1679_v52, %s4129_s26  ;;  %v1964_v63 = vmul.f32 %v1963_v14, %v3439_v62  ;;  %v1851_v52 = vmul.f32 %v1849_v18, %v3296_v22  ;;  %v1895_v22 = vmul.f32 %v1893_v23, %v3326_v44 }
 0x4e3   : > { %v3687_v37 = vadd.f32 %v1270_v49, %v1238_v6  ;;  %v3756_v6 = vld [vmem:[#allocation3 + $0x1d] sm:$0xff] }
 0x4e4   : > { %v3689_v30 = vpop.permute.xlu1 %1346  ;;  %v1247_v15 = vpop.permute.xlu0 %1246 }
 0x4e5   : > { %v1252_v10 = vadd.f32 %v1247_v15, %v1196_v55  ;;  %v2032_v55 = vmul.f32 %v2031_v54, %v3756_v6 }
 0x4e6   : > { %1840 = vrot.lane.b32.xlu1 %v1836_v51, %s4124_s11  ;;  %1728 = vrot.lane.b32.xlu0 %v1723_v24, %s4128_s25  ;;  %v2045_v51 = vstv %s3747_s0 }
 0x4e7   : > { %v3703_v59 = vadd.f32 %v1276_v45, %v1252_v10  ;;  %v1643_v10 = vstv %s3752_s30  ;;  %s2452_s30 = sshll.u32 %s2675_s17, 8  ;;  %s2708_s17 = smov [#allocation10]  }
 0x4e8   : > { %v3705_v7 = vpop.permute.xlu1 %1360  ;;  %v3707_v35 = vpop.permute.xlu0 %1286 }
 0x4ea   : > { %1854 = vrot.lane.b32.xlu1 %v1850_v36, %s4124_s11  ;;  %1742 = vrot.lane.b32.xlu0 %v1737_v2, %s4128_s25  ;;  %v2046_v36 = vmul.f32 %v2045_v51, %v3756_v6  ;;  %v1909_v2 = vmul.f32 %v1907_v12, %v3326_v44  ;;  %v2103_v12 = vstv %s3768_s18 }
 0x4ec   : > { %v3718_v34 = vpop.permute.xlu1 %1374  ;;  %v3720_v17 = vpop.permute.xlu0 %1300 }
 0x4ee   : > { %1898 = vrot.lane.b32.xlu1 %v1894_v4, %s4126_s20  ;;  %1784 = vrot.lane.b32.xlu0 %v1779_v26, %s4132_s27  ;;  %v1645_v26 = vmul.f32 %v1643_v10, %v3640_v53 }
 0x4f0   : > { %v1389_v5 = vpop.permute.xlu1 %1388  ;;  %v3731_v43 = vpop.permute.xlu0 %1314 }
 0x4f1   : > { %v1393_v56 = vadd.f32 %v1389_v5, %v1337_v13 }
 0x4f2   : > { %1912 = vrot.lane.b32.xlu1 %v1908_v57, %s4126_s20  ;;  %1800 = vrot.lane.b32.xlu0 %v1795_v40, %s4123_s6  ;;  %s3759_s6 = sld [smem:[#allocation5 + $0x5d]] }
 0x4f4   : > { %v3740_v9 = vpop.permute.xlu1 %1402  ;;  %v3742_v11 = vpop.permute.xlu0 %1330 }
 0x4f6   : > { %1954 = vrot.lane.b32.xlu1 %v1950_v16, %s4134_s15  ;;  %1842 = vrot.lane.b32.xlu0 %v1837_v38, %s4124_s11  ;;  %v1951_v16 = vmul.f32 %v1949_v29, %v3326_v44  ;;  %v3797_v29 = vld [vmem:[#allocation3 + $0x25] sm:$0xff] }
 0x4f8   : > { %v1447_v50 = vpop.permute.xlu1 %1446  ;;  %v1345_v47 = vpop.permute.xlu0 %1344  ;;  %v2089_v4 = vstv %s3759_s6 }
 0x4f9   : > { %v1451_v3 = vadd.f32 %v1447_v50, %v1393_v56  ;;  %v2090_v40 = vmul.f32 %v2089_v4, %v3478_v20  ;;  %v1965_v56 = vmul.f32 %v1963_v14, %v3326_v44  ;;  %v1336_v44 = vadd.f32 %v3742_v11, %v3703_v59 }
 0x4fa   : > { %1968 = vrot.lane.b32.xlu1 %v1964_v63, %s4134_s15  ;;  %1856 = vrot.lane.b32.xlu0 %v1851_v52, %s4124_s11  ;;  %v2104_v52 = vmul.f32 %v2103_v12, %v3478_v20 }
 0x4fc   : > { %v1503_v19 = vpop.permute.xlu1 %1502  ;;  %v3763_v49 = vpop.permute.xlu0 %1358 }
 0x4fd   : > { %v1507_v15 = vadd.f32 %v1503_v19, %v1451_v3  ;;  %v2145_v19 = vstv %s3780_s23  ;;  %s4006_s23 = scalar_lea.hbm %s4060_s3, %s2452_s30 }
 0x4fe   : > { %2036 = vrot.lane.b32.xlu1 %v2032_v55, %s4129_s26  ;;  %1900 = vrot.lane.b32.xlu0 %v1895_v22, %s4126_s20  ;;  %v2033_v22 = vmul.f32 %v2031_v54, %v3797_v29 }
 0x4ff   : > { %v1565_v24 = vadd.f32 %v3216_v41, %v1507_v15 }
 0x500   : > { %v1701_v18 = vpop.permute.xlu1 %1700  ;;  %v3774_v45 = vpop.permute.xlu0 %1372 }
 0x501   : > { %v1621_v23 = vadd.f32 %v3227_v46, %v1565_v24  ;;  %v1292_v46 = vadd.f32 %v3707_v35, %v3651_v39 }
 0x502   : > { %2050 = vrot.lane.b32.xlu1 %v2046_v36, %s4129_s26  ;;  %1914 = vrot.lane.b32.xlu0 %v1909_v2, %s4126_s20  ;;  %s3803_s20 = sld [smem:[#allocation5 + $0x57]] }
 0x503   : > { %v1647_v41 = vadd.f32 %v1645_v26, %v1621_v23  ;;  %v1350_v38 = vadd.f32 %v1345_v47, %v1292_v46  ;;  %v2146_v47 = vmul.f32 %v2145_v19, %v3478_v20 }
 0x504   : > { %v1757_v5 = vpop.permute.xlu1 %1756  ;;  %v1387_v57 = vpop.permute.xlu0 %1386 }
 0x505   : > { %v1705_v13 = vadd.f32 %v1701_v18, %v1647_v41  ;;  %v2047_v18 = vmul.f32 %v2045_v51, %v3797_v29  ;;  %v1392_v36 = vadd.f32 %v1387_v57, %v1336_v44  ;;  %v2105_v57 = vmul.f32 %v2103_v12, %v3358_v8 }
 0x506   : > { %2094 = vrot.lane.b32.xlu1 %v2090_v40, %s4128_s25  ;;  %1956 = vrot.lane.b32.xlu0 %v1951_v16, %s4134_s15  ;;  %v1321_v44 = vadd.f32 %v3653_v61, %v3581_v48  ;;  %v1567_v48 = vstv %s3823_s13  ;;  %s2603_s13 = sshll.u32 %s2708_s17, 4  ;;  %s2604_s13 = int_to_ptr.vmem [resolvable:$false] %s2603_s13 }
 0x507   : > { %v1761_v39 = vadd.f32 %v1757_v5, %v1705_v13  ;;  %v2091_v5 = vmul.f32 %v2089_v4, %v3358_v8 }
 0x508   : > { %v1815_v50 = vpop.permute.xlu1 %1814  ;;  %v1401_v63 = vpop.permute.xlu0 %1400  ;;  %v2011_v16 = vstv %s3803_s20  ;;  %s2196_s20 = scalar_lea.sflag [#allocation7], %s2847_s7 }
 0x509   : > { %v3794_v3 = vadd.f32 %v1401_v63, %v1350_v38  ;;  %v1819_v14 = vadd.f32 %v1815_v50, %v1761_v39  ;;  %v2013_v11 = vmul.f32 %v2011_v16, %v3797_v29  ;;  %v1644_v50 = vmul.f32 %v1643_v10, %v3550_v32 }
 0x50a   : > { %2108 = vrot.lane.b32.xlu1 %v2104_v52, %s4128_s25  ;;  %1970 = vrot.lane.b32.xlu0 %v1965_v56, %s4134_s15  ;;  %v2147_v39 = vmul.f32 %v2145_v19, %v3358_v8  ;;  %v1509_v19 = vstv %s3817_s10 }
 0x50c   : > { %v1871_v35 = vpop.permute.xlu1 %1870  ;;  %v1445_v55 = vpop.permute.xlu0 %1444 }
 0x50d   : > { %v1875_v2 = vadd.f32 %v1871_v35, %v1819_v14  ;;  %v1450_v54 = vadd.f32 %v1445_v55, %v1392_v36  ;;  %v1307_v35 = vadd.f32 %v3629_v1, %v3558_v58  ;;  %v1379_v58 = vadd.f32 %v3718_v34, %v1321_v44 }
 0x50e   : > { %2150 = vrot.lane.b32.xlu1 %v2146_v47, %s4132_s27  ;;  %2038 = vrot.lane.b32.xlu0 %v2033_v22, %s4129_s26  ;;  %v1568_v34 = vmul.f32 %v1567_v48, %v3341_v60  ;;  %v1935_v44 = vstv %s3871_s12 }
 0x50f   : > { %v1365_v10 = vadd.f32 %v3705_v7, %v1307_v35  ;;  %v1510_v7 = vmul.f32 %v1509_v19, %v3311_v33  ;;  %v1306_v35 = vadd.f32 %v3720_v17, %v3672_v27  ;;  %v1320_v27 = vadd.f32 %v3731_v43, %v3687_v37 }
 0x510   : > { %v1929_v15 = vpop.permute.xlu1 %1928  ;;  %v1501_v24 = vpop.permute.xlu0 %1500 }
 0x511   : > { %v1933_v23 = vadd.f32 %v1929_v15, %v1875_v2  ;;  %v1506_v40 = vadd.f32 %v1501_v24, %v1450_v54  ;;  %v1649_v2 = vstv %s3832_s16  ;;  %s2605_s16 = scalar_lea.vmem %s2604_s13, 512 }
 0x512   : > { %2052 = vrot.lane.b32.xlu0 %v2047_v18, %s4129_s26 }
 0x514   : > { %v1985_v26 = vpop.permute.xlu1 %1984  ;;  %v1559_v41 = vpop.permute.xlu0 %1558 }
 0x515   : > { %v1989_v46 = vadd.f32 %v1985_v26, %v1933_v23  ;;  %v1564_v59 = vadd.f32 %v1559_v41, %v1506_v40  ;;  %v1650_v26 = vmul.f32 %v1649_v2, %v3550_v32 }
 0x516   : > { %2096 = vrot.lane.b32.xlu0 %v2091_v5, %s4128_s25  ;;  %v1707_v5 = vstv %s3842_s1 }
 0x517   : > { %v2015_v63 = vadd.f32 %v2013_v11, %v1989_v46 }
 0x518   : > { %v2069_v38 = vpop.permute.xlu1 %2068  ;;  %v1615_v51 = vpop.permute.xlu0 %1614 }
 0x519   : > { %v1620_v13 = vadd.f32 %v1615_v51, %v1564_v59  ;;  %v2073_v12 = vadd.f32 %v2069_v38, %v2015_v63  ;;  %v1708_v59 = vmul.f32 %v1707_v5, %v3375_v31  ;;  %v2012_v38 = vmul.f32 %v2011_v16, %v3756_v6 }
 0x51a   : > { %2110 = vrot.lane.b32.xlu0 %v2105_v57, %s4128_s25  ;;  %v1763_v51 = vstv %s3849_s19 }
 0x51b   : > { %v1646_v4 = vadd.f32 %v1644_v50, %v1620_v13  ;;  %v1764_v63 = vmul.f32 %v1763_v51, %v3375_v31  ;;  %v1877_v31 = vstv %s3864_s4 }
 0x51c   : > { %v2125_v52 = vpop.permute.xlu1 %2124  ;;  %v1699_v56 = vpop.permute.xlu0 %1698 }
 0x51d   : > { %v2129_v55 = vadd.f32 %v2125_v52, %v2073_v12  ;;  %v1704_v61 = vadd.f32 %v1699_v56, %v1646_v4  ;;  %v1821_v4 = vstv %s3856_s24 }
 0x51e   : > { %2152 = vrot.lane.b32.xlu0 %v2147_v39, %s4132_s27  ;;  %v1822_v39 = vmul.f32 %v1821_v4, %v3407_v21 }
 0x520   : > { %v1417_v47 = vpop.permute.xlu1 %1416  ;;  %v1755_v22 = vpop.permute.xlu0 %1754 }
 0x521   : > { %v3829_v8 = vadd.f32 %v1417_v47, %v1365_v10  ;;  %v1760_v36 = vadd.f32 %v1755_v22, %v1704_v61  ;;  %v1364_v10 = vadd.f32 %v3763_v49, %v1306_v35  ;;  %v1878_v22 = vmul.f32 %v1877_v31, %v3407_v21  ;;  %v2550_v61 = vld [vmem:[#allocation3 + $0xe] sm:$0xff]  ;;  %v2552_v35 = vld [vmem:[#allocation3 + $0x22] sm:$0xff] }
 0x522   : > { %2172 = vrot.lane.b32.xlu0 %v2129_v55, %s4128_s25  ;;  %v1378_v49 = vadd.f32 %v3774_v45, %v1320_v27  ;;  %v2017_v45 = vstv %s3882_s21 }
 0x524   : > { %v1433_v1 = vpop.permute.xlu1 %1432  ;;  %v1813_v14 = vpop.permute.xlu0 %1812 }
 0x525   : > { %v3839_v15 = vadd.f32 %v1433_v1, %v1379_v58  ;;  %v1818_v33 = vadd.f32 %v1813_v14, %v1760_v36  ;;  %v1631_v1 = vstv %s3877_s22  ;;  %v1637_v36 = vstv %s3887_s28 }
 0x526   : > { %1514 = vrot.lane.b32.xlu0 %v1510_v7, %s4125_s9  ;;  %v1936_v7 = vmul.f32 %v1935_v44, %v3439_v62 }
 0x528   : > { %v1473_v24 = vpop.permute.xlu1 %1472  ;;  %v1869_v18 = vpop.permute.xlu0 %1868 }
 0x529   : > { %v1874_v41 = vadd.f32 %v1869_v18, %v1818_v33  ;;  %v1511_v18 = vmul.f32 %v2550_v61, %v1509_v19  ;;  %v2075_v19 = vstv %s3892_s29 }
 0x52a   : > { %1572 = vrot.lane.b32.xlu0 %v1568_v34, %s4134_s15 }
 0x52c   : > { %v1487_v54 = vpop.permute.xlu1 %1486  ;;  %v1927_v23 = vpop.permute.xlu0 %1926 }
 0x52d   : > { %v1932_v60 = vadd.f32 %v1927_v23, %v1874_v41  ;;  %v2018_v23 = vmul.f32 %v2017_v45, %v3756_v6 }
 0x52e   : > { %1654 = vrot.lane.b32.xlu0 %v1650_v26, %s4129_s26 }
 0x530   : > { %v1531_v40 = vpop.permute.xlu1 %1530  ;;  %v1983_v46 = vpop.permute.xlu0 %1982 }
 0x531   : > { %v1988_v11 = vadd.f32 %v1983_v46, %v1932_v60  ;;  %v1638_v46 = vmul.f32 %v1637_v36, %v3550_v32 }
 0x532   : > { %1712 = vrot.lane.b32.xlu0 %v1708_v59, %s4128_s25 }
 0x533   : > { %v2014_v57 = vadd.f32 %v2012_v38, %v1988_v11 }
 0x534   : > { %v1545_v13 = vpop.permute.xlu1 %1544  ;;  %v2067_v50 = vpop.permute.xlu0 %2066 }
 0x535   : > { %v2072_v52 = vadd.f32 %v2067_v50, %v2014_v57  ;;  %v2076_v57 = vmul.f32 %v2075_v19, %v3478_v20  ;;  %v1651_v50 = vmul.f32 %v1649_v2, %v3640_v53  ;;  %v4149_v2 = vld [vmem:[#allocation22_spill] sm:$0xff] }
 0x536   : > { %1768 = vrot.lane.b32.xlu0 %v1764_v63, %s4132_s27 }
 0x538   : > { %v1587_v16 = vpop.permute.xlu1 %1586  ;;  %v2123_v56 = vpop.permute.xlu0 %2122 }
 0x539   : > { %v2128_v12 = vadd.f32 %v2123_v56, %v2072_v52 }
 0x53a   : > { %1826 = vrot.lane.b32.xlu0 %v1822_v39, %s4124_s11 }
 0x53b   : > { %2170 = vrot.lane.b32.xlu1 %v2128_v12, %s4128_s25  ;;  %v1709_v12 = vmul.f32 %v2552_v35, %v1707_v5  ;;  %v1765_v5 = vmul.f32 %v2552_v35, %v1763_v51 }
 0x53c   : > { %v1601_v55 = vpop.permute.xlu1 %1600  ;;  %v1415_v47 = vpop.permute.xlu0 %1414 }
 0x53d   : > { %v1420_v17 = vadd.f32 %v1415_v47, %v1364_v10  ;;  %v1633_v47 = vmul.f32 %v1631_v1, %v3640_v53 }
 0x53e   : > { %1882 = vrot.lane.b32.xlu0 %v1878_v22, %s4125_s9 }
 0x53f   : > { %v1478_v58 = vadd.f32 %v1473_v24, %v1420_v17  ;;  %1460 = vrot.lane.b32.xlu1 %v3100_v28, %s4124_s11  ;;  %v1632_v28 = vmul.f32 %v1631_v1, %v3550_v32 }
 0x540   : > { %v3902_v21 = vpop.permute.xlu1 %1668  ;;  %v1431_v14 = vpop.permute.xlu0 %1430 }
 0x541   : > { %v1536_v37 = vadd.f32 %v1531_v40, %v1478_v58  ;;  %v1436_v43 = vadd.f32 %v1431_v14, %v1378_v49  ;;  %v2551_v40 = vld [vmem:[#allocation3 + $0x20] sm:$0xff]  ;;  %v4151_v49 = vld [vmem:[#allocation23_spill] sm:$0xff] }
 0x542   : > { %1940 = vrot.lane.b32.xlu0 %v1936_v7, %s4134_s15 }
 0x543   : > { %v1592_v24 = vadd.f32 %v1587_v16, %v1536_v37  ;;  %v1492_v34 = vadd.f32 %v1487_v54, %v1436_v43  ;;  %1516 = vrot.lane.b32.xlu1 %v1511_v18, %s4125_s9  ;;  %v1569_v54 = vmul.f32 %v2551_v40, %v1567_v48  ;;  %v2131_v48 = vstv %s3910_s2  ;;  %v2553_v43 = vld [vmem:[#allocation3 + $0x23] sm:$0xff] }
 0x544   : > { %v1683_v62 = vpop.permute.xlu1 %1682  ;;  %v1459_v33 = vpop.permute.xlu0 %1458  ;;  %v2132_v39 = vmul.f32 %v2131_v48, %v3478_v20  ;;  %v1823_v61 = vmul.f32 %v2553_v43, %v1821_v4  ;;  %v1879_v51 = vmul.f32 %v2553_v43, %v1877_v31  ;;  %v2019_v31 = vmul.f32 %v2017_v45, %v3797_v29 }
 0x545   : > { %v1634_v26 = vadd.f32 %v1632_v28, %v1592_v24  ;;  %v1550_v41 = vadd.f32 %v1545_v13, %v1492_v34  ;;  %v3921_v60 = vadd.f32 %v1459_v33, %v3794_v3  ;;  %v2554_v33 = vld [vmem:[#allocation3 + $0x24] sm:$0xff] }
 0x546   : > { %2022 = vrot.lane.b32.xlu0 %v2018_v23, %s4129_s26  ;;  %v1937_v23 = vmul.f32 %v2554_v33, %v1935_v44 }
 0x547   : > { %v1606_v59 = vadd.f32 %v1601_v55, %v1550_v41  ;;  %1574 = vrot.lane.b32.xlu1 %v1569_v54, %s4134_s15 }
 0x548   : > { %v1727_v11 = vpop.permute.xlu1 %1726  ;;  %v1475_v38 = vpop.permute.xlu0 %1474 }
 0x549   : > { %v1640_v13 = vadd.f32 %v1638_v46, %v1606_v59  ;;  %v1479_v3 = vadd.f32 %v1475_v38, %v3829_v8  ;;  %v2555_v46 = vld [vmem:[#allocation3 + $0x26] sm:$0xff]  ;;  %v1999_v38 = vstv %s3962_s5 }
 0x54a   : > { %2080 = vrot.lane.b32.xlu0 %v2076_v57, %s4128_s25  ;;  %v2077_v59 = vmul.f32 %v2555_v46, %v2075_v19  ;;  %v2133_v45 = vmul.f32 %v2555_v46, %v2131_v48 }
 0x54b   : > { %v1688_v63 = vadd.f32 %v1683_v62, %v1640_v13  ;;  %v1537_v52 = vadd.f32 %v3218_v42, %v1479_v3  ;;  %1656 = vrot.lane.b32.xlu1 %v1651_v50, %s4129_s26  ;;  %v4150_v42 = vld [vmem:[#allocation21_spill] sm:$0xff]  ;;  %v2000_v50 = vmul.f32 %v1999_v38, %v3756_v6 }
 0x54c   : > { %v1741_v16 = vpop.permute.xlu1 %1740  ;;  %v1489_v56 = vpop.permute.xlu0 %1488 }
 0x54d   : > { %v1746_v8 = vadd.f32 %v1741_v16, %v1688_v63  ;;  %v1493_v10 = vadd.f32 %v1489_v56, %v3839_v15  ;;  %v1593_v55 = vadd.f32 %v4149_v2, %v1537_v52  ;;  %v1639_v15 = vmul.f32 %v1637_v36, %v3640_v53 }
 0x54e   : > { %2136 = vrot.lane.b32.xlu0 %v2132_v39, %s4132_s27  ;;  %v1674_v36 = vadd.f32 %v3902_v21, %v1634_v26 }
 0x54f   : > { %v1551_v22 = vadd.f32 %v4150_v42, %v1493_v10  ;;  %1714 = vrot.lane.b32.xlu1 %v1709_v12, %s4128_s25  ;;  %v1635_v27 = vadd.f32 %v1633_v47, %v1593_v55 }
 0x550   : > { %v1783_v20 = vpop.permute.xlu1 %1782  ;;  %v1671_v17 = vpop.permute.xlu0 %1670  ;;  %v1732_v40 = vadd.f32 %v1727_v11, %v1674_v36 }
 0x551   : > { %v1607_v58 = vadd.f32 %v4151_v49, %v1551_v22  ;;  %v1675_v12 = vadd.f32 %v1671_v17, %v1635_v27 }
 0x552   : > { %v1788_v21 = vadd.f32 %v1783_v20, %v1732_v40 }
 0x553   : > { %1770 = vrot.lane.b32.xlu1 %v1765_v5, %s4132_s27  ;;  %v1641_v1 = vadd.f32 %v1639_v15, %v1607_v58 }
 0x554   : > { %v1799_v14 = vpop.permute.xlu1 %1798  ;;  %v1685_v7 = vpop.permute.xlu0 %1684 }
 0x555   : > { %v1804_v37 = vadd.f32 %v1799_v14, %v1746_v8  ;;  %v1689_v47 = vadd.f32 %v1685_v7, %v1641_v1 }
 0x557   : > { %1828 = vrot.lane.b32.xlu1 %v1823_v61, %s4124_s11  ;;  %v2001_v61 = vmul.f32 %v1999_v38, %v3797_v29 }
 0x558   : > { %v1841_v18 = vpop.permute.xlu1 %1840  ;;  %v1729_v28 = vpop.permute.xlu0 %1728 }
 0x559   : > { %v1846_v44 = vadd.f32 %v1841_v18, %v1788_v21  ;;  %v1733_v55 = vadd.f32 %v1729_v28, %v1675_v12 }
 0x55b   : > { %1884 = vrot.lane.b32.xlu1 %v1879_v51, %s4125_s9  ;;  %s3968_s9 = sld [smem:[#allocation5 + $0x56]] }
 0x55c   : > { %v1855_v24 = vpop.permute.xlu1 %1854  ;;  %v1743_v34 = vpop.permute.xlu0 %1742 }
 0x55d   : > { %v1860_v62 = vadd.f32 %v1855_v24, %v1804_v37  ;;  %v1747_v20 = vadd.f32 %v1743_v34, %v1689_v47 }
 0x55f   : > { %1942 = vrot.lane.b32.xlu1 %v1937_v23, %s4134_s15  ;;  %s3982_s15 = sld [smem:[#allocation5 + $0x38]] }
 0x560   : > { %v1899_v4 = vpop.permute.xlu1 %1898  ;;  %v1785_v41 = vpop.permute.xlu0 %1784 }
 0x561   : > { %v1904_v57 = vadd.f32 %v1899_v4, %v1846_v44  ;;  %v2005_v63 = vstv %s3968_s9  ;;  %v1789_v42 = vadd.f32 %v1785_v41, %v1733_v55 }
 0x562   : > { %v2006_v19 = vmul.f32 %v2005_v63, %v3756_v6  ;;  %v2007_v1 = vmul.f32 %v2005_v63, %v3797_v29 }
 0x563   : > { %2024 = vrot.lane.b32.xlu1 %v2019_v31, %s4129_s26 }
 0x564   : > { %v1913_v26 = vpop.permute.xlu1 %1912  ;;  %v1801_v54 = vpop.permute.xlu0 %1800 }
 0x565   : > { %v1918_v52 = vadd.f32 %v1913_v26, %v1860_v62  ;;  %v1805_v49 = vadd.f32 %v1801_v54, %v1747_v20 }
 0x567   : > { %2082 = vrot.lane.b32.xlu1 %v2077_v59, %s4128_s25 }
 0x568   : > { %v1955_v11 = vpop.permute.xlu1 %1954  ;;  %v1843_v13 = vpop.permute.xlu0 %1842 }
 0x569   : > { %v1960_v3 = vadd.f32 %v1955_v11, %v1904_v57  ;;  %v1847_v5 = vadd.f32 %v1843_v13, %v1789_v42  ;;  %v1625_v57 = vstv %s3982_s15 }
 0x56b   : > { %2138 = vrot.lane.b32.xlu1 %v2133_v45, %s4132_s27  ;;  %v2002_v16 = vadd.f32 %v2000_v50, %v1960_v3  ;;  %v1626_v45 = vmul.f32 %v1625_v57, %v3550_v32  ;;  %s3989_s27 = sld [smem:[#allocation5 + $0x54]] }
 0x56c   : > { %v1969_v56 = vpop.permute.xlu1 %1968  ;;  %v1857_v39 = vpop.permute.xlu0 %1856 }
 0x56d   : > { %v1974_v35 = vadd.f32 %v1969_v56, %v1918_v52  ;;  %v1861_v37 = vadd.f32 %v1857_v39, %v1805_v49 }
 0x56f   : > { %v2008_v8 = vadd.f32 %v2006_v19, %v1974_v35 }
 0x570   : > { %v2037_v10 = vpop.permute.xlu1 %2036  ;;  %v1901_v2 = vpop.permute.xlu0 %1900 }
 0x571   : > { %v1905_v58 = vadd.f32 %v1901_v2, %v1847_v5  ;;  %v2042_v24 = vadd.f32 %v2037_v10, %v2002_v16 }
 0x574   : > { %v2051_v48 = vpop.permute.xlu1 %2050  ;;  %v1915_v22 = vpop.permute.xlu0 %1914 }
 0x575   : > { %v1919_v18 = vadd.f32 %v1915_v22, %v1861_v37  ;;  %v2056_v56 = vadd.f32 %v2051_v48, %v2008_v8  ;;  %v1993_v48 = vstv %s3989_s27 }
 0x578   : > { %v2095_v15 = vpop.permute.xlu1 %2094  ;;  %v1957_v14 = vpop.permute.xlu0 %1956 }
 0x579   : > { %v1961_v43 = vadd.f32 %v1957_v14, %v1905_v58  ;;  %v2100_v7 = vadd.f32 %v2095_v15, %v2042_v24  ;;  %v1994_v15 = vmul.f32 %v1993_v48, %v3756_v6 }
 0x57b   : > { %v2003_v27 = vadd.f32 %v2001_v61, %v1961_v43  ;;  %v1627_v61 = vmul.f32 %v1625_v57, %v3640_v53 }
 0x57c   : > { %v2109_v17 = vpop.permute.xlu1 %2108  ;;  %v1971_v51 = vpop.permute.xlu0 %1970 }
 0x57d   : > { %v1975_v28 = vadd.f32 %v1971_v51, %v1919_v18  ;;  %v2114_v35 = vadd.f32 %v2109_v17, %v2056_v56 }
 0x57f   : > { %v2009_v36 = vadd.f32 %v2007_v1, %v1975_v28 }
 0x580   : > { %v2151_v34 = vpop.permute.xlu1 %2150  ;;  %v2039_v62 = vpop.permute.xlu0 %2038 }
 0x581   : > { %v2156_v33 = vadd.f32 %v2151_v34, %v2100_v7  ;;  %v2043_v40 = vadd.f32 %v2039_v62, %v2003_v27  ;;  %v1995_v62 = vmul.f32 %v1993_v48, %v3797_v29 }
 0x583   : > { %2160 = vrot.lane.b32.xlu0 %v2156_v33, %s4128_s25 }
 0x584   : > { %v2053_v23 = vpop.permute.xlu0 %2052 }
 0x585   : > { %v2057_v26 = vadd.f32 %v2053_v23, %v2009_v36 }
 0x588   : > { %v2097_v4 = vpop.permute.xlu0 %2096 }
 0x589   : > { %v2101_v31 = vadd.f32 %v2097_v4, %v2043_v40 }
 0x58c   : > { %v2111_v41 = vpop.permute.xlu0 %2110 }
 0x58d   : > { %v2115_v44 = vadd.f32 %v2111_v41, %v2057_v26 }
 0x590   : > { %v2153_v21 = vpop.permute.xlu0 %2152 }
 0x591   : > { %v2157_v54 = vadd.f32 %v2153_v21, %v2101_v31 }
 0x593   : > { %2162 = vrot.lane.b32.xlu1 %v2157_v54, %s4128_s25  ;;  %s2316_s25 = sshll.u32 %s2847_s7, 4 }
 0x594   : > { %v2173_v46 = vpop.permute.xlu0 %2172  ;;  %s217_s26 = scalar_lea.vmem [#allocation10], %s2316_s25 }
 0x595   : > { %v2177_v59 = vadd.f32 %v2173_v46, %v2115_v44  ;;  %s2209_s0 = sshll.u32 %s217_s26, 4  ;;  %s4008_s0 = int_to_ptr.vmem [resolvable:$true] %s2209_s0 }
 0x596   : > { %s2599_s10 = scalar_lea.vmem %s4008_s0, 256  ;;  %p2606_p11 = scmp.lt.s32.totalorder %s4008_s0, %s2604_s13 }
 0x597   : > { %2182 = vrot.lane.b32.xlu1 %v2177_v59, %s4124_s11  ;;  %p2600_p1 = scmp.ne.s32.totalorder %s4008_s0, %s2599_s10  ;;  %p2607_p2 = scmp.lt.s32.totalorder %s2605_s16, %s2599_s10 }
 0x598   : > { %v1515_v38 = vpop.permute.xlu0 %1514 }
 0x599   : > { %v1520_v11 = vadd.f32 %v1515_v38, %v3921_v60  ;;  %v1293_v60 = vadd.f32 %v3606_v25, %v3534_v0  ;;  %p2601_p8 = pnand %p2600_p1, %p2820_p0  ;;  %p2608_p12 = por %p2607_p2, %p2606_p11 }
 0x59b   : > { %v1351_v8 = vadd.f32 %v3689_v30, %v1293_v60  ;;  %p2602_p13 = pneg %p2601_p8 }
 0x59c   : > { %v1573_v13 = vpop.permute.xlu0 %1572 }
 0x59d   : > { %v1578_v3 = vadd.f32 %v1573_v13, %v1520_v11  ;;  %v1407_v20 = vadd.f32 %v3740_v9, %v1351_v8  ;;  %p2609_p3 = pnand %p2608_p12, %p2602_p13 }
 0x59f   : > { %v1628_v50 = vadd.f32 %v1626_v45, %v1578_v3 }
 0x5a0   : > { %v1655_v63 = vpop.permute.xlu0 %1654 }
 0x5a1   : > { %v1660_v39 = vadd.f32 %v1655_v63, %v1628_v50 }
 0x5a4   : > { %v1713_v52 = vpop.permute.xlu0 %1712 }
 0x5a5   : > { %v1718_v12 = vadd.f32 %v1713_v52, %v1660_v39 }
 0x5a8   : > { %v1769_v16 = vpop.permute.xlu0 %1768 }
 0x5a9   : > { %v1774_v55 = vadd.f32 %v1769_v16, %v1718_v12 }
 0x5ac   : > { %v1827_v19 = vpop.permute.xlu0 %1826 }
 0x5ad   : > { %v2171_v10 = vpop.permute.xlu1 %2170  ;;  %v1832_v47 = vadd.f32 %v1827_v19, %v1774_v55 }
 0x5ae   : > { %v2176_v2 = vadd.f32 %v2171_v10, %v2114_v35 }
 0x5b0   : > { %2180 = vrot.lane.b32.xlu0 %v2176_v2, %s4124_s11  ;;  %v1883_v32 = vpop.permute.xlu0 %1882  ;;  %s2188_s11 = sld [smem:[#allocation4]] }
 0x5b1   : > { %v1461_v42 = vpop.permute.xlu1 %1460  ;;  %v1888_v22 = vadd.f32 %v1883_v32, %v1832_v47 }
 0x5b2   : > { %v1465_v14 = vadd.f32 %v1461_v42, %v1407_v20 }
 0x5b4   : > { %v1941_v5 = vpop.permute.xlu0 %1940 }
 0x5b5   : > { %v1946_v49 = vadd.f32 %v1941_v5, %v1888_v22  ;;  %v1517_v58 = vpop.permute.xlu1 %1516 }
 0x5b6   : > { %v1521_v43 = vadd.f32 %v1517_v58, %v1465_v14  ;;  %v2189_v54 = vstv %s2188_s11 }
 0x5b7   : > { %v1996_v37 = vadd.f32 %v1994_v15, %v1946_v49 }
 0x5b8   : > { %v2023_v38 = vpop.permute.xlu0 %2022 }
 0x5b9   : > { %v1575_v0 = vpop.permute.xlu1 %1574  ;;  %v2028_v11 = vadd.f32 %v2023_v38, %v1996_v37 }
 0x5ba   : > { %v1579_v25 = vadd.f32 %v1575_v0, %v1521_v43 }
 0x5bc   : > { %v1629_v18 = vadd.f32 %v1627_v61, %v1579_v25  ;;  %v2081_v29 = vpop.permute.xlu0 %2080 }
 0x5bd   : > { %v1657_v27 = vpop.permute.xlu1 %1656  ;;  %v2086_v13 = vadd.f32 %v2081_v29, %v2028_v11 }
 0x5be   : > { %v1661_v51 = vadd.f32 %v1657_v27, %v1629_v18 }
 0x5c0   : > { %v2137_v57 = vpop.permute.xlu0 %2136 }
 0x5c1   : > { %v1715_v17 = vpop.permute.xlu1 %1714  ;;  %v2142_v45 = vadd.f32 %v2137_v57, %v2086_v13 }
 0x5c2   : > { %v1719_v28 = vadd.f32 %v1715_v17, %v1661_v51 }
 0x5c5   : > { %v1771_v30 = vpop.permute.xlu1 %1770 }
 0x5c6   : > { %v1775_v9 = vadd.f32 %v1771_v30, %v1719_v28 }
 0x5c9   : > { %v1829_v24 = vpop.permute.xlu1 %1828 }
 0x5ca   : > { %v1833_v7 = vadd.f32 %v1829_v24, %v1775_v9 }
 0x5cd   : > { %v1885_v1 = vpop.permute.xlu1 %1884 }
 0x5ce   : > { %v1889_v36 = vadd.f32 %v1885_v1, %v1833_v7 }
 0x5d1   : > { %v1943_v6 = vpop.permute.xlu1 %1942 }
 0x5d2   : > { %v1947_v34 = vadd.f32 %v1943_v6, %v1889_v36 }
 0x5d4   : > { %v1997_v33 = vadd.f32 %v1995_v62, %v1947_v34 }
 0x5d5   : > { %v2025_v23 = vpop.permute.xlu1 %2024 }
 0x5d6   : > { %v2029_v41 = vadd.f32 %v2025_v23, %v1997_v33 }
 0x5d9   : > { %v2083_v4 = vpop.permute.xlu1 %2082 }
 0x5da   : > { %v2087_v40 = vadd.f32 %v2083_v4, %v2029_v41 }
 0x5dd   : > { %v2139_v53 = vpop.permute.xlu1 %2138 }
 0x5de   : > { %v2143_v21 = vadd.f32 %v2139_v53, %v2087_v40 }
 0x5f5   : > { %v2161_v3 = vpop.permute.xlu0 %2160 }
 0x5f6   : > { %v2166_v50 = vadd.f32 %v2161_v3, %v2142_v45 }
 0x605   : > { %v2163_v31 = vpop.permute.xlu1 %2162 }
 0x606   : > { %v2167_v26 = vadd.f32 %v2163_v31, %v2143_v21 }
 0x609   : > { %v2183_v44 = vpop.permute.xlu1 %2182 }
 0x60a   : > { %v2187_v46 = vadd.f32 %v2183_v44, %v2167_v26 }
 0x60c   : > { %v2191_v59 = vadd.f32 %v2189_v54, %v2187_v46 }
 0x60e   : > { %2194 = vst.msk [vmem:[%s217_s26 + $0x8] sm:$0xff] %vm2192_vm15, %v2191_v59 }
 0x622   : > { %v2181_v63 = vpop.permute.xlu0 %2180 }
 0x623   : > { %v2186_v52 = vadd.f32 %v2181_v63, %v2166_v50 }
 0x625   : > { %v2190_v16 = vadd.f32 %v2189_v54, %v2186_v52 }
 0x627   : > { %2193 = vst.msk [vmem:[%s217_s26] sm:$0xff] %vm2192_vm15, %v2190_v16 }
 0x628   : > { %2612 = shalt.err (!%p2609_p3)
}
 0x629   : > { %s2613_s1 = scalar_lea.hbm %s4006_s23, 256  ;;  %s2617_s4 = scalar_lea.hbm %s4060_s3, 512 }
 0x62a   : > { %p2614_p5 = scmp.ne.s32.totalorder %s4006_s23, %s2613_s1  ;;  %p2618_p6 = scmp.lt.s32.totalorder %s4006_s23, %s4060_s3 }
 0x62b   : > { %p2619_p9 = scmp.lt.s32.totalorder %s2617_s4, %s2613_s1 }
 0x62c   : > { %p2615_p7 = pnand %p2614_p5, %p2820_p0 }
 0x62d   : > { %p2620_p4 = por %p2619_p9, %p2618_p6 }
 0x62e   : > { %p2616_p10 = pneg %p2615_p7 }
 0x630   : > { %p2621_p1 = pnand %p2620_p4, %p2616_p10 }
 0x632   : > { %2624 = shalt.err (!%p2621_p1)
}
 0x633   : > { %s2709_s21 = smov 128   ;;  %s2710_s28 = smov 8  }
 0x634   : > { %2459 = dma.vmem_to_hbm [thread:$0]  (%p2820_p0), %s4008_s0, 256, %s4006_s23, %s2196_s20, %s2709_s21, %s2709_s21, %s2710_s28  }
 0x635 PF: > { %s4152_s29 = sld [smem:[#allocation18_spill]]  ;;  %s2224_s5 = sand.u32 1, %s2663_s14  }
 0x636   : > { %s4153_s2 = sld [smem:[#allocation17_spill]]  ;;  %s2225_s9 = scalar_lea.sflag [#allocation7], %s2224_s5 }
 0x63b   : > { %p4154_p8 = scmp.ne.s32.totalorder %s4152_s29, 0 }
 0x63c   : > { %p4155_p13 = scmp.ge.s32.totalorder %s4153_s2, 2 }
 0x63e   : > { %p2470_p11 = pnand %p4155_p13, %p4154_p8 }
 0x640   : > { %p2471_p2 = pneg %p2470_p11 }
 0x642   : > { %2658 = dma.done.wait (%p2471_p2), %s2225_s9, 256  }
 0x643   : > { %2660 = vsyncadd (%p2471_p2), %s2225_s9, 4294967040  ;;  %s21_s19 = sadd.s32 1, %s4153_s2   ;;  %s4156_s14 = sld [smem:[#allocation14_spill]] }
 0x644   : > { %p18_p12 = scmp.ge.s32.totalorder %s21_s19, 4   ;;  %s4157_s15 = sld [smem:[#allocation15_spill]] }
 0x645   : > { %s4158_s16 = sld [smem:[#allocation20_spill]] }
 0x646   : > { %s4159_s17 = sld [smem:[#allocation16_spill]]  ;;  %20 = sbr.rel (!%p18_p12) target bundleno = 11 (0xb), region = 93 }
 0x647   : > { %s4160_s18 = sld [smem:[#allocation19_spill]] }
 0x64b   :  { %2230 = vsyncpa [#allocation6], 1 }
 0x64c   :  { %2232 = vsyncpa [#allocation6 + $0x1], 1 }
 0x64d   :  { %2233 = vsyncpa [#allocation7], 1 }
 0x64e   :  { %2235 = vsyncpa [#allocation7 + $0x1], 1 }
 0x64f   :  { %2236 = vsyncpa [#allocation8], 1 }
 0x650   :  { %2238 = vsyncpa [#allocation8 + $0x1], 1 }

</bundles_post_ra>
